<compile_context>
chip_gen: v7x
topology: tpu7x:2x2x1
jax: 0.10.0
libtpu: 0.0.40
codegen_flags: <defaults>
</compile_context>

<pallas_src>
import functools

import jax
import jax.numpy as jnp
from jax.experimental import pallas as pl
from jax.experimental.pallas import tpu as pltpu

SELU_ALPHA = 1.6732632423543772
SELU_SCALE = 1.0507009873554805

MXU_DTYPE = jnp.bfloat16  # MXU operand dtype; accumulation / elementwise stay f32.


def _selu(y):
    # Clamp before exp so the branch discarded by `where` never overflows.
    neg = SELU_ALPHA * (jnp.exp(jnp.minimum(y, 0.0)) - 1.0)
    return SELU_SCALE * jnp.where(y > 0.0, y, neg)


# ----------------------------------------------------------------------------
# Kernel 1/2: 3x3 stride-2 pad-1 conv + SELU on a space-to-depth input
# ----------------------------------------------------------------------------
def _conv_s2d_kernel(x_ref, w_ref, b_ref, o_ref, *, ho, wo):
    """One image per grid step.

    x_ref: (1, P, P, 4*Cin)  bf16   space_to_depth(pad(x))
    w_ref: (4, 4*Cin, Cout)  bf16   2x2 "s2d" form of the 3x3 kernel
    b_ref: (1, Cout)         f32
    o_ref: (1, ho, wo, Cout) f32
    """
    bias = b_ref[...]
    for p in range(ho):                      # static unroll: one output row per step
        acc = None
        for di in range(2):
            for dj in range(2):
                patch = x_ref[0, p + di, dj:dj + wo, :]            # (wo, 4*Cin)
                contrib = jnp.dot(patch, w_ref[2 * di + dj, :, :],
                                  preferred_element_type=jnp.float32)
                acc = contrib if acc is None else acc + contrib
        o_ref[0, p, :, :] = _selu(acc + bias).astype(o_ref.dtype)


def conv3x3_s2_selu(x_s2d, w_s2d, b2):
    """x_s2d: (B, P, P, 4*Cin) bf16; w_s2d: (4, 4*Cin, Cout) bf16; b2: (1, Cout) f32."""
    B, P, _, C4 = x_s2d.shape
    cout = w_s2d.shape[-1]
    ho = wo = P - 1
    kern = functools.partial(_conv_s2d_kernel, ho=ho, wo=wo)
    return pl.pallas_call(
        kern,
        out_shape=jax.ShapeDtypeStruct((B, ho, wo, cout), jnp.float32),
        grid=(B,),
        in_specs=[
            pl.BlockSpec((1, P, P, C4), lambda b_: (b_, 0, 0, 0)),
            pl.BlockSpec((4, C4, cout), lambda b_: (0, 0, 0)),
            pl.BlockSpec((1, cout), lambda b_: (0, 0)),
        ],
        out_specs=pl.BlockSpec((1, ho, wo, cout), lambda b_: (b_, 0, 0, 0)),
        compiler_params=pltpu.CompilerParams(dimension_semantics=("parallel",)),
    )(x_s2d, w_s2d, b2)


def _pad_space_to_depth(x):
    """(B, H, W, C) -> (B, (H+2)//2, (W+2)//2, 4*C).

    Zero-pad by 1 then 2x2 pixel-unshuffle (pure layout transform, same byte
    count), so the stride-2 3x3 conv becomes contiguous-slice matmuls in-kernel.
    Channel order is (si, sj, c)."""
    B, H, W, C = x.shape
    xp = jnp.pad(x, ((0, 0), (1, 1), (1, 1), (0, 0)))
    Hp, Wp = H + 2, W + 2
    xp = xp.reshape(B, Hp // 2, 2, Wp // 2, 2, C)
    xp = jnp.transpose(xp, (0, 1, 3, 2, 4, 5))
    return xp.reshape(B, Hp // 2, Wp // 2, 4 * C)


def _conv_w_to_s2d(w):
    """(3, 3, Cin, Cout) conv weight -> (4, 4*Cin, Cout) matching the
    _pad_space_to_depth channel order; stride-2 conv == 2x2 conv on s2d input."""
    _, _, cin, cout = w.shape
    w6 = jnp.zeros((2, 2, 2, 2, cin, cout), w.dtype)   # (di, dj, si, sj, cin, cout)
    for ki in range(3):
        for kj in range(3):
            di, si = divmod(ki, 2)
            dj, sj = divmod(kj, 2)
            w6 = w6.at[di, dj, si, sj].set(w[ki, kj])
    return w6.reshape(4, 4 * cin, cout)


# ----------------------------------------------------------------------------
# Kernel 3: everything after the convs, fused into one VMEM-resident kernel
# ----------------------------------------------------------------------------
def _fused_mlp_kernel(h_ref, joints_ref, task_ref,
                      vfc_w, vfc_b, vhead_w, vhead_b,
                      j1_w, j1_b, j2_w, j2_b,
                      te_w, te_b,
                      f1i_w, f1j_w, f1t_w, f1_b,
                      f2_w, f2_b,
                      hid_w, hid_b,
                      head_w, head_b,
                      vis_out_ref, head_out_ref):
    def dense(x, w_ref, b_ref, act=True):
        y = jnp.dot(x.astype(MXU_DTYPE), w_ref[...],
                    preferred_element_type=jnp.float32) + b_ref[...]
        return _selu(y) if act else y

    # --- ComprehensiveVisualEncoder trunk + its three heads (packed columns) ---
    img_emb = dense(h_ref[...], vfc_w, vfc_b)                        # (B, emb)
    vis_out_ref[...] = dense(img_emb, vhead_w, vhead_b, act=False)   # joints|end_pos|obj_list

    # --- JointEncoder / TaskIDEncoder ---
    joint_emb = dense(dense(joints_ref[...], j1_w, j1_b), j2_w, j2_b)
    task_emb = dense(task_ref[...], te_w, te_b)

    # --- Fusion: cat([img, joint, task], dim=1) @ W1 == sum of per-branch matmuls ---
    s = (jnp.dot(img_emb.astype(MXU_DTYPE), f1i_w[...], preferred_element_type=jnp.float32)
         + jnp.dot(joint_emb.astype(MXU_DTYPE), f1j_w[...], preferred_element_type=jnp.float32)
         + jnp.dot(task_emb.astype(MXU_DTYPE), f1t_w[...], preferred_element_type=jnp.float32)
         + f1_b[...])
    state_emb = dense(_selu(s), f2_w, f2_b)

    # --- Controller + embed_to_target_position, hidden layers packed to N=128 ---
    hid = dense(state_emb, hid_w, hid_b)                             # [ctrl1 | tp1] + SELU
    head_out_ref[...] = dense(hid, head_w, head_b, act=False)        # action | target_pos


def fused_mlp(h_flat, joints, target_id, p):
    B = h_flat.shape[0]
    inputs = [
        h_flat, joints, target_id,
        p["vfc_w"], p["vfc_b"], p["vhead_w"], p["vhead_b"],
        p["j1_w"], p["j1_b"], p["j2_w"], p["j2_b"],
        p["te_w"], p["te_b"],
        p["f1i_w"], p["f1j_w"], p["f1t_w"], p["f1_b"],
        p["f2_w"], p["f2_b"],
        p["hid_w"], p["hid_b"],
        p["head_w"], p["head_b"],
    ]
    vis_n = p["vhead_w"].shape[1]
    head_n = p["head_w"].shape[1]
    in_specs = [pl.BlockSpec(a.shape, lambda i, nd=a.ndim: (0,) * nd) for a in inputs]
    out_specs = [pl.BlockSpec((B, vis_n), lambda i: (0, 0)),
                 pl.BlockSpec((B, head_n), lambda i: (0, 0))]
    return pl.pallas_call(
        _fused_mlp_kernel,
        out_shape=(jax.ShapeDtypeStruct((B, vis_n), jnp.float32),
                   jax.ShapeDtypeStruct((B, head_n), jnp.float32)),
        grid=(1,),
        in_specs=in_specs,
        out_specs=out_specs,
        compiler_params=pltpu.CompilerParams(dimension_semantics=("arbitrary",)),
    )(*inputs)


# ----------------------------------------------------------------------------
# Parameters (deterministic, synthetic) and packing into kernel layout
# ----------------------------------------------------------------------------
def init_params(key, img_size, num_joints, num_tasks, emb, in_ch=3):
    c1, c2 = 16, 32
    flat = (img_size // 4) * (img_size // 4) * c2
    shapes = {
        # ComprehensiveVisualEncoder (synthesized: 2x [conv3x3 s2 + SELU] -> fc -> heads)
        "conv1_w": (3, 3, in_ch, c1), "conv1_b": (c1,),
        "conv2_w": (3, 3, c1, c2), "conv2_b": (c2,),
        "venc_fc_w": (flat, emb), "venc_fc_b": (emb,),
        "joints_head_w": (emb, num_joints * 2), "joints_head_b": (num_joints * 2,),
        "endpos_head_w": (emb, 2), "endpos_head_b": (2,),
        "objlist_head_w": (emb, num_tasks * 2), "objlist_head_b": (num_tasks * 2,),
        # JointEncoder
        "jenc1_w": (num_joints * 2, emb), "jenc1_b": (emb,),
        "jenc2_w": (emb, emb), "jenc2_b": (emb,),
        # TaskIDEncoder
        "tenc_w": (num_tasks, emb), "tenc_b": (emb,),
        # Fusion
        "fus1_w": (emb * 3, emb), "fus1_b": (emb,),
        "fus2_w": (emb, emb), "fus2_b": (emb,),
        # Controller
        "ctrl1_w": (emb, 64), "ctrl1_b": (64,),
        "ctrl2_w": (64, num_joints * 2), "ctrl2_b": (num_joints * 2,),
        # embed_to_target_position
        "tp1_w": (emb, 64), "tp1_b": (64,),
        "tp2_w": (64, 2), "tp2_b": (2,),
    }
    params = {}
    keys = jax.random.split(key, len(shapes))
    for k, (name, shp) in zip(keys, sorted(shapes.items())):
        params[name] = (0.05 * jax.random.normal(k, shp)).astype(jnp.float32)
    return params


def _pack_params(params, emb):
    """Repack raw weights into the fused / packed layout the kernels consume.
    Pure XLA (concat, zero-fill, cast) traced once under jit."""
    f32, cd = jnp.float32, MXU_DTYPE

    def b2(b):
        return b.reshape(1, -1).astype(f32)

    p = {}
    p["c1_w"] = _conv_w_to_s2d(params["conv1_w"]).astype(cd)
    p["c1_b"] = b2(params["conv1_b"])
    p["c2_w"] = _conv_w_to_s2d(params["conv2_w"]).astype(cd)
    p["c2_b"] = b2(params["conv2_b"])

    p["vfc_w"] = params["venc_fc_w"].astype(cd)
    p["vfc_b"] = b2(params["venc_fc_b"])
    p["vhead_w"] = jnp.concatenate(
        [params["joints_head_w"], params["endpos_head_w"], params["objlist_head_w"]],
        axis=1).astype(cd)
    p["vhead_b"] = jnp.concatenate(
        [params["joints_head_b"], params["endpos_head_b"], params["objlist_head_b"]]
    ).reshape(1, -1).astype(f32)

    p["j1_w"] = params["jenc1_w"].astype(cd)
    p["j1_b"] = b2(params["jenc1_b"])
    p["j2_w"] = params["jenc2_w"].astype(cd)
    p["j2_b"] = b2(params["jenc2_b"])
    p["te_w"] = params["tenc_w"].astype(cd)
    p["te_b"] = b2(params["tenc_b"])

    # fusion layer 1 split per branch so torch.cat becomes a sum of matmuls.
    p["f1i_w"] = params["fus1_w"][:emb].astype(cd)
    p["f1j_w"] = params["fus1_w"][emb:2 * emb].astype(cd)
    p["f1t_w"] = params["fus1_w"][2 * emb:].astype(cd)
    p["f1_b"] = b2(params["fus1_b"])
    p["f2_w"] = params["fus2_w"].astype(cd)
    p["f2_b"] = b2(params["fus2_b"])

    # controller / target-position: hidden layers packed, output heads block-diag.
    p["hid_w"] = jnp.concatenate([params["ctrl1_w"], params["tp1_w"]], axis=1).astype(cd)
    p["hid_b"] = jnp.concatenate([params["ctrl1_b"], params["tp1_b"]]).reshape(1, -1).astype(f32)
    k_c, n_c = params["ctrl2_w"].shape
    k_t, n_t = params["tp2_w"].shape
    head_w = jnp.zeros((k_c + k_t, n_c + n_t), f32)
    head_w = head_w.at[:k_c, :n_c].set(params["ctrl2_w"])
    head_w = head_w.at[k_c:, n_c:].set(params["tp2_w"])
    p["head_w"] = head_w.astype(cd)
    p["head_b"] = jnp.concatenate([params["ctrl2_b"], params["tp2_b"]]).reshape(1, -1).astype(f32)
    return p


# ----------------------------------------------------------------------------
# Forward pass (matches Backbone.forward, add_displacement=False)
# ----------------------------------------------------------------------------
def backbone_forward(params, img_nchw, joints, target_id):
    emb = params["fus2_w"].shape[0]
    nj2 = params["ctrl2_w"].shape[1]
    p = _pack_params(params, emb)

    # layout: img arrives NCHW (PyTorch convention); convert to NHWC so channels
    # sit on the lane axis.
    x = jnp.transpose(img_nchw, (0, 2, 3, 1)).astype(jnp.float32)
    B = x.shape[0]

    # --- ComprehensiveVisualEncoder conv trunk: 2 Pallas conv kernels ---
    h = conv3x3_s2_selu(_pad_space_to_depth(x).astype(MXU_DTYPE), p["c1_w"], p["c1_b"])
    h = conv3x3_s2_selu(_pad_space_to_depth(h).astype(MXU_DTYPE), p["c2_w"], p["c2_b"])
    h_flat = h.reshape(B, -1)
    # TODO(synk): flatten order here is (H, W, C); porting real PyTorch weights
    # (which flatten (C, H, W)) would require permuting venc_fc_w rows.

    # --- everything after the convs runs in ONE fused Pallas kernel ---
    vis_out, head_out = fused_mlp(h_flat, joints.astype(jnp.float32),
                                  target_id.astype(jnp.float32), p)

    joints_pred = vis_out[:, :nj2]
    end_position_pred = vis_out[:, nj2:nj2 + 2]
    object_list_pred = vis_out[:, nj2 + 2:]
    action_pred = head_out[:, :nj2]
    target_position_pred = head_out[:, nj2:]

    # TODO(synk): add_displacement branch omitted (constructed with default False).
    return (action_pred, joints_pred, end_position_pred, object_list_pred,
            target_position_pred)


# ----------------------------------------------------------------------------
if __name__ == "__main__":
    B = 2
    IMG_SIZE = 16
    NUM_JOINTS = 4
    NUM_TASKS = 3
    EMB = 32
    IN_CH = 3

    key = jax.random.PRNGKey(0)
    k_params, k_img, k_joints, k_task = jax.random.split(key, 4)

    params = init_params(k_params, IMG_SIZE, NUM_JOINTS, NUM_TASKS, EMB, IN_CH)

    img = jax.random.normal(k_img, (B, IN_CH, IMG_SIZE, IMG_SIZE), jnp.float32)
    joints = jax.random.normal(k_joints, (B, NUM_JOINTS * 2), jnp.float32)
    task_ids = jax.random.randint(k_task, (B,), 0, NUM_TASKS)
    target_id = jax.nn.one_hot(task_ids, NUM_TASKS, dtype=jnp.float32)

    outs = jax.jit(backbone_forward)(params, img, joints, target_id)
    outs = jax.block_until_ready(outs)

    expected_shapes = [
        (B, NUM_JOINTS * 2),   # action_pred
        (B, NUM_JOINTS * 2),   # joints_pred
        (B, 2),                # end_position_pred
        (B, NUM_TASKS * 2),    # object_list_pred
        (B, 2),                # target_position_pred
    ]
    for o, s in zip(outs, expected_shapes):
        assert o.shape == s, (o.shape, s)
        assert jnp.all(jnp.isfinite(o))

    print("KERNEL_OK")
</pallas_src>

<mosaic_0001>
module attributes {stable_mosaic.version = 11 : i64} {
  func.func @_conv_s2d_kernel(%arg0: i32, %arg1: memref<1x9x9x12xbf16, #tpu.memory_space<vmem>>, %arg2: memref<4x12x16xbf16, #tpu.memory_space<vmem>>, %arg3: memref<1x16xf32, #tpu.memory_space<vmem>>, %arg4: memref<1x8x8x16xf32, #tpu.memory_space<vmem>>) attributes {dimension_semantics = [#tpu.dimension_semantics<parallel>], iteration_bounds = array<i64: 2>, scalar_prefetch = 0 : i64, scratch_operands = 0 : i64, tpu.core_type = #tpu.core_type<tc>, window_params = [{transform_indices = @transform_0, window_bounds = array<i64: 1, 9, 9, 12>}, {pipeline_mode = #tpu.pipeline_mode<synchronous>, transform_indices = @transform_1, window_bounds = array<i64: 4, 12, 16>}, {pipeline_mode = #tpu.pipeline_mode<synchronous>, transform_indices = @transform_2, window_bounds = array<i64: 1, 16>}, {transform_indices = @transform_3, window_bounds = array<i64: 1, 8, 8, 16>}]} {
    %c0 = arith.constant 0 : index
    %c0_0 = arith.constant 0 : index
    %0 = vector.load %arg3[%c0, %c0_0] : memref<1x16xf32, #tpu.memory_space<vmem>>, vector<1x16xf32>
    %c0_1 = arith.constant 0 : index
    %c0_2 = arith.constant 0 : index
    %c0_3 = arith.constant 0 : index
    %c0_4 = arith.constant 0 : index
    %1 = vector.load %arg1[%c0_1, %c0_2, %c0_3, %c0_4] : memref<1x9x9x12xbf16, #tpu.memory_space<vmem>>, vector<1x1x8x12xbf16>
    %2 = vector.shape_cast %1 : vector<1x1x8x12xbf16> to vector<8x12xbf16>
    %c0_5 = arith.constant 0 : index
    %c0_6 = arith.constant 0 : index
    %c0_7 = arith.constant 0 : index
    %3 = vector.load %arg2[%c0_5, %c0_6, %c0_7] : memref<4x12x16xbf16, #tpu.memory_space<vmem>>, vector<1x12x16xbf16>
    %4 = vector.shape_cast %3 : vector<1x12x16xbf16> to vector<12x16xbf16>
    %cst = arith.constant dense<0.000000e+00> : vector<8x16xf32>
    %5 = tpu.matmul %2, %4, %cst {dimension_numbers = #tpu.dot_dimension_numbers<[1], [0], [0], [1], [0, 0, 1, 1], [], []>} : vector<8x12xbf16>, vector<12x16xbf16>, vector<8x16xf32> -> vector<8x16xf32>
    %c0_8 = arith.constant 0 : index
    %c0_9 = arith.constant 0 : index
    %c1 = arith.constant 1 : index
    %c0_10 = arith.constant 0 : index
    %6 = vector.load %arg1[%c0_8, %c0_9, %c1, %c0_10] : memref<1x9x9x12xbf16, #tpu.memory_space<vmem>>, vector<1x1x8x12xbf16>
    %7 = vector.shape_cast %6 : vector<1x1x8x12xbf16> to vector<8x12xbf16>
    %c1_11 = arith.constant 1 : index
    %c0_12 = arith.constant 0 : index
    %c0_13 = arith.constant 0 : index
    %8 = vector.load %arg2[%c1_11, %c0_12, %c0_13] : memref<4x12x16xbf16, #tpu.memory_space<vmem>>, vector<1x12x16xbf16>
    %9 = vector.shape_cast %8 : vector<1x12x16xbf16> to vector<12x16xbf16>
    %cst_14 = arith.constant dense<0.000000e+00> : vector<8x16xf32>
    %10 = tpu.matmul %7, %9, %cst_14 {dimension_numbers = #tpu.dot_dimension_numbers<[1], [0], [0], [1], [0, 0, 1, 1], [], []>} : vector<8x12xbf16>, vector<12x16xbf16>, vector<8x16xf32> -> vector<8x16xf32>
    %11 = arith.addf %5, %10 : vector<8x16xf32>
    %c0_15 = arith.constant 0 : index
    %c1_16 = arith.constant 1 : index
    %c0_17 = arith.constant 0 : index
    %c0_18 = arith.constant 0 : index
    %12 = vector.load %arg1[%c0_15, %c1_16, %c0_17, %c0_18] : memref<1x9x9x12xbf16, #tpu.memory_space<vmem>>, vector<1x1x8x12xbf16>
    %13 = vector.shape_cast %12 : vector<1x1x8x12xbf16> to vector<8x12xbf16>
    %c2 = arith.constant 2 : index
    %c0_19 = arith.constant 0 : index
    %c0_20 = arith.constant 0 : index
    %14 = vector.load %arg2[%c2, %c0_19, %c0_20] : memref<4x12x16xbf16, #tpu.memory_space<vmem>>, vector<1x12x16xbf16>
    %15 = vector.shape_cast %14 : vector<1x12x16xbf16> to vector<12x16xbf16>
    %cst_21 = arith.constant dense<0.000000e+00> : vector<8x16xf32>
    %16 = tpu.matmul %13, %15, %cst_21 {dimension_numbers = #tpu.dot_dimension_numbers<[1], [0], [0], [1], [0, 0, 1, 1], [], []>} : vector<8x12xbf16>, vector<12x16xbf16>, vector<8x16xf32> -> vector<8x16xf32>
    %17 = arith.addf %11, %16 : vector<8x16xf32>
    %c0_22 = arith.constant 0 : index
    %c1_23 = arith.constant 1 : index
    %c1_24 = arith.constant 1 : index
    %c0_25 = arith.constant 0 : index
    %18 = vector.load %arg1[%c0_22, %c1_23, %c1_24, %c0_25] : memref<1x9x9x12xbf16, #tpu.memory_space<vmem>>, vector<1x1x8x12xbf16>
    %19 = vector.shape_cast %18 : vector<1x1x8x12xbf16> to vector<8x12xbf16>
    %c3 = arith.constant 3 : index
    %c0_26 = arith.constant 0 : index
    %c0_27 = arith.constant 0 : index
    %20 = vector.load %arg2[%c3, %c0_26, %c0_27] : memref<4x12x16xbf16, #tpu.memory_space<vmem>>, vector<1x12x16xbf16>
    %21 = vector.shape_cast %20 : vector<1x12x16xbf16> to vector<12x16xbf16>
    %cst_28 = arith.constant dense<0.000000e+00> : vector<8x16xf32>
    %22 = tpu.matmul %19, %21, %cst_28 {dimension_numbers = #tpu.dot_dimension_numbers<[1], [0], [0], [1], [0, 0, 1, 1], [], []>} : vector<8x12xbf16>, vector<12x16xbf16>, vector<8x16xf32> -> vector<8x16xf32>
    %23 = arith.addf %17, %22 : vector<8x16xf32>
    %24 = vector.broadcast %0 : vector<1x16xf32> to vector<8x16xf32>
    %25 = arith.addf %23, %24 : vector<8x16xf32>
    %cst_29 = arith.constant 0.000000e+00 : f32
    %26 = vector.broadcast %cst_29 : f32 to vector<8x16xf32>
    %27 = arith.minimumf %25, %26 : vector<8x16xf32>
    %28 = math.exp %27 : vector<8x16xf32>
    %cst_30 = arith.constant 1.000000e+00 : f32
    %29 = vector.broadcast %cst_30 : f32 to vector<8x16xf32>
    %30 = arith.subf %28, %29 : vector<8x16xf32>
    %cst_31 = arith.constant 1.67326319 : f32
    %31 = vector.broadcast %cst_31 : f32 to vector<8x16xf32>
    %32 = arith.mulf %31, %30 : vector<8x16xf32>
    %cst_32 = arith.constant 0.000000e+00 : f32
    %33 = vector.broadcast %cst_32 : f32 to vector<8x16xf32>
    %34 = arith.cmpf ogt, %25, %33 : vector<8x16xf32>
    %35 = arith.select %34, %25, %32 : vector<8x16xi1>, vector<8x16xf32>
    %cst_33 = arith.constant 1.05070102 : f32
    %36 = vector.broadcast %cst_33 : f32 to vector<8x16xf32>
    %37 = arith.mulf %36, %35 : vector<8x16xf32>
    %c0_34 = arith.constant 0 : index
    %c0_35 = arith.constant 0 : index
    %c0_36 = arith.constant 0 : index
    %c0_37 = arith.constant 0 : index
    %38 = vector.load %arg4[%c0_34, %c0_35, %c0_36, %c0_37] : memref<1x8x8x16xf32, #tpu.memory_space<vmem>>, vector<1x1x8x16xf32>
    %39 = vector.shape_cast %38 : vector<1x1x8x16xf32> to vector<8x16xf32>
    %40 = vector.shape_cast %37 : vector<8x16xf32> to vector<1x1x8x16xf32>
    tpu.vector_store %arg4[%c0_34, %c0_35, %c0_36, %c0_37], %40 {strides = array<i32>} : memref<1x8x8x16xf32, #tpu.memory_space<vmem>>, vector<1x1x8x16xf32>,
    %c0_38 = arith.constant 0 : index
    %c1_39 = arith.constant 1 : index
    %c0_40 = arith.constant 0 : index
    %c0_41 = arith.constant 0 : index
    %41 = vector.load %arg1[%c0_38, %c1_39, %c0_40, %c0_41] : memref<1x9x9x12xbf16, #tpu.memory_space<vmem>>, vector<1x1x8x12xbf16>
    %42 = vector.shape_cast %41 : vector<1x1x8x12xbf16> to vector<8x12xbf16>
    %c0_42 = arith.constant 0 : index
    %c0_43 = arith.constant 0 : index
    %c0_44 = arith.constant 0 : index
    %43 = vector.load %arg2[%c0_42, %c0_43, %c0_44] : memref<4x12x16xbf16, #tpu.memory_space<vmem>>, vector<1x12x16xbf16>
    %44 = vector.shape_cast %43 : vector<1x12x16xbf16> to vector<12x16xbf16>
    %cst_45 = arith.constant dense<0.000000e+00> : vector<8x16xf32>
    %45 = tpu.matmul %42, %44, %cst_45 {dimension_numbers = #tpu.dot_dimension_numbers<[1], [0], [0], [1], [0, 0, 1, 1], [], []>} : vector<8x12xbf16>, vector<12x16xbf16>, vector<8x16xf32> -> vector<8x16xf32>
    %c0_46 = arith.constant 0 : index
    %c1_47 = arith.constant 1 : index
    %c1_48 = arith.constant 1 : index
    %c0_49 = arith.constant 0 : index
    %46 = vector.load %arg1[%c0_46, %c1_47, %c1_48, %c0_49] : memref<1x9x9x12xbf16, #tpu.memory_space<vmem>>, vector<1x1x8x12xbf16>
    %47 = vector.shape_cast %46 : vector<1x1x8x12xbf16> to vector<8x12xbf16>
    %c1_50 = arith.constant 1 : index
    %c0_51 = arith.constant 0 : index
    %c0_52 = arith.constant 0 : index
    %48 = vector.load %arg2[%c1_50, %c0_51, %c0_52] : memref<4x12x16xbf16, #tpu.memory_space<vmem>>, vector<1x12x16xbf16>
    %49 = vector.shape_cast %48 : vector<1x12x16xbf16> to vector<12x16xbf16>
    %cst_53 = arith.constant dense<0.000000e+00> : vector<8x16xf32>
    %50 = tpu.matmul %47, %49, %cst_53 {dimension_numbers = #tpu.dot_dimension_numbers<[1], [0], [0], [1], [0, 0, 1, 1], [], []>} : vector<8x12xbf16>, vector<12x16xbf16>, vector<8x16xf32> -> vector<8x16xf32>
    %51 = arith.addf %45, %50 : vector<8x16xf32>
    %c0_54 = arith.constant 0 : index
    %c2_55 = arith.constant 2 : index
    %c0_56 = arith.constant 0 : index
    %c0_57 = arith.constant 0 : index
    %52 = vector.load %arg1[%c0_54, %c2_55, %c0_56, %c0_57] : memref<1x9x9x12xbf16, #tpu.memory_space<vmem>>, vector<1x1x8x12xbf16>
    %53 = vector.shape_cast %52 : vector<1x1x8x12xbf16> to vector<8x12xbf16>
    %c2_58 = arith.constant 2 : index
    %c0_59 = arith.constant 0 : index
    %c0_60 = arith.constant 0 : index
    %54 = vector.load %arg2[%c2_58, %c0_59, %c0_60] : memref<4x12x16xbf16, #tpu.memory_space<vmem>>, vector<1x12x16xbf16>
    %55 = vector.shape_cast %54 : vector<1x12x16xbf16> to vector<12x16xbf16>
    %cst_61 = arith.constant dense<0.000000e+00> : vector<8x16xf32>
    %56 = tpu.matmul %53, %55, %cst_61 {dimension_numbers = #tpu.dot_dimension_numbers<[1], [0], [0], [1], [0, 0, 1, 1], [], []>} : vector<8x12xbf16>, vector<12x16xbf16>, vector<8x16xf32> -> vector<8x16xf32>
    %57 = arith.addf %51, %56 : vector<8x16xf32>
    %c0_62 = arith.constant 0 : index
    %c2_63 = arith.constant 2 : index
    %c1_64 = arith.constant 1 : index
    %c0_65 = arith.constant 0 : index
    %58 = vector.load %arg1[%c0_62, %c2_63, %c1_64, %c0_65] : memref<1x9x9x12xbf16, #tpu.memory_space<vmem>>, vector<1x1x8x12xbf16>
    %59 = vector.shape_cast %58 : vector<1x1x8x12xbf16> to vector<8x12xbf16>
    %c3_66 = arith.constant 3 : index
    %c0_67 = arith.constant 0 : index
    %c0_68 = arith.constant 0 : index
    %60 = vector.load %arg2[%c3_66, %c0_67, %c0_68] : memref<4x12x16xbf16, #tpu.memory_space<vmem>>, vector<1x12x16xbf16>
    %61 = vector.shape_cast %60 : vector<1x12x16xbf16> to vector<12x16xbf16>
    %cst_69 = arith.constant dense<0.000000e+00> : vector<8x16xf32>
    %62 = tpu.matmul %59, %61, %cst_69 {dimension_numbers = #tpu.dot_dimension_numbers<[1], [0], [0], [1], [0, 0, 1, 1], [], []>} : vector<8x12xbf16>, vector<12x16xbf16>, vector<8x16xf32> -> vector<8x16xf32>
    %63 = arith.addf %57, %62 : vector<8x16xf32>
    %64 = vector.broadcast %0 : vector<1x16xf32> to vector<8x16xf32>
    %65 = arith.addf %63, %64 : vector<8x16xf32>
    %cst_70 = arith.constant 0.000000e+00 : f32
    %66 = vector.broadcast %cst_70 : f32 to vector<8x16xf32>
    %67 = arith.minimumf %65, %66 : vector<8x16xf32>
    %68 = math.exp %67 : vector<8x16xf32>
    %cst_71 = arith.constant 1.000000e+00 : f32
    %69 = vector.broadcast %cst_71 : f32 to vector<8x16xf32>
    %70 = arith.subf %68, %69 : vector<8x16xf32>
    %cst_72 = arith.constant 1.67326319 : f32
    %71 = vector.broadcast %cst_72 : f32 to vector<8x16xf32>
    %72 = arith.mulf %71, %70 : vector<8x16xf32>
    %cst_73 = arith.constant 0.000000e+00 : f32
    %73 = vector.broadcast %cst_73 : f32 to vector<8x16xf32>
    %74 = arith.cmpf ogt, %65, %73 : vector<8x16xf32>
    %75 = arith.select %74, %65, %72 : vector<8x16xi1>, vector<8x16xf32>
    %cst_74 = arith.constant 1.05070102 : f32
    %76 = vector.broadcast %cst_74 : f32 to vector<8x16xf32>
    %77 = arith.mulf %76, %75 : vector<8x16xf32>
    %c0_75 = arith.constant 0 : index
    %c1_76 = arith.constant 1 : index
    %c0_77 = arith.constant 0 : index
    %c0_78 = arith.constant 0 : index
    %78 = vector.load %arg4[%c0_75, %c1_76, %c0_77, %c0_78] : memref<1x8x8x16xf32, #tpu.memory_space<vmem>>, vector<1x1x8x16xf32>
    %79 = vector.shape_cast %78 : vector<1x1x8x16xf32> to vector<8x16xf32>
    %80 = vector.shape_cast %77 : vector<8x16xf32> to vector<1x1x8x16xf32>
    tpu.vector_store %arg4[%c0_75, %c1_76, %c0_77, %c0_78], %80 {strides = array<i32>} : memref<1x8x8x16xf32, #tpu.memory_space<vmem>>, vector<1x1x8x16xf32>,
    %c0_79 = arith.constant 0 : index
    %c2_80 = arith.constant 2 : index
    %c0_81 = arith.constant 0 : index
    %c0_82 = arith.constant 0 : index
    %81 = vector.load %arg1[%c0_79, %c2_80, %c0_81, %c0_82] : memref<1x9x9x12xbf16, #tpu.memory_space<vmem>>, vector<1x1x8x12xbf16>
    %82 = vector.shape_cast %81 : vector<1x1x8x12xbf16> to vector<8x12xbf16>
    %c0_83 = arith.constant 0 : index
    %c0_84 = arith.constant 0 : index
    %c0_85 = arith.constant 0 : index
    %83 = vector.load %arg2[%c0_83, %c0_84, %c0_85] : memref<4x12x16xbf16, #tpu.memory_space<vmem>>, vector<1x12x16xbf16>
    %84 = vector.shape_cast %83 : vector<1x12x16xbf16> to vector<12x16xbf16>
    %cst_86 = arith.constant dense<0.000000e+00> : vector<8x16xf32>
    %85 = tpu.matmul %82, %84, %cst_86 {dimension_numbers = #tpu.dot_dimension_numbers<[1], [0], [0], [1], [0, 0, 1, 1], [], []>} : vector<8x12xbf16>, vector<12x16xbf16>, vector<8x16xf32> -> vector<8x16xf32>
    %c0_87 = arith.constant 0 : index
    %c2_88 = arith.constant 2 : index
    %c1_89 = arith.constant 1 : index
    %c0_90 = arith.constant 0 : index
    %86 = vector.load %arg1[%c0_87, %c2_88, %c1_89, %c0_90] : memref<1x9x9x12xbf16, #tpu.memory_space<vmem>>, vector<1x1x8x12xbf16>
    %87 = vector.shape_cast %86 : vector<1x1x8x12xbf16> to vector<8x12xbf16>
    %c1_91 = arith.constant 1 : index
    %c0_92 = arith.constant 0 : index
    %c0_93 = arith.constant 0 : index
    %88 = vector.load %arg2[%c1_91, %c0_92, %c0_93] : memref<4x12x16xbf16, #tpu.memory_space<vmem>>, vector<1x12x16xbf16>
    %89 = vector.shape_cast %88 : vector<1x12x16xbf16> to vector<12x16xbf16>
    %cst_94 = arith.constant dense<0.000000e+00> : vector<8x16xf32>
    %90 = tpu.matmul %87, %89, %cst_94 {dimension_numbers = #tpu.dot_dimension_numbers<[1], [0], [0], [1], [0, 0, 1, 1], [], []>} : vector<8x12xbf16>, vector<12x16xbf16>, vector<8x16xf32> -> vector<8x16xf32>
    %91 = arith.addf %85, %90 : vector<8x16xf32>
    %c0_95 = arith.constant 0 : index
    %c3_96 = arith.constant 3 : index
    %c0_97 = arith.constant 0 : index
    %c0_98 = arith.constant 0 : index
    %92 = vector.load %arg1[%c0_95, %c3_96, %c0_97, %c0_98] : memref<1x9x9x12xbf16, #tpu.memory_space<vmem>>, vector<1x1x8x12xbf16>
    %93 = vector.shape_cast %92 : vector<1x1x8x12xbf16> to vector<8x12xbf16>
    %c2_99 = arith.constant 2 : index
    %c0_100 = arith.constant 0 : index
    %c0_101 = arith.constant 0 : index
    %94 = vector.load %arg2[%c2_99, %c0_100, %c0_101] : memref<4x12x16xbf16, #tpu.memory_space<vmem>>, vector<1x12x16xbf16>
    %95 = vector.shape_cast %94 : vector<1x12x16xbf16> to vector<12x16xbf16>
    %cst_102 = arith.constant dense<0.000000e+00> : vector<8x16xf32>
    %96 = tpu.matmul %93, %95, %cst_102 {dimension_numbers = #tpu.dot_dimension_numbers<[1], [0], [0], [1], [0, 0, 1, 1], [], []>} : vector<8x12xbf16>, vector<12x16xbf16>, vector<8x16xf32> -> vector<8x16xf32>
    %97 = arith.addf %91, %96 : vector<8x16xf32>
    %c0_103 = arith.constant 0 : index
    %c3_104 = arith.constant 3 : index
    %c1_105 = arith.constant 1 : index
    %c0_106 = arith.constant 0 : index
    %98 = vector.load %arg1[%c0_103, %c3_104, %c1_105, %c0_106] : memref<1x9x9x12xbf16, #tpu.memory_space<vmem>>, vector<1x1x8x12xbf16>
    %99 = vector.shape_cast %98 : vector<1x1x8x12xbf16> to vector<8x12xbf16>
    %c3_107 = arith.constant 3 : index
    %c0_108 = arith.constant 0 : index
    %c0_109 = arith.constant 0 : index
    %100 = vector.load %arg2[%c3_107, %c0_108, %c0_109] : memref<4x12x16xbf16, #tpu.memory_space<vmem>>, vector<1x12x16xbf16>
    %101 = vector.shape_cast %100 : vector<1x12x16xbf16> to vector<12x16xbf16>
    %cst_110 = arith.constant dense<0.000000e+00> : vector<8x16xf32>
    %102 = tpu.matmul %99, %101, %cst_110 {dimension_numbers = #tpu.dot_dimension_numbers<[1], [0], [0], [1], [0, 0, 1, 1], [], []>} : vector<8x12xbf16>, vector<12x16xbf16>, vector<8x16xf32> -> vector<8x16xf32>
    %103 = arith.addf %97, %102 : vector<8x16xf32>
    %104 = vector.broadcast %0 : vector<1x16xf32> to vector<8x16xf32>
    %105 = arith.addf %103, %104 : vector<8x16xf32>
    %cst_111 = arith.constant 0.000000e+00 : f32
    %106 = vector.broadcast %cst_111 : f32 to vector<8x16xf32>
    %107 = arith.minimumf %105, %106 : vector<8x16xf32>
    %108 = math.exp %107 : vector<8x16xf32>
    %cst_112 = arith.constant 1.000000e+00 : f32
    %109 = vector.broadcast %cst_112 : f32 to vector<8x16xf32>
    %110 = arith.subf %108, %109 : vector<8x16xf32>
    %cst_113 = arith.constant 1.67326319 : f32
    %111 = vector.broadcast %cst_113 : f32 to vector<8x16xf32>
    %112 = arith.mulf %111, %110 : vector<8x16xf32>
    %cst_114 = arith.constant 0.000000e+00 : f32
    %113 = vector.broadcast %cst_114 : f32 to vector<8x16xf32>
    %114 = arith.cmpf ogt, %105, %113 : vector<8x16xf32>
    %115 = arith.select %114, %105, %112 : vector<8x16xi1>, vector<8x16xf32>
    %cst_115 = arith.constant 1.05070102 : f32
    %116 = vector.broadcast %cst_115 : f32 to vector<8x16xf32>
    %117 = arith.mulf %116, %115 : vector<8x16xf32>
    %c0_116 = arith.constant 0 : index
    %c2_117 = arith.constant 2 : index
    %c0_118 = arith.constant 0 : index
    %c0_119 = arith.constant 0 : index
    %118 = vector.load %arg4[%c0_116, %c2_117, %c0_118, %c0_119] : memref<1x8x8x16xf32, #tpu.memory_space<vmem>>, vector<1x1x8x16xf32>
    %119 = vector.shape_cast %118 : vector<1x1x8x16xf32> to vector<8x16xf32>
    %120 = vector.shape_cast %117 : vector<8x16xf32> to vector<1x1x8x16xf32>
    tpu.vector_store %arg4[%c0_116, %c2_117, %c0_118, %c0_119], %120 {strides = array<i32>} : memref<1x8x8x16xf32, #tpu.memory_space<vmem>>, vector<1x1x8x16xf32>,
    %c0_120 = arith.constant 0 : index
    %c3_121 = arith.constant 3 : index
    %c0_122 = arith.constant 0 : index
    %c0_123 = arith.constant 0 : index
    %121 = vector.load %arg1[%c0_120, %c3_121, %c0_122, %c0_123] : memref<1x9x9x12xbf16, #tpu.memory_space<vmem>>, vector<1x1x8x12xbf16>
    %122 = vector.shape_cast %121 : vector<1x1x8x12xbf16> to vector<8x12xbf16>
    %c0_124 = arith.constant 0 : index
    %c0_125 = arith.constant 0 : index
    %c0_126 = arith.constant 0 : index
    %123 = vector.load %arg2[%c0_124, %c0_125, %c0_126] : memref<4x12x16xbf16, #tpu.memory_space<vmem>>, vector<1x12x16xbf16>
    %124 = vector.shape_cast %123 : vector<1x12x16xbf16> to vector<12x16xbf16>
    %cst_127 = arith.constant dense<0.000000e+00> : vector<8x16xf32>
    %125 = tpu.matmul %122, %124, %cst_127 {dimension_numbers = #tpu.dot_dimension_numbers<[1], [0], [0], [1], [0, 0, 1, 1], [], []>} : vector<8x12xbf16>, vector<12x16xbf16>, vector<8x16xf32> -> vector<8x16xf32>
    %c0_128 = arith.constant 0 : index
    %c3_129 = arith.constant 3 : index
    %c1_130 = arith.constant 1 : index
    %c0_131 = arith.constant 0 : index
    %126 = vector.load %arg1[%c0_128, %c3_129, %c1_130, %c0_131] : memref<1x9x9x12xbf16, #tpu.memory_space<vmem>>, vector<1x1x8x12xbf16>
    %127 = vector.shape_cast %126 : vector<1x1x8x12xbf16> to vector<8x12xbf16>
    %c1_132 = arith.constant 1 : index
    %c0_133 = arith.constant 0 : index
    %c0_134 = arith.constant 0 : index
    %128 = vector.load %arg2[%c1_132, %c0_133, %c0_134] : memref<4x12x16xbf16, #tpu.memory_space<vmem>>, vector<1x12x16xbf16>
    %129 = vector.shape_cast %128 : vector<1x12x16xbf16> to vector<12x16xbf16>
    %cst_135 = arith.constant dense<0.000000e+00> : vector<8x16xf32>
    %130 = tpu.matmul %127, %129, %cst_135 {dimension_numbers = #tpu.dot_dimension_numbers<[1], [0], [0], [1], [0, 0, 1, 1], [], []>} : vector<8x12xbf16>, vector<12x16xbf16>, vector<8x16xf32> -> vector<8x16xf32>
    %131 = arith.addf %125, %130 : vector<8x16xf32>
    %c0_136 = arith.constant 0 : index
    %c4 = arith.constant 4 : index
    %c0_137 = arith.constant 0 : index
    %c0_138 = arith.constant 0 : index
    %132 = vector.load %arg1[%c0_136, %c4, %c0_137, %c0_138] : memref<1x9x9x12xbf16, #tpu.memory_space<vmem>>, vector<1x1x8x12xbf16>
    %133 = vector.shape_cast %132 : vector<1x1x8x12xbf16> to vector<8x12xbf16>
    %c2_139 = arith.constant 2 : index
    %c0_140 = arith.constant 0 : index
    %c0_141 = arith.constant 0 : index
    %134 = vector.load %arg2[%c2_139, %c0_140, %c0_141] : memref<4x12x16xbf16, #tpu.memory_space<vmem>>, vector<1x12x16xbf16>
    %135 = vector.shape_cast %134 : vector<1x12x16xbf16> to vector<12x16xbf16>
    %cst_142 = arith.constant dense<0.000000e+00> : vector<8x16xf32>
    %136 = tpu.matmul %133, %135, %cst_142 {dimension_numbers = #tpu.dot_dimension_numbers<[1], [0], [0], [1], [0, 0, 1, 1], [], []>} : vector<8x12xbf16>, vector<12x16xbf16>, vector<8x16xf32> -> vector<8x16xf32>
    %137 = arith.addf %131, %136 : vector<8x16xf32>
    %c0_143 = arith.constant 0 : index
    %c4_144 = arith.constant 4 : index
    %c1_145 = arith.constant 1 : index
    %c0_146 = arith.constant 0 : index
    %138 = vector.load %arg1[%c0_143, %c4_144, %c1_145, %c0_146] : memref<1x9x9x12xbf16, #tpu.memory_space<vmem>>, vector<1x1x8x12xbf16>
    %139 = vector.shape_cast %138 : vector<1x1x8x12xbf16> to vector<8x12xbf16>
    %c3_147 = arith.constant 3 : index
    %c0_148 = arith.constant 0 : index
    %c0_149 = arith.constant 0 : index
    %140 = vector.load %arg2[%c3_147, %c0_148, %c0_149] : memref<4x12x16xbf16, #tpu.memory_space<vmem>>, vector<1x12x16xbf16>
    %141 = vector.shape_cast %140 : vector<1x12x16xbf16> to vector<12x16xbf16>
    %cst_150 = arith.constant dense<0.000000e+00> : vector<8x16xf32>
    %142 = tpu.matmul %139, %141, %cst_150 {dimension_numbers = #tpu.dot_dimension_numbers<[1], [0], [0], [1], [0, 0, 1, 1], [], []>} : vector<8x12xbf16>, vector<12x16xbf16>, vector<8x16xf32> -> vector<8x16xf32>
    %143 = arith.addf %137, %142 : vector<8x16xf32>
    %144 = vector.broadcast %0 : vector<1x16xf32> to vector<8x16xf32>
    %145 = arith.addf %143, %144 : vector<8x16xf32>
    %cst_151 = arith.constant 0.000000e+00 : f32
    %146 = vector.broadcast %cst_151 : f32 to vector<8x16xf32>
    %147 = arith.minimumf %145, %146 : vector<8x16xf32>
    %148 = math.exp %147 : vector<8x16xf32>
    %cst_152 = arith.constant 1.000000e+00 : f32
    %149 = vector.broadcast %cst_152 : f32 to vector<8x16xf32>
    %150 = arith.subf %148, %149 : vector<8x16xf32>
    %cst_153 = arith.constant 1.67326319 : f32
    %151 = vector.broadcast %cst_153 : f32 to vector<8x16xf32>
    %152 = arith.mulf %151, %150 : vector<8x16xf32>
    %cst_154 = arith.constant 0.000000e+00 : f32
    %153 = vector.broadcast %cst_154 : f32 to vector<8x16xf32>
    %154 = arith.cmpf ogt, %145, %153 : vector<8x16xf32>
    %155 = arith.select %154, %145, %152 : vector<8x16xi1>, vector<8x16xf32>
    %cst_155 = arith.constant 1.05070102 : f32
    %156 = vector.broadcast %cst_155 : f32 to vector<8x16xf32>
    %157 = arith.mulf %156, %155 : vector<8x16xf32>
    %c0_156 = arith.constant 0 : index
    %c3_157 = arith.constant 3 : index
    %c0_158 = arith.constant 0 : index
    %c0_159 = arith.constant 0 : index
    %158 = vector.load %arg4[%c0_156, %c3_157, %c0_158, %c0_159] : memref<1x8x8x16xf32, #tpu.memory_space<vmem>>, vector<1x1x8x16xf32>
    %159 = vector.shape_cast %158 : vector<1x1x8x16xf32> to vector<8x16xf32>
    %160 = vector.shape_cast %157 : vector<8x16xf32> to vector<1x1x8x16xf32>
    tpu.vector_store %arg4[%c0_156, %c3_157, %c0_158, %c0_159], %160 {strides = array<i32>} : memref<1x8x8x16xf32, #tpu.memory_space<vmem>>, vector<1x1x8x16xf32>,
    %c0_160 = arith.constant 0 : index
    %c4_161 = arith.constant 4 : index
    %c0_162 = arith.constant 0 : index
    %c0_163 = arith.constant 0 : index
    %161 = vector.load %arg1[%c0_160, %c4_161, %c0_162, %c0_163] : memref<1x9x9x12xbf16, #tpu.memory_space<vmem>>, vector<1x1x8x12xbf16>
    %162 = vector.shape_cast %161 : vector<1x1x8x12xbf16> to vector<8x12xbf16>
    %c0_164 = arith.constant 0 : index
    %c0_165 = arith.constant 0 : index
    %c0_166 = arith.constant 0 : index
    %163 = vector.load %arg2[%c0_164, %c0_165, %c0_166] : memref<4x12x16xbf16, #tpu.memory_space<vmem>>, vector<1x12x16xbf16>
    %164 = vector.shape_cast %163 : vector<1x12x16xbf16> to vector<12x16xbf16>
    %cst_167 = arith.constant dense<0.000000e+00> : vector<8x16xf32>
    %165 = tpu.matmul %162, %164, %cst_167 {dimension_numbers = #tpu.dot_dimension_numbers<[1], [0], [0], [1], [0, 0, 1, 1], [], []>} : vector<8x12xbf16>, vector<12x16xbf16>, vector<8x16xf32> -> vector<8x16xf32>
    %c0_168 = arith.constant 0 : index
    %c4_169 = arith.constant 4 : index
    %c1_170 = arith.constant 1 : index
    %c0_171 = arith.constant 0 : index
    %166 = vector.load %arg1[%c0_168, %c4_169, %c1_170, %c0_171] : memref<1x9x9x12xbf16, #tpu.memory_space<vmem>>, vector<1x1x8x12xbf16>
    %167 = vector.shape_cast %166 : vector<1x1x8x12xbf16> to vector<8x12xbf16>
    %c1_172 = arith.constant 1 : index
    %c0_173 = arith.constant 0 : index
    %c0_174 = arith.constant 0 : index
    %168 = vector.load %arg2[%c1_172, %c0_173, %c0_174] : memref<4x12x16xbf16, #tpu.memory_space<vmem>>, vector<1x12x16xbf16>
    %169 = vector.shape_cast %168 : vector<1x12x16xbf16> to vector<12x16xbf16>
    %cst_175 = arith.constant dense<0.000000e+00> : vector<8x16xf32>
    %170 = tpu.matmul %167, %169, %cst_175 {dimension_numbers = #tpu.dot_dimension_numbers<[1], [0], [0], [1], [0, 0, 1, 1], [], []>} : vector<8x12xbf16>, vector<12x16xbf16>, vector<8x16xf32> -> vector<8x16xf32>
    %171 = arith.addf %165, %170 : vector<8x16xf32>
    %c0_176 = arith.constant 0 : index
    %c5 = arith.constant 5 : index
    %c0_177 = arith.constant 0 : index
    %c0_178 = arith.constant 0 : index
    %172 = vector.load %arg1[%c0_176, %c5, %c0_177, %c0_178] : memref<1x9x9x12xbf16, #tpu.memory_space<vmem>>, vector<1x1x8x12xbf16>
    %173 = vector.shape_cast %172 : vector<1x1x8x12xbf16> to vector<8x12xbf16>
    %c2_179 = arith.constant 2 : index
    %c0_180 = arith.constant 0 : index
    %c0_181 = arith.constant 0 : index
    %174 = vector.load %arg2[%c2_179, %c0_180, %c0_181] : memref<4x12x16xbf16, #tpu.memory_space<vmem>>, vector<1x12x16xbf16>
    %175 = vector.shape_cast %174 : vector<1x12x16xbf16> to vector<12x16xbf16>
    %cst_182 = arith.constant dense<0.000000e+00> : vector<8x16xf32>
    %176 = tpu.matmul %173, %175, %cst_182 {dimension_numbers = #tpu.dot_dimension_numbers<[1], [0], [0], [1], [0, 0, 1, 1], [], []>} : vector<8x12xbf16>, vector<12x16xbf16>, vector<8x16xf32> -> vector<8x16xf32>
    %177 = arith.addf %171, %176 : vector<8x16xf32>
    %c0_183 = arith.constant 0 : index
    %c5_184 = arith.constant 5 : index
    %c1_185 = arith.constant 1 : index
    %c0_186 = arith.constant 0 : index
    %178 = vector.load %arg1[%c0_183, %c5_184, %c1_185, %c0_186] : memref<1x9x9x12xbf16, #tpu.memory_space<vmem>>, vector<1x1x8x12xbf16>
    %179 = vector.shape_cast %178 : vector<1x1x8x12xbf16> to vector<8x12xbf16>
    %c3_187 = arith.constant 3 : index
    %c0_188 = arith.constant 0 : index
    %c0_189 = arith.constant 0 : index
    %180 = vector.load %arg2[%c3_187, %c0_188, %c0_189] : memref<4x12x16xbf16, #tpu.memory_space<vmem>>, vector<1x12x16xbf16>
    %181 = vector.shape_cast %180 : vector<1x12x16xbf16> to vector<12x16xbf16>
    %cst_190 = arith.constant dense<0.000000e+00> : vector<8x16xf32>
    %182 = tpu.matmul %179, %181, %cst_190 {dimension_numbers = #tpu.dot_dimension_numbers<[1], [0], [0], [1], [0, 0, 1, 1], [], []>} : vector<8x12xbf16>, vector<12x16xbf16>, vector<8x16xf32> -> vector<8x16xf32>
    %183 = arith.addf %177, %182 : vector<8x16xf32>
    %184 = vector.broadcast %0 : vector<1x16xf32> to vector<8x16xf32>
    %185 = arith.addf %183, %184 : vector<8x16xf32>
    %cst_191 = arith.constant 0.000000e+00 : f32
    %186 = vector.broadcast %cst_191 : f32 to vector<8x16xf32>
    %187 = arith.minimumf %185, %186 : vector<8x16xf32>
    %188 = math.exp %187 : vector<8x16xf32>
    %cst_192 = arith.constant 1.000000e+00 : f32
    %189 = vector.broadcast %cst_192 : f32 to vector<8x16xf32>
    %190 = arith.subf %188, %189 : vector<8x16xf32>
    %cst_193 = arith.constant 1.67326319 : f32
    %191 = vector.broadcast %cst_193 : f32 to vector<8x16xf32>
    %192 = arith.mulf %191, %190 : vector<8x16xf32>
    %cst_194 = arith.constant 0.000000e+00 : f32
    %193 = vector.broadcast %cst_194 : f32 to vector<8x16xf32>
    %194 = arith.cmpf ogt, %185, %193 : vector<8x16xf32>
    %195 = arith.select %194, %185, %192 : vector<8x16xi1>, vector<8x16xf32>
    %cst_195 = arith.constant 1.05070102 : f32
    %196 = vector.broadcast %cst_195 : f32 to vector<8x16xf32>
    %197 = arith.mulf %196, %195 : vector<8x16xf32>
    %c0_196 = arith.constant 0 : index
    %c4_197 = arith.constant 4 : index
    %c0_198 = arith.constant 0 : index
    %c0_199 = arith.constant 0 : index
    %198 = vector.load %arg4[%c0_196, %c4_197, %c0_198, %c0_199] : memref<1x8x8x16xf32, #tpu.memory_space<vmem>>, vector<1x1x8x16xf32>
    %199 = vector.shape_cast %198 : vector<1x1x8x16xf32> to vector<8x16xf32>
    %200 = vector.shape_cast %197 : vector<8x16xf32> to vector<1x1x8x16xf32>
    tpu.vector_store %arg4[%c0_196, %c4_197, %c0_198, %c0_199], %200 {strides = array<i32>} : memref<1x8x8x16xf32, #tpu.memory_space<vmem>>, vector<1x1x8x16xf32>,
    %c0_200 = arith.constant 0 : index
    %c5_201 = arith.constant 5 : index
    %c0_202 = arith.constant 0 : index
    %c0_203 = arith.constant 0 : index
    %201 = vector.load %arg1[%c0_200, %c5_201, %c0_202, %c0_203] : memref<1x9x9x12xbf16, #tpu.memory_space<vmem>>, vector<1x1x8x12xbf16>
    %202 = vector.shape_cast %201 : vector<1x1x8x12xbf16> to vector<8x12xbf16>
    %c0_204 = arith.constant 0 : index
    %c0_205 = arith.constant 0 : index
    %c0_206 = arith.constant 0 : index
    %203 = vector.load %arg2[%c0_204, %c0_205, %c0_206] : memref<4x12x16xbf16, #tpu.memory_space<vmem>>, vector<1x12x16xbf16>
    %204 = vector.shape_cast %203 : vector<1x12x16xbf16> to vector<12x16xbf16>
    %cst_207 = arith.constant dense<0.000000e+00> : vector<8x16xf32>
    %205 = tpu.matmul %202, %204, %cst_207 {dimension_numbers = #tpu.dot_dimension_numbers<[1], [0], [0], [1], [0, 0, 1, 1], [], []>} : vector<8x12xbf16>, vector<12x16xbf16>, vector<8x16xf32> -> vector<8x16xf32>
    %c0_208 = arith.constant 0 : index
    %c5_209 = arith.constant 5 : index
    %c1_210 = arith.constant 1 : index
    %c0_211 = arith.constant 0 : index
    %206 = vector.load %arg1[%c0_208, %c5_209, %c1_210, %c0_211] : memref<1x9x9x12xbf16, #tpu.memory_space<vmem>>, vector<1x1x8x12xbf16>
    %207 = vector.shape_cast %206 : vector<1x1x8x12xbf16> to vector<8x12xbf16>
    %c1_212 = arith.constant 1 : index
    %c0_213 = arith.constant 0 : index
    %c0_214 = arith.constant 0 : index
    %208 = vector.load %arg2[%c1_212, %c0_213, %c0_214] : memref<4x12x16xbf16, #tpu.memory_space<vmem>>, vector<1x12x16xbf16>
    %209 = vector.shape_cast %208 : vector<1x12x16xbf16> to vector<12x16xbf16>
    %cst_215 = arith.constant dense<0.000000e+00> : vector<8x16xf32>
    %210 = tpu.matmul %207, %209, %cst_215 {dimension_numbers = #tpu.dot_dimension_numbers<[1], [0], [0], [1], [0, 0, 1, 1], [], []>} : vector<8x12xbf16>, vector<12x16xbf16>, vector<8x16xf32> -> vector<8x16xf32>
    %211 = arith.addf %205, %210 : vector<8x16xf32>
    %c0_216 = arith.constant 0 : index
    %c6 = arith.constant 6 : index
    %c0_217 = arith.constant 0 : index
    %c0_218 = arith.constant 0 : index
    %212 = vector.load %arg1[%c0_216, %c6, %c0_217, %c0_218] : memref<1x9x9x12xbf16, #tpu.memory_space<vmem>>, vector<1x1x8x12xbf16>
    %213 = vector.shape_cast %212 : vector<1x1x8x12xbf16> to vector<8x12xbf16>
    %c2_219 = arith.constant 2 : index
    %c0_220 = arith.constant 0 : index
    %c0_221 = arith.constant 0 : index
    %214 = vector.load %arg2[%c2_219, %c0_220, %c0_221] : memref<4x12x16xbf16, #tpu.memory_space<vmem>>, vector<1x12x16xbf16>
    %215 = vector.shape_cast %214 : vector<1x12x16xbf16> to vector<12x16xbf16>
    %cst_222 = arith.constant dense<0.000000e+00> : vector<8x16xf32>
    %216 = tpu.matmul %213, %215, %cst_222 {dimension_numbers = #tpu.dot_dimension_numbers<[1], [0], [0], [1], [0, 0, 1, 1], [], []>} : vector<8x12xbf16>, vector<12x16xbf16>, vector<8x16xf32> -> vector<8x16xf32>
    %217 = arith.addf %211, %216 : vector<8x16xf32>
    %c0_223 = arith.constant 0 : index
    %c6_224 = arith.constant 6 : index
    %c1_225 = arith.constant 1 : index
    %c0_226 = arith.constant 0 : index
    %218 = vector.load %arg1[%c0_223, %c6_224, %c1_225, %c0_226] : memref<1x9x9x12xbf16, #tpu.memory_space<vmem>>, vector<1x1x8x12xbf16>
    %219 = vector.shape_cast %218 : vector<1x1x8x12xbf16> to vector<8x12xbf16>
    %c3_227 = arith.constant 3 : index
    %c0_228 = arith.constant 0 : index
    %c0_229 = arith.constant 0 : index
    %220 = vector.load %arg2[%c3_227, %c0_228, %c0_229] : memref<4x12x16xbf16, #tpu.memory_space<vmem>>, vector<1x12x16xbf16>
    %221 = vector.shape_cast %220 : vector<1x12x16xbf16> to vector<12x16xbf16>
    %cst_230 = arith.constant dense<0.000000e+00> : vector<8x16xf32>
    %222 = tpu.matmul %219, %221, %cst_230 {dimension_numbers = #tpu.dot_dimension_numbers<[1], [0], [0], [1], [0, 0, 1, 1], [], []>} : vector<8x12xbf16>, vector<12x16xbf16>, vector<8x16xf32> -> vector<8x16xf32>
    %223 = arith.addf %217, %222 : vector<8x16xf32>
    %224 = vector.broadcast %0 : vector<1x16xf32> to vector<8x16xf32>
    %225 = arith.addf %223, %224 : vector<8x16xf32>
    %cst_231 = arith.constant 0.000000e+00 : f32
    %226 = vector.broadcast %cst_231 : f32 to vector<8x16xf32>
    %227 = arith.minimumf %225, %226 : vector<8x16xf32>
    %228 = math.exp %227 : vector<8x16xf32>
    %cst_232 = arith.constant 1.000000e+00 : f32
    %229 = vector.broadcast %cst_232 : f32 to vector<8x16xf32>
    %230 = arith.subf %228, %229 : vector<8x16xf32>
    %cst_233 = arith.constant 1.67326319 : f32
    %231 = vector.broadcast %cst_233 : f32 to vector<8x16xf32>
    %232 = arith.mulf %231, %230 : vector<8x16xf32>
    %cst_234 = arith.constant 0.000000e+00 : f32
    %233 = vector.broadcast %cst_234 : f32 to vector<8x16xf32>
    %234 = arith.cmpf ogt, %225, %233 : vector<8x16xf32>
    %235 = arith.select %234, %225, %232 : vector<8x16xi1>, vector<8x16xf32>
    %cst_235 = arith.constant 1.05070102 : f32
    %236 = vector.broadcast %cst_235 : f32 to vector<8x16xf32>
    %237 = arith.mulf %236, %235 : vector<8x16xf32>
    %c0_236 = arith.constant 0 : index
    %c5_237 = arith.constant 5 : index
    %c0_238 = arith.constant 0 : index
    %c0_239 = arith.constant 0 : index
    %238 = vector.load %arg4[%c0_236, %c5_237, %c0_238, %c0_239] : memref<1x8x8x16xf32, #tpu.memory_space<vmem>>, vector<1x1x8x16xf32>
    %239 = vector.shape_cast %238 : vector<1x1x8x16xf32> to vector<8x16xf32>
    %240 = vector.shape_cast %237 : vector<8x16xf32> to vector<1x1x8x16xf32>
    tpu.vector_store %arg4[%c0_236, %c5_237, %c0_238, %c0_239], %240 {strides = array<i32>} : memref<1x8x8x16xf32, #tpu.memory_space<vmem>>, vector<1x1x8x16xf32>,
    %c0_240 = arith.constant 0 : index
    %c6_241 = arith.constant 6 : index
    %c0_242 = arith.constant 0 : index
    %c0_243 = arith.constant 0 : index
    %241 = vector.load %arg1[%c0_240, %c6_241, %c0_242, %c0_243] : memref<1x9x9x12xbf16, #tpu.memory_space<vmem>>, vector<1x1x8x12xbf16>
    %242 = vector.shape_cast %241 : vector<1x1x8x12xbf16> to vector<8x12xbf16>
    %c0_244 = arith.constant 0 : index
    %c0_245 = arith.constant 0 : index
    %c0_246 = arith.constant 0 : index
    %243 = vector.load %arg2[%c0_244, %c0_245, %c0_246] : memref<4x12x16xbf16, #tpu.memory_space<vmem>>, vector<1x12x16xbf16>
    %244 = vector.shape_cast %243 : vector<1x12x16xbf16> to vector<12x16xbf16>
    %cst_247 = arith.constant dense<0.000000e+00> : vector<8x16xf32>
    %245 = tpu.matmul %242, %244, %cst_247 {dimension_numbers = #tpu.dot_dimension_numbers<[1], [0], [0], [1], [0, 0, 1, 1], [], []>} : vector<8x12xbf16>, vector<12x16xbf16>, vector<8x16xf32> -> vector<8x16xf32>
    %c0_248 = arith.constant 0 : index
    %c6_249 = arith.constant 6 : index
    %c1_250 = arith.constant 1 : index
    %c0_251 = arith.constant 0 : index
    %246 = vector.load %arg1[%c0_248, %c6_249, %c1_250, %c0_251] : memref<1x9x9x12xbf16, #tpu.memory_space<vmem>>, vector<1x1x8x12xbf16>
    %247 = vector.shape_cast %246 : vector<1x1x8x12xbf16> to vector<8x12xbf16>
    %c1_252 = arith.constant 1 : index
    %c0_253 = arith.constant 0 : index
    %c0_254 = arith.constant 0 : index
    %248 = vector.load %arg2[%c1_252, %c0_253, %c0_254] : memref<4x12x16xbf16, #tpu.memory_space<vmem>>, vector<1x12x16xbf16>
    %249 = vector.shape_cast %248 : vector<1x12x16xbf16> to vector<12x16xbf16>
    %cst_255 = arith.constant dense<0.000000e+00> : vector<8x16xf32>
    %250 = tpu.matmul %247, %249, %cst_255 {dimension_numbers = #tpu.dot_dimension_numbers<[1], [0], [0], [1], [0, 0, 1, 1], [], []>} : vector<8x12xbf16>, vector<12x16xbf16>, vector<8x16xf32> -> vector<8x16xf32>
    %251 = arith.addf %245, %250 : vector<8x16xf32>
    %c0_256 = arith.constant 0 : index
    %c7 = arith.constant 7 : index
    %c0_257 = arith.constant 0 : index
    %c0_258 = arith.constant 0 : index
    %252 = vector.load %arg1[%c0_256, %c7, %c0_257, %c0_258] : memref<1x9x9x12xbf16, #tpu.memory_space<vmem>>, vector<1x1x8x12xbf16>
    %253 = vector.shape_cast %252 : vector<1x1x8x12xbf16> to vector<8x12xbf16>
    %c2_259 = arith.constant 2 : index
    %c0_260 = arith.constant 0 : index
    %c0_261 = arith.constant 0 : index
    %254 = vector.load %arg2[%c2_259, %c0_260, %c0_261] : memref<4x12x16xbf16, #tpu.memory_space<vmem>>, vector<1x12x16xbf16>
    %255 = vector.shape_cast %254 : vector<1x12x16xbf16> to vector<12x16xbf16>
    %cst_262 = arith.constant dense<0.000000e+00> : vector<8x16xf32>
    %256 = tpu.matmul %253, %255, %cst_262 {dimension_numbers = #tpu.dot_dimension_numbers<[1], [0], [0], [1], [0, 0, 1, 1], [], []>} : vector<8x12xbf16>, vector<12x16xbf16>, vector<8x16xf32> -> vector<8x16xf32>
    %257 = arith.addf %251, %256 : vector<8x16xf32>
    %c0_263 = arith.constant 0 : index
    %c7_264 = arith.constant 7 : index
    %c1_265 = arith.constant 1 : index
    %c0_266 = arith.constant 0 : index
    %258 = vector.load %arg1[%c0_263, %c7_264, %c1_265, %c0_266] : memref<1x9x9x12xbf16, #tpu.memory_space<vmem>>, vector<1x1x8x12xbf16>
    %259 = vector.shape_cast %258 : vector<1x1x8x12xbf16> to vector<8x12xbf16>
    %c3_267 = arith.constant 3 : index
    %c0_268 = arith.constant 0 : index
    %c0_269 = arith.constant 0 : index
    %260 = vector.load %arg2[%c3_267, %c0_268, %c0_269] : memref<4x12x16xbf16, #tpu.memory_space<vmem>>, vector<1x12x16xbf16>
    %261 = vector.shape_cast %260 : vector<1x12x16xbf16> to vector<12x16xbf16>
    %cst_270 = arith.constant dense<0.000000e+00> : vector<8x16xf32>
    %262 = tpu.matmul %259, %261, %cst_270 {dimension_numbers = #tpu.dot_dimension_numbers<[1], [0], [0], [1], [0, 0, 1, 1], [], []>} : vector<8x12xbf16>, vector<12x16xbf16>, vector<8x16xf32> -> vector<8x16xf32>
    %263 = arith.addf %257, %262 : vector<8x16xf32>
    %264 = vector.broadcast %0 : vector<1x16xf32> to vector<8x16xf32>
    %265 = arith.addf %263, %264 : vector<8x16xf32>
    %cst_271 = arith.constant 0.000000e+00 : f32
    %266 = vector.broadcast %cst_271 : f32 to vector<8x16xf32>
    %267 = arith.minimumf %265, %266 : vector<8x16xf32>
    %268 = math.exp %267 : vector<8x16xf32>
    %cst_272 = arith.constant 1.000000e+00 : f32
    %269 = vector.broadcast %cst_272 : f32 to vector<8x16xf32>
    %270 = arith.subf %268, %269 : vector<8x16xf32>
    %cst_273 = arith.constant 1.67326319 : f32
    %271 = vector.broadcast %cst_273 : f32 to vector<8x16xf32>
    %272 = arith.mulf %271, %270 : vector<8x16xf32>
    %cst_274 = arith.constant 0.000000e+00 : f32
    %273 = vector.broadcast %cst_274 : f32 to vector<8x16xf32>
    %274 = arith.cmpf ogt, %265, %273 : vector<8x16xf32>
    %275 = arith.select %274, %265, %272 : vector<8x16xi1>, vector<8x16xf32>
    %cst_275 = arith.constant 1.05070102 : f32
    %276 = vector.broadcast %cst_275 : f32 to vector<8x16xf32>
    %277 = arith.mulf %276, %275 : vector<8x16xf32>
    %c0_276 = arith.constant 0 : index
    %c6_277 = arith.constant 6 : index
    %c0_278 = arith.constant 0 : index
    %c0_279 = arith.constant 0 : index
    %278 = vector.load %arg4[%c0_276, %c6_277, %c0_278, %c0_279] : memref<1x8x8x16xf32, #tpu.memory_space<vmem>>, vector<1x1x8x16xf32>
    %279 = vector.shape_cast %278 : vector<1x1x8x16xf32> to vector<8x16xf32>
    %280 = vector.shape_cast %277 : vector<8x16xf32> to vector<1x1x8x16xf32>
    tpu.vector_store %arg4[%c0_276, %c6_277, %c0_278, %c0_279], %280 {strides = array<i32>} : memref<1x8x8x16xf32, #tpu.memory_space<vmem>>, vector<1x1x8x16xf32>,
    %c0_280 = arith.constant 0 : index
    %c7_281 = arith.constant 7 : index
    %c0_282 = arith.constant 0 : index
    %c0_283 = arith.constant 0 : index
    %281 = vector.load %arg1[%c0_280, %c7_281, %c0_282, %c0_283] : memref<1x9x9x12xbf16, #tpu.memory_space<vmem>>, vector<1x1x8x12xbf16>
    %282 = vector.shape_cast %281 : vector<1x1x8x12xbf16> to vector<8x12xbf16>
    %c0_284 = arith.constant 0 : index
    %c0_285 = arith.constant 0 : index
    %c0_286 = arith.constant 0 : index
    %283 = vector.load %arg2[%c0_284, %c0_285, %c0_286] : memref<4x12x16xbf16, #tpu.memory_space<vmem>>, vector<1x12x16xbf16>
    %284 = vector.shape_cast %283 : vector<1x12x16xbf16> to vector<12x16xbf16>
    %cst_287 = arith.constant dense<0.000000e+00> : vector<8x16xf32>
    %285 = tpu.matmul %282, %284, %cst_287 {dimension_numbers = #tpu.dot_dimension_numbers<[1], [0], [0], [1], [0, 0, 1, 1], [], []>} : vector<8x12xbf16>, vector<12x16xbf16>, vector<8x16xf32> -> vector<8x16xf32>
    %c0_288 = arith.constant 0 : index
    %c7_289 = arith.constant 7 : index
    %c1_290 = arith.constant 1 : index
    %c0_291 = arith.constant 0 : index
    %286 = vector.load %arg1[%c0_288, %c7_289, %c1_290, %c0_291] : memref<1x9x9x12xbf16, #tpu.memory_space<vmem>>, vector<1x1x8x12xbf16>
    %287 = vector.shape_cast %286 : vector<1x1x8x12xbf16> to vector<8x12xbf16>
    %c1_292 = arith.constant 1 : index
    %c0_293 = arith.constant 0 : index
    %c0_294 = arith.constant 0 : index
    %288 = vector.load %arg2[%c1_292, %c0_293, %c0_294] : memref<4x12x16xbf16, #tpu.memory_space<vmem>>, vector<1x12x16xbf16>
    %289 = vector.shape_cast %288 : vector<1x12x16xbf16> to vector<12x16xbf16>
    %cst_295 = arith.constant dense<0.000000e+00> : vector<8x16xf32>
    %290 = tpu.matmul %287, %289, %cst_295 {dimension_numbers = #tpu.dot_dimension_numbers<[1], [0], [0], [1], [0, 0, 1, 1], [], []>} : vector<8x12xbf16>, vector<12x16xbf16>, vector<8x16xf32> -> vector<8x16xf32>
    %291 = arith.addf %285, %290 : vector<8x16xf32>
    %c0_296 = arith.constant 0 : index
    %c8 = arith.constant 8 : index
    %c0_297 = arith.constant 0 : index
    %c0_298 = arith.constant 0 : index
    %292 = vector.load %arg1[%c0_296, %c8, %c0_297, %c0_298] : memref<1x9x9x12xbf16, #tpu.memory_space<vmem>>, vector<1x1x8x12xbf16>
    %293 = vector.shape_cast %292 : vector<1x1x8x12xbf16> to vector<8x12xbf16>
    %c2_299 = arith.constant 2 : index
    %c0_300 = arith.constant 0 : index
    %c0_301 = arith.constant 0 : index
    %294 = vector.load %arg2[%c2_299, %c0_300, %c0_301] : memref<4x12x16xbf16, #tpu.memory_space<vmem>>, vector<1x12x16xbf16>
    %295 = vector.shape_cast %294 : vector<1x12x16xbf16> to vector<12x16xbf16>
    %cst_302 = arith.constant dense<0.000000e+00> : vector<8x16xf32>
    %296 = tpu.matmul %293, %295, %cst_302 {dimension_numbers = #tpu.dot_dimension_numbers<[1], [0], [0], [1], [0, 0, 1, 1], [], []>} : vector<8x12xbf16>, vector<12x16xbf16>, vector<8x16xf32> -> vector<8x16xf32>
    %297 = arith.addf %291, %296 : vector<8x16xf32>
    %c0_303 = arith.constant 0 : index
    %c8_304 = arith.constant 8 : index
    %c1_305 = arith.constant 1 : index
    %c0_306 = arith.constant 0 : index
    %298 = vector.load %arg1[%c0_303, %c8_304, %c1_305, %c0_306] : memref<1x9x9x12xbf16, #tpu.memory_space<vmem>>, vector<1x1x8x12xbf16>
    %299 = vector.shape_cast %298 : vector<1x1x8x12xbf16> to vector<8x12xbf16>
    %c3_307 = arith.constant 3 : index
    %c0_308 = arith.constant 0 : index
    %c0_309 = arith.constant 0 : index
    %300 = vector.load %arg2[%c3_307, %c0_308, %c0_309] : memref<4x12x16xbf16, #tpu.memory_space<vmem>>, vector<1x12x16xbf16>
    %301 = vector.shape_cast %300 : vector<1x12x16xbf16> to vector<12x16xbf16>
    %cst_310 = arith.constant dense<0.000000e+00> : vector<8x16xf32>
    %302 = tpu.matmul %299, %301, %cst_310 {dimension_numbers = #tpu.dot_dimension_numbers<[1], [0], [0], [1], [0, 0, 1, 1], [], []>} : vector<8x12xbf16>, vector<12x16xbf16>, vector<8x16xf32> -> vector<8x16xf32>
    %303 = arith.addf %297, %302 : vector<8x16xf32>
    %304 = vector.broadcast %0 : vector<1x16xf32> to vector<8x16xf32>
    %305 = arith.addf %303, %304 : vector<8x16xf32>
    %cst_311 = arith.constant 0.000000e+00 : f32
    %306 = vector.broadcast %cst_311 : f32 to vector<8x16xf32>
    %307 = arith.minimumf %305, %306 : vector<8x16xf32>
    %308 = math.exp %307 : vector<8x16xf32>
    %cst_312 = arith.constant 1.000000e+00 : f32
    %309 = vector.broadcast %cst_312 : f32 to vector<8x16xf32>
    %310 = arith.subf %308, %309 : vector<8x16xf32>
    %cst_313 = arith.constant 1.67326319 : f32
    %311 = vector.broadcast %cst_313 : f32 to vector<8x16xf32>
    %312 = arith.mulf %311, %310 : vector<8x16xf32>
    %cst_314 = arith.constant 0.000000e+00 : f32
    %313 = vector.broadcast %cst_314 : f32 to vector<8x16xf32>
    %314 = arith.cmpf ogt, %305, %313 : vector<8x16xf32>
    %315 = arith.select %314, %305, %312 : vector<8x16xi1>, vector<8x16xf32>
    %cst_315 = arith.constant 1.05070102 : f32
    %316 = vector.broadcast %cst_315 : f32 to vector<8x16xf32>
    %317 = arith.mulf %316, %315 : vector<8x16xf32>
    %c0_316 = arith.constant 0 : index
    %c7_317 = arith.constant 7 : index
    %c0_318 = arith.constant 0 : index
    %c0_319 = arith.constant 0 : index
    %318 = vector.load %arg4[%c0_316, %c7_317, %c0_318, %c0_319] : memref<1x8x8x16xf32, #tpu.memory_space<vmem>>, vector<1x1x8x16xf32>
    %319 = vector.shape_cast %318 : vector<1x1x8x16xf32> to vector<8x16xf32>
    %320 = vector.shape_cast %317 : vector<8x16xf32> to vector<1x1x8x16xf32>
    tpu.vector_store %arg4[%c0_316, %c7_317, %c0_318, %c0_319], %320 {strides = array<i32>} : memref<1x8x8x16xf32, #tpu.memory_space<vmem>>, vector<1x1x8x16xf32>,
    return
  }
  func.func @transform_0(%arg0: i32) -> (i32, i32, i32, i32) {
    %c0_i32 = arith.constant 0 : i32
    %c0_i32_0 = arith.constant 0 : i32
    %c0_i32_1 = arith.constant 0 : i32
    %c0_i32_2 = arith.constant 0 : i32
    return %arg0, %c0_i32, %c0_i32_0, %c0_i32_1 : i32, i32, i32, i32
  }
  func.func @transform_1(%arg0: i32) -> (i32, i32, i32) {
    %c0_i32 = arith.constant 0 : i32
    %c0_i32_0 = arith.constant 0 : i32
    %c0_i32_1 = arith.constant 0 : i32
    %c0_i32_2 = arith.constant 0 : i32
    return %c0_i32, %c0_i32_0, %c0_i32_1 : i32, i32, i32
  }
  func.func @transform_2(%arg0: i32) -> (i32, i32) {
    %c0_i32 = arith.constant 0 : i32
    %c0_i32_0 = arith.constant 0 : i32
    %c0_i32_1 = arith.constant 0 : i32
    return %c0_i32, %c0_i32_0 : i32, i32
  }
  func.func @transform_3(%arg0: i32) -> (i32, i32, i32, i32) {
    %c0_i32 = arith.constant 0 : i32
    %c0_i32_0 = arith.constant 0 : i32
    %c0_i32_1 = arith.constant 0 : i32
    %c0_i32_2 = arith.constant 0 : i32
    return %arg0, %c0_i32, %c0_i32_0, %c0_i32_1 : i32, i32, i32, i32
  }
}

module attributes {stable_mosaic.version = 11 : i64} {
  func.func @_conv_s2d_kernel(%arg0: i32, %arg1: memref<1x5x5x64xbf16, #tpu.memory_space<vmem>>, %arg2: memref<4x64x32xbf16, #tpu.memory_space<vmem>>, %arg3: memref<1x32xf32, #tpu.memory_space<vmem>>, %arg4: memref<1x4x4x32xf32, #tpu.memory_space<vmem>>) attributes {dimension_semantics = [#tpu.dimension_semantics<parallel>], iteration_bounds = array<i64: 2>, scalar_prefetch = 0 : i64, scratch_operands = 0 : i64, tpu.core_type = #tpu.core_type<tc>, window_params = [{transform_indices = @transform_0, window_bounds = array<i64: 1, 5, 5, 64>}, {pipeline_mode = #tpu.pipeline_mode<synchronous>, transform_indices = @transform_1, window_bounds = array<i64: 4, 64, 32>}, {pipeline_mode = #tpu.pipeline_mode<synchronous>, transform_indices = @transform_2, window_bounds = array<i64: 1, 32>}, {transform_indices = @transform_3, window_bounds = array<i64: 1, 4, 4, 32>}]} {
    %c0 = arith.constant 0 : index
    %c0_0 = arith.constant 0 : index
    %0 = vector.load %arg3[%c0, %c0_0] : memref<1x32xf32, #tpu.memory_space<vmem>>, vector<1x32xf32>
    %c0_1 = arith.constant 0 : index
    %c0_2 = arith.constant 0 : index
    %c0_3 = arith.constant 0 : index
    %c0_4 = arith.constant 0 : index
    %1 = vector.load %arg1[%c0_1, %c0_2, %c0_3, %c0_4] : memref<1x5x5x64xbf16, #tpu.memory_space<vmem>>, vector<1x1x4x64xbf16>
    %2 = vector.shape_cast %1 : vector<1x1x4x64xbf16> to vector<4x64xbf16>
    %c0_5 = arith.constant 0 : index
    %c0_6 = arith.constant 0 : index
    %c0_7 = arith.constant 0 : index
    %3 = vector.load %arg2[%c0_5, %c0_6, %c0_7] : memref<4x64x32xbf16, #tpu.memory_space<vmem>>, vector<1x64x32xbf16>
    %4 = vector.shape_cast %3 : vector<1x64x32xbf16> to vector<64x32xbf16>
    %cst = arith.constant dense<0.000000e+00> : vector<4x32xf32>
    %5 = tpu.matmul %2, %4, %cst {dimension_numbers = #tpu.dot_dimension_numbers<[1], [0], [0], [1], [0, 0, 1, 1], [], []>} : vector<4x64xbf16>, vector<64x32xbf16>, vector<4x32xf32> -> vector<4x32xf32>
    %c0_8 = arith.constant 0 : index
    %c0_9 = arith.constant 0 : index
    %c1 = arith.constant 1 : index
    %c0_10 = arith.constant 0 : index
    %6 = vector.load %arg1[%c0_8, %c0_9, %c1, %c0_10] : memref<1x5x5x64xbf16, #tpu.memory_space<vmem>>, vector<1x1x4x64xbf16>
    %7 = vector.shape_cast %6 : vector<1x1x4x64xbf16> to vector<4x64xbf16>
    %c1_11 = arith.constant 1 : index
    %c0_12 = arith.constant 0 : index
    %c0_13 = arith.constant 0 : index
    %8 = vector.load %arg2[%c1_11, %c0_12, %c0_13] : memref<4x64x32xbf16, #tpu.memory_space<vmem>>, vector<1x64x32xbf16>
    %9 = vector.shape_cast %8 : vector<1x64x32xbf16> to vector<64x32xbf16>
    %cst_14 = arith.constant dense<0.000000e+00> : vector<4x32xf32>
    %10 = tpu.matmul %7, %9, %cst_14 {dimension_numbers = #tpu.dot_dimension_numbers<[1], [0], [0], [1], [0, 0, 1, 1], [], []>} : vector<4x64xbf16>, vector<64x32xbf16>, vector<4x32xf32> -> vector<4x32xf32>
    %11 = arith.addf %5, %10 : vector<4x32xf32>
    %c0_15 = arith.constant 0 : index
    %c1_16 = arith.constant 1 : index
    %c0_17 = arith.constant 0 : index
    %c0_18 = arith.constant 0 : index
    %12 = vector.load %arg1[%c0_15, %c1_16, %c0_17, %c0_18] : memref<1x5x5x64xbf16, #tpu.memory_space<vmem>>, vector<1x1x4x64xbf16>
    %13 = vector.shape_cast %12 : vector<1x1x4x64xbf16> to vector<4x64xbf16>
    %c2 = arith.constant 2 : index
    %c0_19 = arith.constant 0 : index
    %c0_20 = arith.constant 0 : index
    %14 = vector.load %arg2[%c2, %c0_19, %c0_20] : memref<4x64x32xbf16, #tpu.memory_space<vmem>>, vector<1x64x32xbf16>
    %15 = vector.shape_cast %14 : vector<1x64x32xbf16> to vector<64x32xbf16>
    %cst_21 = arith.constant dense<0.000000e+00> : vector<4x32xf32>
    %16 = tpu.matmul %13, %15, %cst_21 {dimension_numbers = #tpu.dot_dimension_numbers<[1], [0], [0], [1], [0, 0, 1, 1], [], []>} : vector<4x64xbf16>, vector<64x32xbf16>, vector<4x32xf32> -> vector<4x32xf32>
    %17 = arith.addf %11, %16 : vector<4x32xf32>
    %c0_22 = arith.constant 0 : index
    %c1_23 = arith.constant 1 : index
    %c1_24 = arith.constant 1 : index
    %c0_25 = arith.constant 0 : index
    %18 = vector.load %arg1[%c0_22, %c1_23, %c1_24, %c0_25] : memref<1x5x5x64xbf16, #tpu.memory_space<vmem>>, vector<1x1x4x64xbf16>
    %19 = vector.shape_cast %18 : vector<1x1x4x64xbf16> to vector<4x64xbf16>
    %c3 = arith.constant 3 : index
    %c0_26 = arith.constant 0 : index
    %c0_27 = arith.constant 0 : index
    %20 = vector.load %arg2[%c3, %c0_26, %c0_27] : memref<4x64x32xbf16, #tpu.memory_space<vmem>>, vector<1x64x32xbf16>
    %21 = vector.shape_cast %20 : vector<1x64x32xbf16> to vector<64x32xbf16>
    %cst_28 = arith.constant dense<0.000000e+00> : vector<4x32xf32>
    %22 = tpu.matmul %19, %21, %cst_28 {dimension_numbers = #tpu.dot_dimension_numbers<[1], [0], [0], [1], [0, 0, 1, 1], [], []>} : vector<4x64xbf16>, vector<64x32xbf16>, vector<4x32xf32> -> vector<4x32xf32>
    %23 = arith.addf %17, %22 : vector<4x32xf32>
    %24 = vector.broadcast %0 : vector<1x32xf32> to vector<4x32xf32>
    %25 = arith.addf %23, %24 : vector<4x32xf32>
    %cst_29 = arith.constant 0.000000e+00 : f32
    %26 = vector.broadcast %cst_29 : f32 to vector<4x32xf32>
    %27 = arith.minimumf %25, %26 : vector<4x32xf32>
    %28 = math.exp %27 : vector<4x32xf32>
    %cst_30 = arith.constant 1.000000e+00 : f32
    %29 = vector.broadcast %cst_30 : f32 to vector<4x32xf32>
    %30 = arith.subf %28, %29 : vector<4x32xf32>
    %cst_31 = arith.constant 1.67326319 : f32
    %31 = vector.broadcast %cst_31 : f32 to vector<4x32xf32>
    %32 = arith.mulf %31, %30 : vector<4x32xf32>
    %cst_32 = arith.constant 0.000000e+00 : f32
    %33 = vector.broadcast %cst_32 : f32 to vector<4x32xf32>
    %34 = arith.cmpf ogt, %25, %33 : vector<4x32xf32>
    %35 = arith.select %34, %25, %32 : vector<4x32xi1>, vector<4x32xf32>
    %cst_33 = arith.constant 1.05070102 : f32
    %36 = vector.broadcast %cst_33 : f32 to vector<4x32xf32>
    %37 = arith.mulf %36, %35 : vector<4x32xf32>
    %c0_34 = arith.constant 0 : index
    %c0_35 = arith.constant 0 : index
    %c0_36 = arith.constant 0 : index
    %c0_37 = arith.constant 0 : index
    %38 = vector.load %arg4[%c0_34, %c0_35, %c0_36, %c0_37] : memref<1x4x4x32xf32, #tpu.memory_space<vmem>>, vector<1x1x4x32xf32>
    %39 = vector.shape_cast %38 : vector<1x1x4x32xf32> to vector<4x32xf32>
    %40 = vector.shape_cast %37 : vector<4x32xf32> to vector<1x1x4x32xf32>
    tpu.vector_store %arg4[%c0_34, %c0_35, %c0_36, %c0_37], %40 {strides = array<i32>} : memref<1x4x4x32xf32, #tpu.memory_space<vmem>>, vector<1x1x4x32xf32>,
    %c0_38 = arith.constant 0 : index
    %c1_39 = arith.constant 1 : index
    %c0_40 = arith.constant 0 : index
    %c0_41 = arith.constant 0 : index
    %41 = vector.load %arg1[%c0_38, %c1_39, %c0_40, %c0_41] : memref<1x5x5x64xbf16, #tpu.memory_space<vmem>>, vector<1x1x4x64xbf16>
    %42 = vector.shape_cast %41 : vector<1x1x4x64xbf16> to vector<4x64xbf16>
    %c0_42 = arith.constant 0 : index
    %c0_43 = arith.constant 0 : index
    %c0_44 = arith.constant 0 : index
    %43 = vector.load %arg2[%c0_42, %c0_43, %c0_44] : memref<4x64x32xbf16, #tpu.memory_space<vmem>>, vector<1x64x32xbf16>
    %44 = vector.shape_cast %43 : vector<1x64x32xbf16> to vector<64x32xbf16>
    %cst_45 = arith.constant dense<0.000000e+00> : vector<4x32xf32>
    %45 = tpu.matmul %42, %44, %cst_45 {dimension_numbers = #tpu.dot_dimension_numbers<[1], [0], [0], [1], [0, 0, 1, 1], [], []>} : vector<4x64xbf16>, vector<64x32xbf16>, vector<4x32xf32> -> vector<4x32xf32>
    %c0_46 = arith.constant 0 : index
    %c1_47 = arith.constant 1 : index
    %c1_48 = arith.constant 1 : index
    %c0_49 = arith.constant 0 : index
    %46 = vector.load %arg1[%c0_46, %c1_47, %c1_48, %c0_49] : memref<1x5x5x64xbf16, #tpu.memory_space<vmem>>, vector<1x1x4x64xbf16>
    %47 = vector.shape_cast %46 : vector<1x1x4x64xbf16> to vector<4x64xbf16>
    %c1_50 = arith.constant 1 : index
    %c0_51 = arith.constant 0 : index
    %c0_52 = arith.constant 0 : index
    %48 = vector.load %arg2[%c1_50, %c0_51, %c0_52] : memref<4x64x32xbf16, #tpu.memory_space<vmem>>, vector<1x64x32xbf16>
    %49 = vector.shape_cast %48 : vector<1x64x32xbf16> to vector<64x32xbf16>
    %cst_53 = arith.constant dense<0.000000e+00> : vector<4x32xf32>
    %50 = tpu.matmul %47, %49, %cst_53 {dimension_numbers = #tpu.dot_dimension_numbers<[1], [0], [0], [1], [0, 0, 1, 1], [], []>} : vector<4x64xbf16>, vector<64x32xbf16>, vector<4x32xf32> -> vector<4x32xf32>
    %51 = arith.addf %45, %50 : vector<4x32xf32>
    %c0_54 = arith.constant 0 : index
    %c2_55 = arith.constant 2 : index
    %c0_56 = arith.constant 0 : index
    %c0_57 = arith.constant 0 : index
    %52 = vector.load %arg1[%c0_54, %c2_55, %c0_56, %c0_57] : memref<1x5x5x64xbf16, #tpu.memory_space<vmem>>, vector<1x1x4x64xbf16>
    %53 = vector.shape_cast %52 : vector<1x1x4x64xbf16> to vector<4x64xbf16>
    %c2_58 = arith.constant 2 : index
    %c0_59 = arith.constant 0 : index
    %c0_60 = arith.constant 0 : index
    %54 = vector.load %arg2[%c2_58, %c0_59, %c0_60] : memref<4x64x32xbf16, #tpu.memory_space<vmem>>, vector<1x64x32xbf16>
    %55 = vector.shape_cast %54 : vector<1x64x32xbf16> to vector<64x32xbf16>
    %cst_61 = arith.constant dense<0.000000e+00> : vector<4x32xf32>
    %56 = tpu.matmul %53, %55, %cst_61 {dimension_numbers = #tpu.dot_dimension_numbers<[1], [0], [0], [1], [0, 0, 1, 1], [], []>} : vector<4x64xbf16>, vector<64x32xbf16>, vector<4x32xf32> -> vector<4x32xf32>
    %57 = arith.addf %51, %56 : vector<4x32xf32>
    %c0_62 = arith.constant 0 : index
    %c2_63 = arith.constant 2 : index
    %c1_64 = arith.constant 1 : index
    %c0_65 = arith.constant 0 : index
    %58 = vector.load %arg1[%c0_62, %c2_63, %c1_64, %c0_65] : memref<1x5x5x64xbf16, #tpu.memory_space<vmem>>, vector<1x1x4x64xbf16>
    %59 = vector.shape_cast %58 : vector<1x1x4x64xbf16> to vector<4x64xbf16>
    %c3_66 = arith.constant 3 : index
    %c0_67 = arith.constant 0 : index
    %c0_68 = arith.constant 0 : index
    %60 = vector.load %arg2[%c3_66, %c0_67, %c0_68] : memref<4x64x32xbf16, #tpu.memory_space<vmem>>, vector<1x64x32xbf16>
    %61 = vector.shape_cast %60 : vector<1x64x32xbf16> to vector<64x32xbf16>
    %cst_69 = arith.constant dense<0.000000e+00> : vector<4x32xf32>
    %62 = tpu.matmul %59, %61, %cst_69 {dimension_numbers = #tpu.dot_dimension_numbers<[1], [0], [0], [1], [0, 0, 1, 1], [], []>} : vector<4x64xbf16>, vector<64x32xbf16>, vector<4x32xf32> -> vector<4x32xf32>
    %63 = arith.addf %57, %62 : vector<4x32xf32>
    %64 = vector.broadcast %0 : vector<1x32xf32> to vector<4x32xf32>
    %65 = arith.addf %63, %64 : vector<4x32xf32>
    %cst_70 = arith.constant 0.000000e+00 : f32
    %66 = vector.broadcast %cst_70 : f32 to vector<4x32xf32>
    %67 = arith.minimumf %65, %66 : vector<4x32xf32>
    %68 = math.exp %67 : vector<4x32xf32>
    %cst_71 = arith.constant 1.000000e+00 : f32
    %69 = vector.broadcast %cst_71 : f32 to vector<4x32xf32>
    %70 = arith.subf %68, %69 : vector<4x32xf32>
    %cst_72 = arith.constant 1.67326319 : f32
    %71 = vector.broadcast %cst_72 : f32 to vector<4x32xf32>
    %72 = arith.mulf %71, %70 : vector<4x32xf32>
    %cst_73 = arith.constant 0.000000e+00 : f32
    %73 = vector.broadcast %cst_73 : f32 to vector<4x32xf32>
    %74 = arith.cmpf ogt, %65, %73 : vector<4x32xf32>
    %75 = arith.select %74, %65, %72 : vector<4x32xi1>, vector<4x32xf32>
    %cst_74 = arith.constant 1.05070102 : f32
    %76 = vector.broadcast %cst_74 : f32 to vector<4x32xf32>
    %77 = arith.mulf %76, %75 : vector<4x32xf32>
    %c0_75 = arith.constant 0 : index
    %c1_76 = arith.constant 1 : index
    %c0_77 = arith.constant 0 : index
    %c0_78 = arith.constant 0 : index
    %78 = vector.load %arg4[%c0_75, %c1_76, %c0_77, %c0_78] : memref<1x4x4x32xf32, #tpu.memory_space<vmem>>, vector<1x1x4x32xf32>
    %79 = vector.shape_cast %78 : vector<1x1x4x32xf32> to vector<4x32xf32>
    %80 = vector.shape_cast %77 : vector<4x32xf32> to vector<1x1x4x32xf32>
    tpu.vector_store %arg4[%c0_75, %c1_76, %c0_77, %c0_78], %80 {strides = array<i32>} : memref<1x4x4x32xf32, #tpu.memory_space<vmem>>, vector<1x1x4x32xf32>,
    %c0_79 = arith.constant 0 : index
    %c2_80 = arith.constant 2 : index
    %c0_81 = arith.constant 0 : index
    %c0_82 = arith.constant 0 : index
    %81 = vector.load %arg1[%c0_79, %c2_80, %c0_81, %c0_82] : memref<1x5x5x64xbf16, #tpu.memory_space<vmem>>, vector<1x1x4x64xbf16>
    %82 = vector.shape_cast %81 : vector<1x1x4x64xbf16> to vector<4x64xbf16>
    %c0_83 = arith.constant 0 : index
    %c0_84 = arith.constant 0 : index
    %c0_85 = arith.constant 0 : index
    %83 = vector.load %arg2[%c0_83, %c0_84, %c0_85] : memref<4x64x32xbf16, #tpu.memory_space<vmem>>, vector<1x64x32xbf16>
    %84 = vector.shape_cast %83 : vector<1x64x32xbf16> to vector<64x32xbf16>
    %cst_86 = arith.constant dense<0.000000e+00> : vector<4x32xf32>
    %85 = tpu.matmul %82, %84, %cst_86 {dimension_numbers = #tpu.dot_dimension_numbers<[1], [0], [0], [1], [0, 0, 1, 1], [], []>} : vector<4x64xbf16>, vector<64x32xbf16>, vector<4x32xf32> -> vector<4x32xf32>
    %c0_87 = arith.constant 0 : index
    %c2_88 = arith.constant 2 : index
    %c1_89 = arith.constant 1 : index
    %c0_90 = arith.constant 0 : index
    %86 = vector.load %arg1[%c0_87, %c2_88, %c1_89, %c0_90] : memref<1x5x5x64xbf16, #tpu.memory_space<vmem>>, vector<1x1x4x64xbf16>
    %87 = vector.shape_cast %86 : vector<1x1x4x64xbf16> to vector<4x64xbf16>
    %c1_91 = arith.constant 1 : index
    %c0_92 = arith.constant 0 : index
    %c0_93 = arith.constant 0 : index
    %88 = vector.load %arg2[%c1_91, %c0_92, %c0_93] : memref<4x64x32xbf16, #tpu.memory_space<vmem>>, vector<1x64x32xbf16>
    %89 = vector.shape_cast %88 : vector<1x64x32xbf16> to vector<64x32xbf16>
    %cst_94 = arith.constant dense<0.000000e+00> : vector<4x32xf32>
    %90 = tpu.matmul %87, %89, %cst_94 {dimension_numbers = #tpu.dot_dimension_numbers<[1], [0], [0], [1], [0, 0, 1, 1], [], []>} : vector<4x64xbf16>, vector<64x32xbf16>, vector<4x32xf32> -> vector<4x32xf32>
    %91 = arith.addf %85, %90 : vector<4x32xf32>
    %c0_95 = arith.constant 0 : index
    %c3_96 = arith.constant 3 : index
    %c0_97 = arith.constant 0 : index
    %c0_98 = arith.constant 0 : index
    %92 = vector.load %arg1[%c0_95, %c3_96, %c0_97, %c0_98] : memref<1x5x5x64xbf16, #tpu.memory_space<vmem>>, vector<1x1x4x64xbf16>
    %93 = vector.shape_cast %92 : vector<1x1x4x64xbf16> to vector<4x64xbf16>
    %c2_99 = arith.constant 2 : index
    %c0_100 = arith.constant 0 : index
    %c0_101 = arith.constant 0 : index
    %94 = vector.load %arg2[%c2_99, %c0_100, %c0_101] : memref<4x64x32xbf16, #tpu.memory_space<vmem>>, vector<1x64x32xbf16>
    %95 = vector.shape_cast %94 : vector<1x64x32xbf16> to vector<64x32xbf16>
    %cst_102 = arith.constant dense<0.000000e+00> : vector<4x32xf32>
    %96 = tpu.matmul %93, %95, %cst_102 {dimension_numbers = #tpu.dot_dimension_numbers<[1], [0], [0], [1], [0, 0, 1, 1], [], []>} : vector<4x64xbf16>, vector<64x32xbf16>, vector<4x32xf32> -> vector<4x32xf32>
    %97 = arith.addf %91, %96 : vector<4x32xf32>
    %c0_103 = arith.constant 0 : index
    %c3_104 = arith.constant 3 : index
    %c1_105 = arith.constant 1 : index
    %c0_106 = arith.constant 0 : index
    %98 = vector.load %arg1[%c0_103, %c3_104, %c1_105, %c0_106] : memref<1x5x5x64xbf16, #tpu.memory_space<vmem>>, vector<1x1x4x64xbf16>
    %99 = vector.shape_cast %98 : vector<1x1x4x64xbf16> to vector<4x64xbf16>
    %c3_107 = arith.constant 3 : index
    %c0_108 = arith.constant 0 : index
    %c0_109 = arith.constant 0 : index
    %100 = vector.load %arg2[%c3_107, %c0_108, %c0_109] : memref<4x64x32xbf16, #tpu.memory_space<vmem>>, vector<1x64x32xbf16>
    %101 = vector.shape_cast %100 : vector<1x64x32xbf16> to vector<64x32xbf16>
    %cst_110 = arith.constant dense<0.000000e+00> : vector<4x32xf32>
    %102 = tpu.matmul %99, %101, %cst_110 {dimension_numbers = #tpu.dot_dimension_numbers<[1], [0], [0], [1], [0, 0, 1, 1], [], []>} : vector<4x64xbf16>, vector<64x32xbf16>, vector<4x32xf32> -> vector<4x32xf32>
    %103 = arith.addf %97, %102 : vector<4x32xf32>
    %104 = vector.broadcast %0 : vector<1x32xf32> to vector<4x32xf32>
    %105 = arith.addf %103, %104 : vector<4x32xf32>
    %cst_111 = arith.constant 0.000000e+00 : f32
    %106 = vector.broadcast %cst_111 : f32 to vector<4x32xf32>
    %107 = arith.minimumf %105, %106 : vector<4x32xf32>
    %108 = math.exp %107 : vector<4x32xf32>
    %cst_112 = arith.constant 1.000000e+00 : f32
    %109 = vector.broadcast %cst_112 : f32 to vector<4x32xf32>
    %110 = arith.subf %108, %109 : vector<4x32xf32>
    %cst_113 = arith.constant 1.67326319 : f32
    %111 = vector.broadcast %cst_113 : f32 to vector<4x32xf32>
    %112 = arith.mulf %111, %110 : vector<4x32xf32>
    %cst_114 = arith.constant 0.000000e+00 : f32
    %113 = vector.broadcast %cst_114 : f32 to vector<4x32xf32>
    %114 = arith.cmpf ogt, %105, %113 : vector<4x32xf32>
    %115 = arith.select %114, %105, %112 : vector<4x32xi1>, vector<4x32xf32>
    %cst_115 = arith.constant 1.05070102 : f32
    %116 = vector.broadcast %cst_115 : f32 to vector<4x32xf32>
    %117 = arith.mulf %116, %115 : vector<4x32xf32>
    %c0_116 = arith.constant 0 : index
    %c2_117 = arith.constant 2 : index
    %c0_118 = arith.constant 0 : index
    %c0_119 = arith.constant 0 : index
    %118 = vector.load %arg4[%c0_116, %c2_117, %c0_118, %c0_119] : memref<1x4x4x32xf32, #tpu.memory_space<vmem>>, vector<1x1x4x32xf32>
    %119 = vector.shape_cast %118 : vector<1x1x4x32xf32> to vector<4x32xf32>
    %120 = vector.shape_cast %117 : vector<4x32xf32> to vector<1x1x4x32xf32>
    tpu.vector_store %arg4[%c0_116, %c2_117, %c0_118, %c0_119], %120 {strides = array<i32>} : memref<1x4x4x32xf32, #tpu.memory_space<vmem>>, vector<1x1x4x32xf32>,
    %c0_120 = arith.constant 0 : index
    %c3_121 = arith.constant 3 : index
    %c0_122 = arith.constant 0 : index
    %c0_123 = arith.constant 0 : index
    %121 = vector.load %arg1[%c0_120, %c3_121, %c0_122, %c0_123] : memref<1x5x5x64xbf16, #tpu.memory_space<vmem>>, vector<1x1x4x64xbf16>
    %122 = vector.shape_cast %121 : vector<1x1x4x64xbf16> to vector<4x64xbf16>
    %c0_124 = arith.constant 0 : index
    %c0_125 = arith.constant 0 : index
    %c0_126 = arith.constant 0 : index
    %123 = vector.load %arg2[%c0_124, %c0_125, %c0_126] : memref<4x64x32xbf16, #tpu.memory_space<vmem>>, vector<1x64x32xbf16>
    %124 = vector.shape_cast %123 : vector<1x64x32xbf16> to vector<64x32xbf16>
    %cst_127 = arith.constant dense<0.000000e+00> : vector<4x32xf32>
    %125 = tpu.matmul %122, %124, %cst_127 {dimension_numbers = #tpu.dot_dimension_numbers<[1], [0], [0], [1], [0, 0, 1, 1], [], []>} : vector<4x64xbf16>, vector<64x32xbf16>, vector<4x32xf32> -> vector<4x32xf32>
    %c0_128 = arith.constant 0 : index
    %c3_129 = arith.constant 3 : index
    %c1_130 = arith.constant 1 : index
    %c0_131 = arith.constant 0 : index
    %126 = vector.load %arg1[%c0_128, %c3_129, %c1_130, %c0_131] : memref<1x5x5x64xbf16, #tpu.memory_space<vmem>>, vector<1x1x4x64xbf16>
    %127 = vector.shape_cast %126 : vector<1x1x4x64xbf16> to vector<4x64xbf16>
    %c1_132 = arith.constant 1 : index
    %c0_133 = arith.constant 0 : index
    %c0_134 = arith.constant 0 : index
    %128 = vector.load %arg2[%c1_132, %c0_133, %c0_134] : memref<4x64x32xbf16, #tpu.memory_space<vmem>>, vector<1x64x32xbf16>
    %129 = vector.shape_cast %128 : vector<1x64x32xbf16> to vector<64x32xbf16>
    %cst_135 = arith.constant dense<0.000000e+00> : vector<4x32xf32>
    %130 = tpu.matmul %127, %129, %cst_135 {dimension_numbers = #tpu.dot_dimension_numbers<[1], [0], [0], [1], [0, 0, 1, 1], [], []>} : vector<4x64xbf16>, vector<64x32xbf16>, vector<4x32xf32> -> vector<4x32xf32>
    %131 = arith.addf %125, %130 : vector<4x32xf32>
    %c0_136 = arith.constant 0 : index
    %c4 = arith.constant 4 : index
    %c0_137 = arith.constant 0 : index
    %c0_138 = arith.constant 0 : index
    %132 = vector.load %arg1[%c0_136, %c4, %c0_137, %c0_138] : memref<1x5x5x64xbf16, #tpu.memory_space<vmem>>, vector<1x1x4x64xbf16>
    %133 = vector.shape_cast %132 : vector<1x1x4x64xbf16> to vector<4x64xbf16>
    %c2_139 = arith.constant 2 : index
    %c0_140 = arith.constant 0 : index
    %c0_141 = arith.constant 0 : index
    %134 = vector.load %arg2[%c2_139, %c0_140, %c0_141] : memref<4x64x32xbf16, #tpu.memory_space<vmem>>, vector<1x64x32xbf16>
    %135 = vector.shape_cast %134 : vector<1x64x32xbf16> to vector<64x32xbf16>
    %cst_142 = arith.constant dense<0.000000e+00> : vector<4x32xf32>
    %136 = tpu.matmul %133, %135, %cst_142 {dimension_numbers = #tpu.dot_dimension_numbers<[1], [0], [0], [1], [0, 0, 1, 1], [], []>} : vector<4x64xbf16>, vector<64x32xbf16>, vector<4x32xf32> -> vector<4x32xf32>
    %137 = arith.addf %131, %136 : vector<4x32xf32>
    %c0_143 = arith.constant 0 : index
    %c4_144 = arith.constant 4 : index
    %c1_145 = arith.constant 1 : index
    %c0_146 = arith.constant 0 : index
    %138 = vector.load %arg1[%c0_143, %c4_144, %c1_145, %c0_146] : memref<1x5x5x64xbf16, #tpu.memory_space<vmem>>, vector<1x1x4x64xbf16>
    %139 = vector.shape_cast %138 : vector<1x1x4x64xbf16> to vector<4x64xbf16>
    %c3_147 = arith.constant 3 : index
    %c0_148 = arith.constant 0 : index
    %c0_149 = arith.constant 0 : index
    %140 = vector.load %arg2[%c3_147, %c0_148, %c0_149] : memref<4x64x32xbf16, #tpu.memory_space<vmem>>, vector<1x64x32xbf16>
    %141 = vector.shape_cast %140 : vector<1x64x32xbf16> to vector<64x32xbf16>
    %cst_150 = arith.constant dense<0.000000e+00> : vector<4x32xf32>
    %142 = tpu.matmul %139, %141, %cst_150 {dimension_numbers = #tpu.dot_dimension_numbers<[1], [0], [0], [1], [0, 0, 1, 1], [], []>} : vector<4x64xbf16>, vector<64x32xbf16>, vector<4x32xf32> -> vector<4x32xf32>
    %143 = arith.addf %137, %142 : vector<4x32xf32>
    %144 = vector.broadcast %0 : vector<1x32xf32> to vector<4x32xf32>
    %145 = arith.addf %143, %144 : vector<4x32xf32>
    %cst_151 = arith.constant 0.000000e+00 : f32
    %146 = vector.broadcast %cst_151 : f32 to vector<4x32xf32>
    %147 = arith.minimumf %145, %146 : vector<4x32xf32>
    %148 = math.exp %147 : vector<4x32xf32>
    %cst_152 = arith.constant 1.000000e+00 : f32
    %149 = vector.broadcast %cst_152 : f32 to vector<4x32xf32>
    %150 = arith.subf %148, %149 : vector<4x32xf32>
    %cst_153 = arith.constant 1.67326319 : f32
    %151 = vector.broadcast %cst_153 : f32 to vector<4x32xf32>
    %152 = arith.mulf %151, %150 : vector<4x32xf32>
    %cst_154 = arith.constant 0.000000e+00 : f32
    %153 = vector.broadcast %cst_154 : f32 to vector<4x32xf32>
    %154 = arith.cmpf ogt, %145, %153 : vector<4x32xf32>
    %155 = arith.select %154, %145, %152 : vector<4x32xi1>, vector<4x32xf32>
    %cst_155 = arith.constant 1.05070102 : f32
    %156 = vector.broadcast %cst_155 : f32 to vector<4x32xf32>
    %157 = arith.mulf %156, %155 : vector<4x32xf32>
    %c0_156 = arith.constant 0 : index
    %c3_157 = arith.constant 3 : index
    %c0_158 = arith.constant 0 : index
    %c0_159 = arith.constant 0 : index
    %158 = vector.load %arg4[%c0_156, %c3_157, %c0_158, %c0_159] : memref<1x4x4x32xf32, #tpu.memory_space<vmem>>, vector<1x1x4x32xf32>
    %159 = vector.shape_cast %158 : vector<1x1x4x32xf32> to vector<4x32xf32>
    %160 = vector.shape_cast %157 : vector<4x32xf32> to vector<1x1x4x32xf32>
    tpu.vector_store %arg4[%c0_156, %c3_157, %c0_158, %c0_159], %160 {strides = array<i32>} : memref<1x4x4x32xf32, #tpu.memory_space<vmem>>, vector<1x1x4x32xf32>,
    return
  }
  func.func @transform_0(%arg0: i32) -> (i32, i32, i32, i32) {
    %c0_i32 = arith.constant 0 : i32
    %c0_i32_0 = arith.constant 0 : i32
    %c0_i32_1 = arith.constant 0 : i32
    %c0_i32_2 = arith.constant 0 : i32
    return %arg0, %c0_i32, %c0_i32_0, %c0_i32_1 : i32, i32, i32, i32
  }
  func.func @transform_1(%arg0: i32) -> (i32, i32, i32) {
    %c0_i32 = arith.constant 0 : i32
    %c0_i32_0 = arith.constant 0 : i32
    %c0_i32_1 = arith.constant 0 : i32
    %c0_i32_2 = arith.constant 0 : i32
    return %c0_i32, %c0_i32_0, %c0_i32_1 : i32, i32, i32
  }
  func.func @transform_2(%arg0: i32) -> (i32, i32) {
    %c0_i32 = arith.constant 0 : i32
    %c0_i32_0 = arith.constant 0 : i32
    %c0_i32_1 = arith.constant 0 : i32
    return %c0_i32, %c0_i32_0 : i32, i32
  }
  func.func @transform_3(%arg0: i32) -> (i32, i32, i32, i32) {
    %c0_i32 = arith.constant 0 : i32
    %c0_i32_0 = arith.constant 0 : i32
    %c0_i32_1 = arith.constant 0 : i32
    %c0_i32_2 = arith.constant 0 : i32
    return %arg0, %c0_i32, %c0_i32_0, %c0_i32_1 : i32, i32, i32, i32
  }
}

module attributes {stable_mosaic.version = 11 : i64} {
  func.func @_fused_mlp_kernel(%arg0: i32, %arg1: memref<2x512xf32, #tpu.memory_space<vmem>>, %arg2: memref<2x8xf32, #tpu.memory_space<vmem>>, %arg3: memref<2x3xf32, #tpu.memory_space<vmem>>, %arg4: memref<512x32xbf16, #tpu.memory_space<vmem>>, %arg5: memref<1x32xf32, #tpu.memory_space<vmem>>, %arg6: memref<32x16xbf16, #tpu.memory_space<vmem>>, %arg7: memref<1x16xf32, #tpu.memory_space<vmem>>, %arg8: memref<8x32xbf16, #tpu.memory_space<vmem>>, %arg9: memref<1x32xf32, #tpu.memory_space<vmem>>, %arg10: memref<32x32xbf16, #tpu.memory_space<vmem>>, %arg11: memref<1x32xf32, #tpu.memory_space<vmem>>, %arg12: memref<3x32xbf16, #tpu.memory_space<vmem>>, %arg13: memref<1x32xf32, #tpu.memory_space<vmem>>, %arg14: memref<32x32xbf16, #tpu.memory_space<vmem>>, %arg15: memref<32x32xbf16, #tpu.memory_space<vmem>>, %arg16: memref<32x32xbf16, #tpu.memory_space<vmem>>, %arg17: memref<1x32xf32, #tpu.memory_space<vmem>>, %arg18: memref<32x32xbf16, #tpu.memory_space<vmem>>, %arg19: memref<1x32xf32, #tpu.memory_space<vmem>>, %arg20: memref<32x128xbf16, #tpu.memory_space<vmem>>, %arg21: memref<1x128xf32, #tpu.memory_space<vmem>>, %arg22: memref<128x10xbf16, #tpu.memory_space<vmem>>, %arg23: memref<1x10xf32, #tpu.memory_space<vmem>>, %arg24: memref<2x16xf32, #tpu.memory_space<vmem>>, %arg25: memref<2x10xf32, #tpu.memory_space<vmem>>) attributes {dimension_semantics = [#tpu.dimension_semantics<arbitrary>], iteration_bounds = array<i64: 1>, scalar_prefetch = 0 : i64, scratch_operands = 0 : i64, tpu.core_type = #tpu.core_type<tc>, window_params = [{pipeline_mode = #tpu.pipeline_mode<synchronous>, transform_indices = @transform_0, window_bounds = array<i64: 2, 512>}, {pipeline_mode = #tpu.pipeline_mode<synchronous>, transform_indices = @transform_1, window_bounds = array<i64: 2, 8>}, {pipeline_mode = #tpu.pipeline_mode<synchronous>, transform_indices = @transform_2, window_bounds = array<i64: 2, 3>}, {pipeline_mode = #tpu.pipeline_mode<synchronous>, transform_indices = @transform_3, window_bounds = array<i64: 512, 32>}, {pipeline_mode = #tpu.pipeline_mode<synchronous>, transform_indices = @transform_4, window_bounds = array<i64: 1, 32>}, {pipeline_mode = #tpu.pipeline_mode<synchronous>, transform_indices = @transform_5, window_bounds = array<i64: 32, 16>}, {pipeline_mode = #tpu.pipeline_mode<synchronous>, transform_indices = @transform_6, window_bounds = array<i64: 1, 16>}, {pipeline_mode = #tpu.pipeline_mode<synchronous>, transform_indices = @transform_7, window_bounds = array<i64: 8, 32>}, {pipeline_mode = #tpu.pipeline_mode<synchronous>, transform_indices = @transform_8, window_bounds = array<i64: 1, 32>}, {pipeline_mode = #tpu.pipeline_mode<synchronous>, transform_indices = @transform_9, window_bounds = array<i64: 32, 32>}, {pipeline_mode = #tpu.pipeline_mode<synchronous>, transform_indices = @transform_10, window_bounds = array<i64: 1, 32>}, {pipeline_mode = #tpu.pipeline_mode<synchronous>, transform_indices = @transform_11, window_bounds = array<i64: 3, 32>}, {pipeline_mode = #tpu.pipeline_mode<synchronous>, transform_indices = @transform_12, window_bounds = array<i64: 1, 32>}, {pipeline_mode = #tpu.pipeline_mode<synchronous>, transform_indices = @transform_13, window_bounds = array<i64: 32, 32>}, {pipeline_mode = #tpu.pipeline_mode<synchronous>, transform_indices = @transform_14, window_bounds = array<i64: 32, 32>}, {pipeline_mode = #tpu.pipeline_mode<synchronous>, transform_indices = @transform_15, window_bounds = array<i64: 32, 32>}, {pipeline_mode = #tpu.pipeline_mode<synchronous>, transform_indices = @transform_16, window_bounds = array<i64: 1, 32>}, {pipeline_mode = #tpu.pipeline_mode<synchronous>, transform_indices = @transform_17, window_bounds = array<i64: 32, 32>}, {pipeline_mode = #tpu.pipeline_mode<synchronous>, transform_indices = @transform_18, window_bounds = array<i64: 1, 32>}, {pipeline_mode = #tpu.pipeline_mode<synchronous>, transform_indices = @transform_19, window_bounds = array<i64: 32, 128>}, {pipeline_mode = #tpu.pipeline_mode<synchronous>, transform_indices = @transform_20, window_bounds = array<i64: 1, 128>}, {pipeline_mode = #tpu.pipeline_mode<synchronous>, transform_indices = @transform_21, window_bounds = array<i64: 128, 10>}, {pipeline_mode = #tpu.pipeline_mode<synchronous>, transform_indices = @transform_22, window_bounds = array<i64: 1, 10>}, {pipeline_mode = #tpu.pipeline_mode<synchronous>, transform_indices = @transform_23, window_bounds = array<i64: 2, 16>}, {pipeline_mode = #tpu.pipeline_mode<synchronous>, transform_indices = @transform_24, window_bounds = array<i64: 2, 10>}]} {
    %c0 = arith.constant 0 : index
    %c0_0 = arith.constant 0 : index
    %0 = vector.load %arg1[%c0, %c0_0] : memref<2x512xf32, #tpu.memory_space<vmem>>, vector<2x512xf32>
    %1 = arith.truncf %0 : vector<2x512xf32> to vector<2x512xbf16>
    %c0_1 = arith.constant 0 : index
    %c0_2 = arith.constant 0 : index
    %2 = vector.load %arg4[%c0_1, %c0_2] : memref<512x32xbf16, #tpu.memory_space<vmem>>, vector<512x32xbf16>
    %cst = arith.constant dense<0.000000e+00> : vector<2x32xf32>
    %3 = tpu.matmul %1, %2, %cst {dimension_numbers = #tpu.dot_dimension_numbers<[1], [0], [0], [1], [0, 0, 1, 1], [], []>} : vector<2x512xbf16>, vector<512x32xbf16>, vector<2x32xf32> -> vector<2x32xf32>
    %c0_3 = arith.constant 0 : index
    %c0_4 = arith.constant 0 : index
    %4 = vector.load %arg5[%c0_3, %c0_4] : memref<1x32xf32, #tpu.memory_space<vmem>>, vector<1x32xf32>
    %5 = vector.broadcast %4 : vector<1x32xf32> to vector<2x32xf32>
    %6 = arith.addf %3, %5 : vector<2x32xf32>
    %cst_5 = arith.constant 0.000000e+00 : f32
    %7 = vector.broadcast %cst_5 : f32 to vector<2x32xf32>
    %8 = arith.minimumf %6, %7 : vector<2x32xf32>
    %9 = math.exp %8 : vector<2x32xf32>
    %cst_6 = arith.constant 1.000000e+00 : f32
    %10 = vector.broadcast %cst_6 : f32 to vector<2x32xf32>
    %11 = arith.subf %9, %10 : vector<2x32xf32>
    %cst_7 = arith.constant 1.67326319 : f32
    %12 = vector.broadcast %cst_7 : f32 to vector<2x32xf32>
    %13 = arith.mulf %12, %11 : vector<2x32xf32>
    %cst_8 = arith.constant 0.000000e+00 : f32
    %14 = vector.broadcast %cst_8 : f32 to vector<2x32xf32>
    %15 = arith.cmpf ogt, %6, %14 : vector<2x32xf32>
    %16 = arith.select %15, %6, %13 : vector<2x32xi1>, vector<2x32xf32>
    %cst_9 = arith.constant 1.05070102 : f32
    %17 = vector.broadcast %cst_9 : f32 to vector<2x32xf32>
    %18 = arith.mulf %17, %16 : vector<2x32xf32>
    %19 = arith.truncf %18 : vector<2x32xf32> to vector<2x32xbf16>
    %c0_10 = arith.constant 0 : index
    %c0_11 = arith.constant 0 : index
    %20 = vector.load %arg6[%c0_10, %c0_11] : memref<32x16xbf16, #tpu.memory_space<vmem>>, vector<32x16xbf16>
    %cst_12 = arith.constant dense<0.000000e+00> : vector<2x16xf32>
    %21 = tpu.matmul %19, %20, %cst_12 {dimension_numbers = #tpu.dot_dimension_numbers<[1], [0], [0], [1], [0, 0, 1, 1], [], []>} : vector<2x32xbf16>, vector<32x16xbf16>, vector<2x16xf32> -> vector<2x16xf32>
    %c0_13 = arith.constant 0 : index
    %c0_14 = arith.constant 0 : index
    %22 = vector.load %arg7[%c0_13, %c0_14] : memref<1x16xf32, #tpu.memory_space<vmem>>, vector<1x16xf32>
    %23 = vector.broadcast %22 : vector<1x16xf32> to vector<2x16xf32>
    %24 = arith.addf %21, %23 : vector<2x16xf32>
    %c0_15 = arith.constant 0 : index
    %c0_16 = arith.constant 0 : index
    %25 = vector.load %arg24[%c0_15, %c0_16] : memref<2x16xf32, #tpu.memory_space<vmem>>, vector<2x16xf32>
    tpu.vector_store %arg24[%c0_15, %c0_16], %24 {strides = array<i32>} : memref<2x16xf32, #tpu.memory_space<vmem>>, vector<2x16xf32>,
    %c0_17 = arith.constant 0 : index
    %c0_18 = arith.constant 0 : index
    %26 = vector.load %arg2[%c0_17, %c0_18] : memref<2x8xf32, #tpu.memory_space<vmem>>, vector<2x8xf32>
    %27 = arith.truncf %26 : vector<2x8xf32> to vector<2x8xbf16>
    %c0_19 = arith.constant 0 : index
    %c0_20 = arith.constant 0 : index
    %28 = vector.load %arg8[%c0_19, %c0_20] : memref<8x32xbf16, #tpu.memory_space<vmem>>, vector<8x32xbf16>
    %cst_21 = arith.constant dense<0.000000e+00> : vector<2x32xf32>
    %29 = tpu.matmul %27, %28, %cst_21 {dimension_numbers = #tpu.dot_dimension_numbers<[1], [0], [0], [1], [0, 0, 1, 1], [], []>} : vector<2x8xbf16>, vector<8x32xbf16>, vector<2x32xf32> -> vector<2x32xf32>
    %c0_22 = arith.constant 0 : index
    %c0_23 = arith.constant 0 : index
    %30 = vector.load %arg9[%c0_22, %c0_23] : memref<1x32xf32, #tpu.memory_space<vmem>>, vector<1x32xf32>
    %31 = vector.broadcast %30 : vector<1x32xf32> to vector<2x32xf32>
    %32 = arith.addf %29, %31 : vector<2x32xf32>
    %cst_24 = arith.constant 0.000000e+00 : f32
    %33 = vector.broadcast %cst_24 : f32 to vector<2x32xf32>
    %34 = arith.minimumf %32, %33 : vector<2x32xf32>
    %35 = math.exp %34 : vector<2x32xf32>
    %cst_25 = arith.constant 1.000000e+00 : f32
    %36 = vector.broadcast %cst_25 : f32 to vector<2x32xf32>
    %37 = arith.subf %35, %36 : vector<2x32xf32>
    %cst_26 = arith.constant 1.67326319 : f32
    %38 = vector.broadcast %cst_26 : f32 to vector<2x32xf32>
    %39 = arith.mulf %38, %37 : vector<2x32xf32>
    %cst_27 = arith.constant 0.000000e+00 : f32
    %40 = vector.broadcast %cst_27 : f32 to vector<2x32xf32>
    %41 = arith.cmpf ogt, %32, %40 : vector<2x32xf32>
    %42 = arith.select %41, %32, %39 : vector<2x32xi1>, vector<2x32xf32>
    %cst_28 = arith.constant 1.05070102 : f32
    %43 = vector.broadcast %cst_28 : f32 to vector<2x32xf32>
    %44 = arith.mulf %43, %42 : vector<2x32xf32>
    %45 = arith.truncf %44 : vector<2x32xf32> to vector<2x32xbf16>
    %c0_29 = arith.constant 0 : index
    %c0_30 = arith.constant 0 : index
    %46 = vector.load %arg10[%c0_29, %c0_30] : memref<32x32xbf16, #tpu.memory_space<vmem>>, vector<32x32xbf16>
    %cst_31 = arith.constant dense<0.000000e+00> : vector<2x32xf32>
    %47 = tpu.matmul %45, %46, %cst_31 {dimension_numbers = #tpu.dot_dimension_numbers<[1], [0], [0], [1], [0, 0, 1, 1], [], []>} : vector<2x32xbf16>, vector<32x32xbf16>, vector<2x32xf32> -> vector<2x32xf32>
    %c0_32 = arith.constant 0 : index
    %c0_33 = arith.constant 0 : index
    %48 = vector.load %arg11[%c0_32, %c0_33] : memref<1x32xf32, #tpu.memory_space<vmem>>, vector<1x32xf32>
    %49 = vector.broadcast %48 : vector<1x32xf32> to vector<2x32xf32>
    %50 = arith.addf %47, %49 : vector<2x32xf32>
    %cst_34 = arith.constant 0.000000e+00 : f32
    %51 = vector.broadcast %cst_34 : f32 to vector<2x32xf32>
    %52 = arith.minimumf %50, %51 : vector<2x32xf32>
    %53 = math.exp %52 : vector<2x32xf32>
    %cst_35 = arith.constant 1.000000e+00 : f32
    %54 = vector.broadcast %cst_35 : f32 to vector<2x32xf32>
    %55 = arith.subf %53, %54 : vector<2x32xf32>
    %cst_36 = arith.constant 1.67326319 : f32
    %56 = vector.broadcast %cst_36 : f32 to vector<2x32xf32>
    %57 = arith.mulf %56, %55 : vector<2x32xf32>
    %cst_37 = arith.constant 0.000000e+00 : f32
    %58 = vector.broadcast %cst_37 : f32 to vector<2x32xf32>
    %59 = arith.cmpf ogt, %50, %58 : vector<2x32xf32>
    %60 = arith.select %59, %50, %57 : vector<2x32xi1>, vector<2x32xf32>
    %cst_38 = arith.constant 1.05070102 : f32
    %61 = vector.broadcast %cst_38 : f32 to vector<2x32xf32>
    %62 = arith.mulf %61, %60 : vector<2x32xf32>
    %c0_39 = arith.constant 0 : index
    %c0_40 = arith.constant 0 : index
    %63 = vector.load %arg3[%c0_39, %c0_40] : memref<2x3xf32, #tpu.memory_space<vmem>>, vector<2x3xf32>
    %64 = arith.truncf %63 : vector<2x3xf32> to vector<2x3xbf16>
    %c0_41 = arith.constant 0 : index
    %c0_42 = arith.constant 0 : index
    %65 = vector.load %arg12[%c0_41, %c0_42] : memref<3x32xbf16, #tpu.memory_space<vmem>>, vector<3x32xbf16>
    %cst_43 = arith.constant dense<0.000000e+00> : vector<2x32xf32>
    %66 = tpu.matmul %64, %65, %cst_43 {dimension_numbers = #tpu.dot_dimension_numbers<[1], [0], [0], [1], [0, 0, 1, 1], [], []>} : vector<2x3xbf16>, vector<3x32xbf16>, vector<2x32xf32> -> vector<2x32xf32>
    %c0_44 = arith.constant 0 : index
    %c0_45 = arith.constant 0 : index
    %67 = vector.load %arg13[%c0_44, %c0_45] : memref<1x32xf32, #tpu.memory_space<vmem>>, vector<1x32xf32>
    %68 = vector.broadcast %67 : vector<1x32xf32> to vector<2x32xf32>
    %69 = arith.addf %66, %68 : vector<2x32xf32>
    %cst_46 = arith.constant 0.000000e+00 : f32
    %70 = vector.broadcast %cst_46 : f32 to vector<2x32xf32>
    %71 = arith.minimumf %69, %70 : vector<2x32xf32>
    %72 = math.exp %71 : vector<2x32xf32>
    %cst_47 = arith.constant 1.000000e+00 : f32
    %73 = vector.broadcast %cst_47 : f32 to vector<2x32xf32>
    %74 = arith.subf %72, %73 : vector<2x32xf32>
    %cst_48 = arith.constant 1.67326319 : f32
    %75 = vector.broadcast %cst_48 : f32 to vector<2x32xf32>
    %76 = arith.mulf %75, %74 : vector<2x32xf32>
    %cst_49 = arith.constant 0.000000e+00 : f32
    %77 = vector.broadcast %cst_49 : f32 to vector<2x32xf32>
    %78 = arith.cmpf ogt, %69, %77 : vector<2x32xf32>
    %79 = arith.select %78, %69, %76 : vector<2x32xi1>, vector<2x32xf32>
    %cst_50 = arith.constant 1.05070102 : f32
    %80 = vector.broadcast %cst_50 : f32 to vector<2x32xf32>
    %81 = arith.mulf %80, %79 : vector<2x32xf32>
    %82 = arith.truncf %18 : vector<2x32xf32> to vector<2x32xbf16>
    %c0_51 = arith.constant 0 : index
    %c0_52 = arith.constant 0 : index
    %83 = vector.load %arg14[%c0_51, %c0_52] : memref<32x32xbf16, #tpu.memory_space<vmem>>, vector<32x32xbf16>
    %cst_53 = arith.constant dense<0.000000e+00> : vector<2x32xf32>
    %84 = tpu.matmul %82, %83, %cst_53 {dimension_numbers = #tpu.dot_dimension_numbers<[1], [0], [0], [1], [0, 0, 1, 1], [], []>} : vector<2x32xbf16>, vector<32x32xbf16>, vector<2x32xf32> -> vector<2x32xf32>
    %85 = arith.truncf %62 : vector<2x32xf32> to vector<2x32xbf16>
    %c0_54 = arith.constant 0 : index
    %c0_55 = arith.constant 0 : index
    %86 = vector.load %arg15[%c0_54, %c0_55] : memref<32x32xbf16, #tpu.memory_space<vmem>>, vector<32x32xbf16>
    %cst_56 = arith.constant dense<0.000000e+00> : vector<2x32xf32>
    %87 = tpu.matmul %85, %86, %cst_56 {dimension_numbers = #tpu.dot_dimension_numbers<[1], [0], [0], [1], [0, 0, 1, 1], [], []>} : vector<2x32xbf16>, vector<32x32xbf16>, vector<2x32xf32> -> vector<2x32xf32>
    %88 = arith.addf %84, %87 : vector<2x32xf32>
    %89 = arith.truncf %81 : vector<2x32xf32> to vector<2x32xbf16>
    %c0_57 = arith.constant 0 : index
    %c0_58 = arith.constant 0 : index
    %90 = vector.load %arg16[%c0_57, %c0_58] : memref<32x32xbf16, #tpu.memory_space<vmem>>, vector<32x32xbf16>
    %cst_59 = arith.constant dense<0.000000e+00> : vector<2x32xf32>
    %91 = tpu.matmul %89, %90, %cst_59 {dimension_numbers = #tpu.dot_dimension_numbers<[1], [0], [0], [1], [0, 0, 1, 1], [], []>} : vector<2x32xbf16>, vector<32x32xbf16>, vector<2x32xf32> -> vector<2x32xf32>
    %92 = arith.addf %88, %91 : vector<2x32xf32>
    %c0_60 = arith.constant 0 : index
    %c0_61 = arith.constant 0 : index
    %93 = vector.load %arg17[%c0_60, %c0_61] : memref<1x32xf32, #tpu.memory_space<vmem>>, vector<1x32xf32>
    %94 = vector.broadcast %93 : vector<1x32xf32> to vector<2x32xf32>
    %95 = arith.addf %92, %94 : vector<2x32xf32>
    %cst_62 = arith.constant 0.000000e+00 : f32
    %96 = vector.broadcast %cst_62 : f32 to vector<2x32xf32>
    %97 = arith.minimumf %95, %96 : vector<2x32xf32>
    %98 = math.exp %97 : vector<2x32xf32>
    %cst_63 = arith.constant 1.000000e+00 : f32
    %99 = vector.broadcast %cst_63 : f32 to vector<2x32xf32>
    %100 = arith.subf %98, %99 : vector<2x32xf32>
    %cst_64 = arith.constant 1.67326319 : f32
    %101 = vector.broadcast %cst_64 : f32 to vector<2x32xf32>
    %102 = arith.mulf %101, %100 : vector<2x32xf32>
    %cst_65 = arith.constant 0.000000e+00 : f32
    %103 = vector.broadcast %cst_65 : f32 to vector<2x32xf32>
    %104 = arith.cmpf ogt, %95, %103 : vector<2x32xf32>
    %105 = arith.select %104, %95, %102 : vector<2x32xi1>, vector<2x32xf32>
    %cst_66 = arith.constant 1.05070102 : f32
    %106 = vector.broadcast %cst_66 : f32 to vector<2x32xf32>
    %107 = arith.mulf %106, %105 : vector<2x32xf32>
    %108 = arith.truncf %107 : vector<2x32xf32> to vector<2x32xbf16>
    %c0_67 = arith.constant 0 : index
    %c0_68 = arith.constant 0 : index
    %109 = vector.load %arg18[%c0_67, %c0_68] : memref<32x32xbf16, #tpu.memory_space<vmem>>, vector<32x32xbf16>
    %cst_69 = arith.constant dense<0.000000e+00> : vector<2x32xf32>
    %110 = tpu.matmul %108, %109, %cst_69 {dimension_numbers = #tpu.dot_dimension_numbers<[1], [0], [0], [1], [0, 0, 1, 1], [], []>} : vector<2x32xbf16>, vector<32x32xbf16>, vector<2x32xf32> -> vector<2x32xf32>
    %c0_70 = arith.constant 0 : index
    %c0_71 = arith.constant 0 : index
    %111 = vector.load %arg19[%c0_70, %c0_71] : memref<1x32xf32, #tpu.memory_space<vmem>>, vector<1x32xf32>
    %112 = vector.broadcast %111 : vector<1x32xf32> to vector<2x32xf32>
    %113 = arith.addf %110, %112 : vector<2x32xf32>
    %cst_72 = arith.constant 0.000000e+00 : f32
    %114 = vector.broadcast %cst_72 : f32 to vector<2x32xf32>
    %115 = arith.minimumf %113, %114 : vector<2x32xf32>
    %116 = math.exp %115 : vector<2x32xf32>
    %cst_73 = arith.constant 1.000000e+00 : f32
    %117 = vector.broadcast %cst_73 : f32 to vector<2x32xf32>
    %118 = arith.subf %116, %117 : vector<2x32xf32>
    %cst_74 = arith.constant 1.67326319 : f32
    %119 = vector.broadcast %cst_74 : f32 to vector<2x32xf32>
    %120 = arith.mulf %119, %118 : vector<2x32xf32>
    %cst_75 = arith.constant 0.000000e+00 : f32
    %121 = vector.broadcast %cst_75 : f32 to vector<2x32xf32>
    %122 = arith.cmpf ogt, %113, %121 : vector<2x32xf32>
    %123 = arith.select %122, %113, %120 : vector<2x32xi1>, vector<2x32xf32>
    %cst_76 = arith.constant 1.05070102 : f32
    %124 = vector.broadcast %cst_76 : f32 to vector<2x32xf32>
    %125 = arith.mulf %124, %123 : vector<2x32xf32>
    %126 = arith.truncf %125 : vector<2x32xf32> to vector<2x32xbf16>
    %c0_77 = arith.constant 0 : index
    %c0_78 = arith.constant 0 : index
    %127 = vector.load %arg20[%c0_77, %c0_78] : memref<32x128xbf16, #tpu.memory_space<vmem>>, vector<32x128xbf16>
    %cst_79 = arith.constant dense<0.000000e+00> : vector<2x128xf32>
    %128 = tpu.matmul %126, %127, %cst_79 {dimension_numbers = #tpu.dot_dimension_numbers<[1], [0], [0], [1], [0, 0, 1, 1], [], []>} : vector<2x32xbf16>, vector<32x128xbf16>, vector<2x128xf32> -> vector<2x128xf32>
    %c0_80 = arith.constant 0 : index
    %c0_81 = arith.constant 0 : index
    %129 = vector.load %arg21[%c0_80, %c0_81] : memref<1x128xf32, #tpu.memory_space<vmem>>, vector<1x128xf32>
    %130 = vector.broadcast %129 : vector<1x128xf32> to vector<2x128xf32>
    %131 = arith.addf %128, %130 : vector<2x128xf32>
    %cst_82 = arith.constant 0.000000e+00 : f32
    %132 = vector.broadcast %cst_82 : f32 to vector<2x128xf32>
    %133 = arith.minimumf %131, %132 : vector<2x128xf32>
    %134 = math.exp %133 : vector<2x128xf32>
    %cst_83 = arith.constant 1.000000e+00 : f32
    %135 = vector.broadcast %cst_83 : f32 to vector<2x128xf32>
    %136 = arith.subf %134, %135 : vector<2x128xf32>
    %cst_84 = arith.constant 1.67326319 : f32
    %137 = vector.broadcast %cst_84 : f32 to vector<2x128xf32>
    %138 = arith.mulf %137, %136 : vector<2x128xf32>
    %cst_85 = arith.constant 0.000000e+00 : f32
    %139 = vector.broadcast %cst_85 : f32 to vector<2x128xf32>
    %140 = arith.cmpf ogt, %131, %139 : vector<2x128xf32>
    %141 = arith.select %140, %131, %138 : vector<2x128xi1>, vector<2x128xf32>
    %cst_86 = arith.constant 1.05070102 : f32
    %142 = vector.broadcast %cst_86 : f32 to vector<2x128xf32>
    %143 = arith.mulf %142, %141 : vector<2x128xf32>
    %144 = arith.truncf %143 : vector<2x128xf32> to vector<2x128xbf16>
    %c0_87 = arith.constant 0 : index
    %c0_88 = arith.constant 0 : index
    %145 = vector.load %arg22[%c0_87, %c0_88] : memref<128x10xbf16, #tpu.memory_space<vmem>>, vector<128x10xbf16>
    %cst_89 = arith.constant dense<0.000000e+00> : vector<2x10xf32>
    %146 = tpu.matmul %144, %145, %cst_89 {dimension_numbers = #tpu.dot_dimension_numbers<[1], [0], [0], [1], [0, 0, 1, 1], [], []>} : vector<2x128xbf16>, vector<128x10xbf16>, vector<2x10xf32> -> vector<2x10xf32>
    %c0_90 = arith.constant 0 : index
    %c0_91 = arith.constant 0 : index
    %147 = vector.load %arg23[%c0_90, %c0_91] : memref<1x10xf32, #tpu.memory_space<vmem>>, vector<1x10xf32>
    %148 = vector.broadcast %147 : vector<1x10xf32> to vector<2x10xf32>
    %149 = arith.addf %146, %148 : vector<2x10xf32>
    %c0_92 = arith.constant 0 : index
    %c0_93 = arith.constant 0 : index
    %150 = vector.load %arg25[%c0_92, %c0_93] : memref<2x10xf32, #tpu.memory_space<vmem>>, vector<2x10xf32>
    tpu.vector_store %arg25[%c0_92, %c0_93], %149 {strides = array<i32>} : memref<2x10xf32, #tpu.memory_space<vmem>>, vector<2x10xf32>,
    return
  }
  func.func @transform_0(%arg0: i32) -> (i32, i32) {
    %c0_i32 = arith.constant 0 : i32
    %c0_i32_0 = arith.constant 0 : i32
    %c0_i32_1 = arith.constant 0 : i32
    return %c0_i32, %c0_i32_0 : i32, i32
  }
  func.func @transform_1(%arg0: i32) -> (i32, i32) {
    %c0_i32 = arith.constant 0 : i32
    %c0_i32_0 = arith.constant 0 : i32
    %c0_i32_1 = arith.constant 0 : i32
    return %c0_i32, %c0_i32_0 : i32, i32
  }
  func.func @transform_2(%arg0: i32) -> (i32, i32) {
    %c0_i32 = arith.constant 0 : i32
    %c0_i32_0 = arith.constant 0 : i32
    %c0_i32_1 = arith.constant 0 : i32
    return %c0_i32, %c0_i32_0 : i32, i32
  }
  func.func @transform_3(%arg0: i32) -> (i32, i32) {
    %c0_i32 = arith.constant 0 : i32
    %c0_i32_0 = arith.constant 0 : i32
    %c0_i32_1 = arith.constant 0 : i32
    return %c0_i32, %c0_i32_0 : i32, i32
  }
  func.func @transform_4(%arg0: i32) -> (i32, i32) {
    %c0_i32 = arith.constant 0 : i32
    %c0_i32_0 = arith.constant 0 : i32
    %c0_i32_1 = arith.constant 0 : i32
    return %c0_i32, %c0_i32_0 : i32, i32
  }
  func.func @transform_5(%arg0: i32) -> (i32, i32) {
    %c0_i32 = arith.constant 0 : i32
    %c0_i32_0 = arith.constant 0 : i32
    %c0_i32_1 = arith.constant 0 : i32
    return %c0_i32, %c0_i32_0 : i32, i32
  }
  func.func @transform_6(%arg0: i32) -> (i32, i32) {
    %c0_i32 = arith.constant 0 : i32
    %c0_i32_0 = arith.constant 0 : i32
    %c0_i32_1 = arith.constant 0 : i32
    return %c0_i32, %c0_i32_0 : i32, i32
  }
  func.func @transform_7(%arg0: i32) -> (i32, i32) {
    %c0_i32 = arith.constant 0 : i32
    %c0_i32_0 = arith.constant 0 : i32
    %c0_i32_1 = arith.constant 0 : i32
    return %c0_i32, %c0_i32_0 : i32, i32
  }
  func.func @transform_8(%arg0: i32) -> (i32, i32) {
    %c0_i32 = arith.constant 0 : i32
    %c0_i32_0 = arith.constant 0 : i32
    %c0_i32_1 = arith.constant 0 : i32
    return %c0_i32, %c0_i32_0 : i32, i32
  }
  func.func @transform_9(%arg0: i32) -> (i32, i32) {
    %c0_i32 = arith.constant 0 : i32
    %c0_i32_0 = arith.constant 0 : i32
    %c0_i32_1 = arith.constant 0 : i32
    return %c0_i32, %c0_i32_0 : i32, i32
  }
  func.func @transform_10(%arg0: i32) -> (i32, i32) {
    %c0_i32 = arith.constant 0 : i32
    %c0_i32_0 = arith.constant 0 : i32
    %c0_i32_1 = arith.constant 0 : i32
    return %c0_i32, %c0_i32_0 : i32, i32
  }
  func.func @transform_11(%arg0: i32) -> (i32, i32) {
    %c0_i32 = arith.constant 0 : i32
    %c0_i32_0 = arith.constant 0 : i32
    %c0_i32_1 = arith.constant 0 : i32
    return %c0_i32, %c0_i32_0 : i32, i32
  }
  func.func @transform_12(%arg0: i32) -> (i32, i32) {
    %c0_i32 = arith.constant 0 : i32
    %c0_i32_0 = arith.constant 0 : i32
    %c0_i32_1 = arith.constant 0 : i32
    return %c0_i32, %c0_i32_0 : i32, i32
  }
  func.func @transform_13(%arg0: i32) -> (i32, i32) {
    %c0_i32 = arith.constant 0 : i32
    %c0_i32_0 = arith.constant 0 : i32
    %c0_i32_1 = arith.constant 0 : i32
    return %c0_i32, %c0_i32_0 : i32, i32
  }
  func.func @transform_14(%arg0: i32) -> (i32, i32) {
    %c0_i32 = arith.constant 0 : i32
    %c0_i32_0 = arith.constant 0 : i32
    %c0_i32_1 = arith.constant 0 : i32
    return %c0_i32, %c0_i32_0 : i32, i32
  }
  func.func @transform_15(%arg0: i32) -> (i32, i32) {
    %c0_i32 = arith.constant 0 : i32
    %c0_i32_0 = arith.constant 0 : i32
    %c0_i32_1 = arith.constant 0 : i32
    return %c0_i32, %c0_i32_0 : i32, i32
  }
  func.func @transform_16(%arg0: i32) -> (i32, i32) {
    %c0_i32 = arith.constant 0 : i32
    %c0_i32_0 = arith.constant 0 : i32
    %c0_i32_1 = arith.constant 0 : i32
    return %c0_i32, %c0_i32_0 : i32, i32
  }
  func.func @transform_17(%arg0: i32) -> (i32, i32) {
    %c0_i32 = arith.constant 0 : i32
    %c0_i32_0 = arith.constant 0 : i32
    %c0_i32_1 = arith.constant 0 : i32
    return %c0_i32, %c0_i32_0 : i32, i32
  }
  func.func @transform_18(%arg0: i32) -> (i32, i32) {
    %c0_i32 = arith.constant 0 : i32
    %c0_i32_0 = arith.constant 0 : i32
    %c0_i32_1 = arith.constant 0 : i32
    return %c0_i32, %c0_i32_0 : i32, i32
  }
  func.func @transform_19(%arg0: i32) -> (i32, i32) {
    %c0_i32 = arith.constant 0 : i32
    %c0_i32_0 = arith.constant 0 : i32
    %c0_i32_1 = arith.constant 0 : i32
    return %c0_i32, %c0_i32_0 : i32, i32
  }
  func.func @transform_20(%arg0: i32) -> (i32, i32) {
    %c0_i32 = arith.constant 0 : i32
    %c0_i32_0 = arith.constant 0 : i32
    %c0_i32_1 = arith.constant 0 : i32
    return %c0_i32, %c0_i32_0 : i32, i32
  }
  func.func @transform_21(%arg0: i32) -> (i32, i32) {
    %c0_i32 = arith.constant 0 : i32
    %c0_i32_0 = arith.constant 0 : i32
    %c0_i32_1 = arith.constant 0 : i32
    return %c0_i32, %c0_i32_0 : i32, i32
  }
  func.func @transform_22(%arg0: i32) -> (i32, i32) {
    %c0_i32 = arith.constant 0 : i32
    %c0_i32_0 = arith.constant 0 : i32
    %c0_i32_1 = arith.constant 0 : i32
    return %c0_i32, %c0_i32_0 : i32, i32
  }
  func.func @transform_23(%arg0: i32) -> (i32, i32) {
    %c0_i32 = arith.constant 0 : i32
    %c0_i32_0 = arith.constant 0 : i32
    %c0_i32_1 = arith.constant 0 : i32
    return %c0_i32, %c0_i32_0 : i32, i32
  }
  func.func @transform_24(%arg0: i32) -> (i32, i32) {
    %c0_i32 = arith.constant 0 : i32
    %c0_i32_0 = arith.constant 0 : i32
    %c0_i32_1 = arith.constant 0 : i32
    return %c0_i32, %c0_i32_0 : i32, i32
  }
}

</mosaic_0001>

<bundles_post_ra>
// kernel: backbone_forward.3
= control target key start
LH: loop header
LB: loop body
LE: loop exit
PB: predicated region body
PF: predicated region fallthrough
CT: control target
= control target key end

     0   :  { %s2833_s12 = smov 0   ;;  %s3175_s0 = inlined_call_operand.vmem [shape: bf16[2,9,9,12], index: 0, kind: input, shape index: {}]   ;;  %s3176_s1 = inlined_call_operand.vmem [shape: bf16[4,12,16], index: 1, kind: input, shape index: {}]   ;;  %s3177_s2 = inlined_call_operand.vmem [shape: f32[1,16], index: 2, kind: input, shape index: {}]   ;;  %s3178_s3 = inlined_call_operand.vmem [shape: f32[2,8,8,16], index: 3, kind: output, shape index: {}]  }
   0x1 LB: > { %s2279_s13 = sadd.s32 4294967295, %s2809_s12   ;;  %p2283_p0 = scmp.ge.s32.totalorder %s2809_s12, 1  ;;  %s2809_s12 = sphi %s2833_s12, %s13_s12  }
   0x2   : > { %p137_p1 = scmp.lt.s32.totalorder %s2809_s12, 3 }
   0x4   : > { %p138_p2 = pnand %p2283_p0, %p137_p1 }
   0x5   : > { %vm201_vm0 = vcmask (!%p138_p2), 1045504   ;;  %v2811_v0 = vmov (!%p138_p2), 0.0   ;;  %v2739_v1 = vld [vmem:[%s3176_s1 + $0x8] sm:$0x3f] (!%p138_p2)   ;;  %v2740_v2 = vld [vmem:[%s3176_s1] sm:$0x3f] (!%p138_p2)  }
   0x6   : > { %141 = sbr.rel (%p138_p2) target bundleno = 387 (0x183), region = 32  ;;  %2536 = vmatprep.subr.bf16.mxu0 (!%p138_p2), %v2811_v0  ;;  %2542 = vmatprep.subr.bf16.mxu1 (!%p138_p2), %v2811_v0  ;;  %p161_p3 = scmp.lt.s32.totalorder (!%p138_p2), %s2279_s13, 1  ;;  %v203_v3 = vsel (!%p138_p2), %vm201_vm0, %v2739_v1, 0  ;;  %vm2812_vm1 = vmmov (!%p138_p2), 0   ;;  %v254_v4 = vsel (!%p138_p2), %vm201_vm0, %v2740_v2, 0  ;;  %vm197_vm2 = vcmask (!%p138_p2), 97280  }
   0x7   : > { %2544 = vmatprep.mubr.msk.bf16.mxu1 (!%p138_p2), %vm2812_vm1, %v2811_v0  ;;  %2538 = vmatprep.mubr.msk.bf16.mxu0 (!%p138_p2), %vm2812_vm1, %v2811_v0  ;;  %v2743_v5 = vld [vmem:[%s3176_s1 + $0x18] sm:$0x3f] (!%p138_p2)   ;;  %v2742_v11 = vld [vmem:[%s3176_s1 + $0x10] sm:$0x3f] (!%p138_p2)   ;;  %v2746_v16 = vld [vmem:[%s3176_s1] sm:$0x3f] (!%p138_p2)  }
   0x8   : > { %2537 = vmatpush3.bf16.msra.mxu0 (!%p138_p2), %v203_v3  ;;  %2543 = vmatpush3.bf16.msra.mxu1 (!%p138_p2), %v254_v4  ;;  %v379_v6 = vsel (!%p138_p2), %vm201_vm0, %v2743_v5, 0  ;;  %v310_v22 = vsel (!%p138_p2), %vm201_vm0, %v2742_v11, 0  ;;  %v517_v24 = vsel (!%p138_p2), %vm201_vm0, %v2746_v16, 0  ;;  %v2745_v27 = vld [vmem:[%s3176_s1 + $0x8] sm:$0x3f] (!%p138_p2)   ;;  %vm437_vm4 = vcmask (!%p138_p2), 130048  }
   0x9   : > { %2548 = vmatprep.subr.bf16.mxu0 (!%p138_p2), %v2811_v0  ;;  %2554 = vmatprep.subr.bf16.mxu1 (!%p138_p2), %v2811_v0  ;;  %v2749_v28 = vld [vmem:[%s3176_s1 + $0x18] sm:$0x3f] (!%p138_p2)   ;;  %v466_v32 = vsel (!%p138_p2), %vm201_vm0, %v2745_v27, 0  ;;  %v2748_v38 = vld [vmem:[%s3176_s1 + $0x10] sm:$0x3f] (!%p138_p2)  }
   0xa   : > { %v640_v33 = vsel (!%p138_p2), %vm201_vm0, %v2749_v28, 0  ;;  %v2752_v39 = vld [vmem:[%s3176_s1] sm:$0x3f] (!%p138_p2)   ;;  %v572_v44 = vsel (!%p138_p2), %vm201_vm0, %v2748_v38, 0  ;;  %v2751_v48 = vld [vmem:[%s3176_s1 + $0x8] sm:$0x3f] (!%p138_p2)  }
   0xb   : > { %v772_v45 = vsel (!%p138_p2), %vm201_vm0, %v2752_v39, 0  ;;  %v2755_v49 = vld [vmem:[%s3176_s1 + $0x18] sm:$0x3f] (!%p138_p2)   ;;  %v721_v53 = vsel (!%p138_p2), %vm201_vm0, %v2751_v48, 0  ;;  %v2754_v59 = vld [vmem:[%s3176_s1 + $0x10] sm:$0x3f] (!%p138_p2)  }
   0xc   : > { %v895_v54 = vsel (!%p138_p2), %vm201_vm0, %v2755_v49, 0  ;;  %v2758_v60 = vld [vmem:[%s3176_s1] sm:$0x3f] (!%p138_p2)   ;;  %v827_v2 = vsel (!%p138_p2), %vm201_vm0, %v2754_v59, 0  ;;  %v2763_v27 = vld [vmem:[%s3176_s1 + $0x8] sm:$0x3f] (!%p138_p2)  }
   0xd   : > { %s3180_s13 = smov (!%p161_p3, %s2279_s13), 1  ;;  %v1027_v3 = vsel %vm201_vm0, %v2758_v60, 0  ;;  %v2767_v28 = vld [vmem:[%s3176_s1 + $0x18] sm:$0x3f]   ;;  %v2766_v38 = vld [vmem:[%s3176_s1 + $0x10] sm:$0x3f]  }
   0xe   : > { %s2728_s20 = smul.u32 72, %s3180_s13  ;;  %v2770_v39 = vld [vmem:[%s3176_s1] sm:$0x3f]   ;;  %v2769_v48 = vld [vmem:[%s3176_s1 + $0x8] sm:$0x3f]   ;;  %s2471_s8 = sshll.u32 %s3180_s13, 6 }
   0xf   : > { %v2773_v49 = vld [vmem:[%s3176_s1 + $0x18] sm:$0x3f]   ;;  %v2772_v59 = vld [vmem:[%s3176_s1 + $0x10] sm:$0x3f]   ;;  %v2776_v60 = vld [vmem:[%s3176_s1] sm:$0x3f]   ;;  %s3148_s11 = scalar_lea.vmem %s3178_s3, %s2471_s8 }
  0x10   : > { %s2866_s23 = scalar_lea.vmem %s3175_s0, %s2728_s20 }
  0x11   : > { %v173_v7 = vld [vmem:[%s2866_s23] sm:$0xf]  ;;  %v176_v8 = vld [vmem:[%s2866_s23 + $0x4] sm:$0x1]  ;;  %v2744_v10 = vld [vmem:[%s2866_s23 + $0x8] sm:$0x1f]  }
  0x12   : > { %v2289_v9 = vcombine.low %v173_v7, %v176_v8  ;;  %2545 = vmatmul.mubr.msk.bf16.vlgmr.msra.gmra.mrb[0].mxu1 %vm197_vm2, %v173_v7  ;;  %v364_v14 = vshrl.u32 %v2744_v10, 16  ;;  %v366_v15 = vshll.u32 %v2744_v10, 16  ;;  %v2308_v19 = vld [vmem:[%s2866_s23 + $0x8] sm:$0xf]  ;;  %v2309_v20 = vld [vmem:[%s2866_s23 + $0xc] sm:$0x1] }
  0x13   : > { %2555 = vmatpush3.bf16.msra.mxu1 %v379_v6  ;;  %2556 = vmatprep.mubr.msk.bf16.mxu1 %vm2812_vm1, %v2811_v0  ;;  %v2312_v25 = vcombine.low %v2308_v19, %v2309_v20  ;;  %v2750_v26 = vld [vmem:[%s2866_s23 + $0x10] sm:$0x1f]   ;;  %v2294_v31 = vld [vmem:[%s2866_s23 + $0x8] sm:$0xf]  ;;  %v2756_v47 = vld [vmem:[%s2866_s23 + $0x18] sm:$0x1f]  }
  0x14   : > { %v186_v12 = vshrl.u32 %v2289_v9, 16  ;;  %v188_v13 = vshll.u32 %v2289_v9, 16  ;;  %2566 = vmatprep.subr.bf16.mxu1 %v2811_v0  ;;  %v368_v18 = vrot.slane %v366_v15, 1  ;;  %v627_v30 = vshll.u32 %v2750_v26, 16  ;;  %v2331_v42 = vld [vmem:[%s2866_s23 + $0x10] sm:$0xf] }
  0x15   : > { %v453_v29 = vshll.u32 %v2312_v25, 16  ;;  %v451_v34 = vshrl.u32 %v2312_v25, 16  ;;  %v625_v36 = vshrl.u32 %v2750_v26, 16  ;;  %v2332_v43 = vld [vmem:[%s2866_s23 + $0x14] sm:$0x1]  ;;  %v882_v51 = vshll.u32 %v2756_v47, 16 }
  0x16   : > { %v190_v17 = vrot.slane %v188_v13, 1  ;;  %v369_v23 = vor.u32 %v368_v18, %v364_v14  ;;  %v629_v37 = vrot.slane %v627_v30, 1  ;;  %v2335_v46 = vcombine.low %v2331_v42, %v2332_v43  ;;  %v2317_v52 = vld [vmem:[%s2866_s23 + $0x10] sm:$0xf]  ;;  %v2354_v63 = vld [vmem:[%s2866_s23 + $0x18] sm:$0xf] }
  0x17   : > { %v455_v35 = vrot.slane %v453_v29, 1  ;;  %v880_v57 = vshrl.u32 %v2756_v47, 16  ;;  %v884_v58 = vrot.slane %v882_v51, 1  ;;  %v2355_v1 = vld [vmem:[%s2866_s23 + $0x1c] sm:$0x1] }
  0x18   : > { %v191_v21 = vor.u32 %v190_v17, %v186_v12  ;;  %v630_v41 = vor.u32 %v629_v37, %v625_v36  ;;  %v708_v50 = vshll.u32 %v2335_v46, 16  ;;  %v706_v55 = vshrl.u32 %v2335_v46, 16  ;;  %v2762_v5 = vld [vmem:[%s2866_s23 + $0x20] sm:$0x1f]   ;;  %v2757_v6 = vld [vmem:[%s3176_s1 + $0x8] sm:$0x3f]  }
  0x19   : > { %v456_v40 = vor.u32 %v455_v35, %v451_v34  ;;  %v885_v62 = vor.u32 %v884_v58, %v880_v57  ;;  %v2358_v4 = vcombine.low %v2354_v63, %v2355_v1  ;;  %v2761_v7 = vld [vmem:[%s3176_s1 + $0x18] sm:$0x3f]   ;;  %v1137_v9 = vshll.u32 %v2762_v5, 16  ;;  %v2760_v17 = vld [vmem:[%s3176_s1 + $0x10] sm:$0x3f]  }
  0x1a   : > { %2539 = vmatmul.mubr.msk.bf16.vlgmr.msra.gmra.mrb[0].mxu0 %vm197_vm2, %v191_v21  ;;  %2557 = vmatmul.mubr.msk.bf16.vlgmr.msra.gmra.mrb[4].mxu1 %vm197_vm2, %v369_v23  ;;  %v710_v56 = vrot.slane %v708_v50, 1  ;;  %v2340_v10 = vld [vmem:[%s2866_s23 + $0x18] sm:$0xf]  ;;  %v976_v11 = vsel %vm201_vm0, %v2757_v6, 0  ;;  %v1150_v12 = vsel %vm201_vm0, %v2761_v7, 0  ;;  %v1135_v15 = vshrl.u32 %v2762_v5, 16 }
  0x1b   : > { %2549 = vmatpush3.bf16.msra.mxu0 %v310_v22  ;;  %2550 = vmatprep.mubr.msk.bf16.mxu0 %vm2812_vm1, %v2811_v0  ;;  %v963_v8 = vshll.u32 %v2358_v4, 16  ;;  %v961_v13 = vshrl.u32 %v2358_v4, 16  ;;  %v1139_v16 = vrot.slane %v1137_v9, 1  ;;  %v2764_v18 = vld [vmem:[%s3176_s1] sm:$0x3f]   ;;  %v1082_v23 = vsel %vm201_vm0, %v2760_v17, 0 }
  0x1c   : > { %2560 = vmatprep.subr.bf16.mxu0 %v2811_v0  ;;  %2567 = vmatpush3.bf16.msra.mxu1 %v517_v24  ;;  %v711_v61 = vor.u32 %v710_v56, %v706_v55  ;;  %v2377_v21 = vld [vmem:[%s2866_s23 + $0x20] sm:$0xf]  ;;  %v2378_v22 = vld [vmem:[%s2866_s23 + $0x24] sm:$0x1]  ;;  %v1282_v24 = vsel %vm201_vm0, %v2764_v18, 0 }
  0x1d   : > { %2568 = vmatprep.mubr.msk.bf16.mxu1 %vm2812_vm1, %v2811_v0  ;;  %2578 = vmatprep.subr.bf16.mxu1 %v2811_v0  ;;  %v965_v14 = vrot.slane %v963_v8, 1  ;;  %v1140_v20 = vor.u32 %v1139_v16, %v1135_v15  ;;  %v2381_v25 = vcombine.low %v2377_v21, %v2378_v22  ;;  %v2768_v26 = vld [vmem:[%s2866_s23 + $0x28] sm:$0x1f]   ;;  %v2774_v47 = vld [vmem:[%s2866_s23 + $0x30] sm:$0x1f]  }
  0x1e   : > { %v1392_v30 = vshll.u32 %v2768_v26, 16  ;;  %v1390_v36 = vshrl.u32 %v2768_v26, 16  ;;  %v2401_v43 = vld [vmem:[%s2866_s23 + $0x2c] sm:$0x1]  ;;  %v1647_v51 = vshll.u32 %v2774_v47, 16  ;;  %v1645_v57 = vshrl.u32 %v2774_v47, 16 }
  0x1f   : > { %v1218_v29 = vshll.u32 %v2381_v25, 16  ;;  %v1216_v34 = vshrl.u32 %v2381_v25, 16  ;;  %v2424_v1 = vld [vmem:[%s2866_s23 + $0x34] sm:$0x1]  ;;  %v2780_v5 = vld [vmem:[%s2866_s23 + $0x38] sm:$0x1f]  }
  0x20   : > { %v1394_v37 = vrot.slane %v1392_v30, 1  ;;  %v1649_v58 = vrot.slane %v1647_v51, 1  ;;  %v2775_v6 = vld [vmem:[%s3176_s1 + $0x8] sm:$0x3f]   ;;  %v2779_v7 = vld [vmem:[%s3176_s1 + $0x18] sm:$0x3f]  }
  0x21   : > { %v1220_v35 = vrot.slane %v1218_v29, 1  ;;  %v1902_v9 = vshll.u32 %v2780_v5, 16  ;;  %v1900_v15 = vshrl.u32 %v2780_v5, 16  ;;  %v2778_v17 = vld [vmem:[%s3176_s1 + $0x10] sm:$0x3f]  }
  0x22   : > { %2551 = vmatmul.mubr.msk.bf16.vlgmr.msra.gmra.mrb[4].mxu0 %vm197_vm2, %v2294_v31  ;;  %2569 = vmatmul.mubr.msk.bf16.vlgmr.msra.gmra.mrb[8].mxu1 %vm197_vm2, %v2308_v19  ;;  %v966_v19 = vor.u32 %v965_v14, %v961_v13  ;;  %v2363_v31 = vld [vmem:[%s2866_s23 + $0x20] sm:$0xf]  ;;  %v2447_v22 = vld [vmem:[%s2866_s23 + $0x3c] sm:$0x1] }
  0x23   : > { %2561 = vmatpush3.bf16.msra.mxu0 %v466_v32  ;;  %2562 = vmatprep.mubr.msk.bf16.mxu0 %vm2812_vm1, %v2811_v0  ;;  %v1231_v32 = vsel %vm201_vm0, %v2763_v27, 0  ;;  %v1904_v16 = vrot.slane %v1902_v9, 1  ;;  %v2782_v18 = vld [vmem:[%s3176_s1] sm:$0x3f]   ;;  %v2781_v27 = vld [vmem:[%s3176_s1 + $0x8] sm:$0x3f]  }
  0x24   : > { %2572 = vmatprep.subr.bf16.mxu0 %v2811_v0  ;;  %2579 = vmatpush3.bf16.msra.mxu1 %v640_v33  ;;  %v1405_v33 = vsel %vm201_vm0, %v2767_v28, 0  ;;  %v2786_v26 = vld [vmem:[%s2866_s23 + $0x40] sm:$0x1f]   ;;  %v2785_v28 = vld [vmem:[%s3176_s1 + $0x18] sm:$0x3f]  }
  0x25   : > { %2580 = vmatprep.mubr.msk.bf16.mxu1 %vm2812_vm1, %v2811_v0  ;;  %2590 = vmatprep.subr.bf16.mxu1 %v2811_v0  ;;  %v2157_v30 = vshll.u32 %v2786_v26, 16 }
  0x2a   : > { %2563 = vmatmul.mubr.msk.bf16.vlgmr.msra.gmra.mrb[8].mxu0 %vm197_vm2, %v456_v40  ;;  %2581 = vmatmul.mubr.msk.bf16.vlgmr.msra.gmra.mrb[12].mxu1 %vm197_vm2, %v630_v41  ;;  %v1221_v40 = vor.u32 %v1220_v35, %v1216_v34  ;;  %v1395_v41 = vor.u32 %v1394_v37, %v1390_v36  ;;  %v2155_v36 = vshrl.u32 %v2786_v26, 16  ;;  %v2159_v37 = vrot.slane %v2157_v30, 1 }
  0x2b   : > { %2573 = vmatpush3.bf16.msra.mxu0 %v572_v44  ;;  %2574 = vmatprep.mubr.msk.bf16.mxu0 %vm2812_vm1, %v2811_v0  ;;  %v1337_v44 = vsel %vm201_vm0, %v2766_v38, 0  ;;  %v2784_v38 = vld [vmem:[%s3176_s1 + $0x10] sm:$0x3f]  }
  0x2c   : > { %2584 = vmatprep.subr.bf16.mxu0 %v2811_v0  ;;  %2591 = vmatpush3.bf16.msra.mxu1 %v772_v45  ;;  %v1537_v45 = vsel %vm201_vm0, %v2770_v39, 0 }
  0x2d   : > { %2592 = vmatprep.mubr.msk.bf16.mxu1 %vm2812_vm1, %v2811_v0  ;;  %2602 = vmatprep.subr.bf16.mxu1 %v2811_v0 }
  0x32   : > { %2575 = vmatmul.mubr.msk.bf16.vlgmr.msra.gmra.mrb[12].mxu0 %vm197_vm2, %v2317_v52  ;;  %2593 = vmatmul.mubr.msk.bf16.vlgmr.msra.gmra.mrb[16].mxu1 %vm197_vm2, %v2331_v42  ;;  %v2400_v42 = vld [vmem:[%s2866_s23 + $0x28] sm:$0xf] }
  0x33   : > { %2585 = vmatpush3.bf16.msra.mxu0 %v721_v53  ;;  %2586 = vmatprep.mubr.msk.bf16.mxu0 %vm2812_vm1, %v2811_v0  ;;  %v2404_v46 = vcombine.low %v2400_v42, %v2401_v43  ;;  %v2386_v52 = vld [vmem:[%s2866_s23 + $0x28] sm:$0xf]  ;;  %v1486_v53 = vsel %vm201_vm0, %v2769_v48, 0 }
  0x34   : > { %2596 = vmatprep.subr.bf16.mxu0 %v2811_v0  ;;  %2603 = vmatpush3.bf16.msra.mxu1 %v895_v54  ;;  %v1660_v54 = vsel %vm201_vm0, %v2773_v49, 0 }
  0x35   : > { %2604 = vmatprep.mubr.msk.bf16.mxu1 %vm2812_vm1, %v2811_v0  ;;  %2614 = vmatprep.subr.bf16.mxu1 %v2811_v0  ;;  %v1473_v50 = vshll.u32 %v2404_v46, 16  ;;  %v1471_v55 = vshrl.u32 %v2404_v46, 16 }
  0x37   : > { %v1475_v56 = vrot.slane %v1473_v50, 1 }
  0x3a   : > { %2587 = vmatmul.mubr.msk.bf16.vlgmr.msra.gmra.mrb[16].mxu0 %vm197_vm2, %v711_v61  ;;  %2605 = vmatmul.mubr.msk.bf16.vlgmr.msra.gmra.mrb[20].mxu1 %vm197_vm2, %v885_v62  ;;  %v1476_v61 = vor.u32 %v1475_v56, %v1471_v55  ;;  %v1650_v62 = vor.u32 %v1649_v58, %v1645_v57 }
  0x3b   : > { %2597 = vmatpush3.bf16.msra.mxu0 %v827_v2  ;;  %2598 = vmatprep.mubr.msk.bf16.mxu0 %vm2812_vm1, %v2811_v0  ;;  %v1592_v2 = vsel %vm201_vm0, %v2772_v59, 0 }
  0x3c   : > { %2608 = vmatprep.subr.bf16.mxu0 %v2811_v0  ;;  %2615 = vmatpush3.bf16.msra.mxu1 %v1027_v3  ;;  %v1792_v3 = vsel %vm201_vm0, %v2776_v60, 0  ;;  %v3140_v60 = vld [vmem:[%s3177_s2] ss:$0 sm:$0xff] }
  0x3d   : > { %2616 = vmatprep.mubr.msk.bf16.mxu1 %vm2812_vm1, %v2811_v0  ;;  %2626 = vmatprep.subr.bf16.mxu1 %v2811_v0 }
  0x42   : > { %2599 = vmatmul.mubr.msk.bf16.vlgmr.msra.gmra.mrb[20].mxu0 %vm197_vm2, %v2340_v10  ;;  %2617 = vmatmul.mubr.msk.bf16.vlgmr.msra.gmra.mrb[24].mxu1 %vm197_vm2, %v2354_v63  ;;  %v2423_v63 = vld [vmem:[%s2866_s23 + $0x30] sm:$0xf] }
  0x43   : > { %2609 = vmatpush3.bf16.msra.mxu0 %v976_v11  ;;  %2610 = vmatprep.mubr.msk.bf16.mxu0 %vm2812_vm1, %v2811_v0  ;;  %v2427_v4 = vcombine.low %v2423_v63, %v2424_v1  ;;  %v2409_v10 = vld [vmem:[%s2866_s23 + $0x30] sm:$0xf]  ;;  %v1741_v11 = vsel %vm201_vm0, %v2775_v6, 0 }
  0x44   : > { %2620 = vmatprep.subr.bf16.mxu0 %v2811_v0  ;;  %2627 = vmatpush3.bf16.msra.mxu1 %v1150_v12  ;;  %v1915_v12 = vsel %vm201_vm0, %v2779_v7, 0 }
  0x45   : > { %2628 = vmatprep.mubr.msk.bf16.mxu1 %vm2812_vm1, %v2811_v0  ;;  %2638 = vmatprep.subr.bf16.mxu1 %v2811_v0  ;;  %v1728_v8 = vshll.u32 %v2427_v4, 16  ;;  %v1726_v13 = vshrl.u32 %v2427_v4, 16 }
  0x47   : > { %v1730_v14 = vrot.slane %v1728_v8, 1 }
  0x4a   : > { %2611 = vmatmul.mubr.msk.bf16.vlgmr.msra.gmra.mrb[24].mxu0 %vm197_vm2, %v966_v19  ;;  %2629 = vmatmul.mubr.msk.bf16.vlgmr.msra.gmra.mrb[28].mxu1 %vm197_vm2, %v1140_v20  ;;  %v1731_v19 = vor.u32 %v1730_v14, %v1726_v13  ;;  %v1905_v20 = vor.u32 %v1904_v16, %v1900_v15 }
  0x4b   : > { %2621 = vmatpush3.bf16.msra.mxu0 %v1082_v23  ;;  %2622 = vmatprep.mubr.msk.bf16.mxu0 %vm2812_vm1, %v2811_v0  ;;  %v1847_v23 = vsel %vm201_vm0, %v2778_v17, 0 }
  0x4c   : > { %2632 = vmatprep.subr.bf16.mxu0 %v2811_v0  ;;  %2639 = vmatpush3.bf16.msra.mxu1 %v1282_v24  ;;  %v2047_v24 = vsel %vm201_vm0, %v2782_v18, 0 }
  0x4d   : > { %2640 = vmatprep.mubr.msk.bf16.mxu1 %vm2812_vm1, %v2811_v0  ;;  %2650 = vmatprep.subr.bf16.mxu1 %v2811_v0 }
  0x52   : > { %2623 = vmatmul.mubr.msk.bf16.vlgmr.msra.gmra.mrb[28].mxu0 %vm197_vm2, %v2363_v31  ;;  %2641 = vmatmul.mubr.msk.bf16.vlgmr.msra.gmra.mrb[32].mxu1 %vm197_vm2, %v2377_v21  ;;  %v2446_v21 = vld [vmem:[%s2866_s23 + $0x38] sm:$0xf] }
  0x53   : > { %2633 = vmatpush3.bf16.msra.mxu0 %v1231_v32  ;;  %2634 = vmatprep.mubr.msk.bf16.mxu0 %vm2812_vm1, %v2811_v0  ;;  %v2450_v25 = vcombine.low %v2446_v21, %v2447_v22  ;;  %v2432_v31 = vld [vmem:[%s2866_s23 + $0x38] sm:$0xf]  ;;  %v1996_v32 = vsel %vm201_vm0, %v2781_v27, 0 }
  0x54   : > { %2644 = vmatprep.subr.bf16.mxu0 %v2811_v0  ;;  %2651 = vmatpush3.bf16.msra.mxu1 %v1405_v33  ;;  %v2170_v33 = vsel %vm201_vm0, %v2785_v28, 0 }
  0x55   : > { %2652 = vmatprep.mubr.msk.bf16.mxu1 %vm2812_vm1, %v2811_v0  ;;  %2662 = vmatprep.subr.bf16.mxu1 %v2811_v0  ;;  %v1983_v29 = vshll.u32 %v2450_v25, 16  ;;  %v1981_v34 = vshrl.u32 %v2450_v25, 16 }
  0x57   : > { %v1985_v35 = vrot.slane %v1983_v29, 1 }
  0x59   : > { %v1986_v39 = vor.u32 %v1985_v35, %v1981_v34 }
  0x5a   : > { %2635 = vmatmul.mubr.msk.bf16.vlgmr.msra.gmra.mrb[32].mxu0 %vm197_vm2, %v1221_v40  ;;  %2653 = vmatmul.mubr.msk.bf16.vlgmr.msra.gmra.mrb[36].mxu1 %vm197_vm2, %v1395_v41  ;;  %v2160_v40 = vor.u32 %v2159_v37, %v2155_v36  ;;  %v2102_v41 = vsel %vm201_vm0, %v2784_v38, 0 }
  0x5b   : > { %2645 = vmatpush3.bf16.msra.mxu0 %v1337_v44  ;;  %2646 = vmatprep.mubr.msk.bf16.mxu0 %vm2812_vm1, %v2811_v0 }
  0x5c   : > { %2656 = vmatprep.subr.bf16.mxu0 %v2811_v0  ;;  %2663 = vmatpush3.bf16.msra.mxu1 %v1537_v45 }
  0x5d   : > { %2664 = vmatprep.mubr.msk.bf16.mxu1 %vm2812_vm1, %v2811_v0  ;;  %2674 = vmatprep.subr.bf16.mxu1 %v2811_v0 }
  0x62   : > { %2647 = vmatmul.mubr.msk.bf16.vlgmr.msra.gmra.mrb[36].mxu0 %vm197_vm2, %v2386_v52  ;;  %2665 = vmatmul.mubr.msk.bf16.vlgmr.msra.gmra.mrb[40].mxu1 %vm197_vm2, %v2400_v42  ;;  %v2455_v42 = vld [vmem:[%s2866_s23 + $0x40] sm:$0xf] }
  0x63   : > { %2657 = vmatpush3.bf16.msra.mxu0 %v1486_v53  ;;  %2658 = vmatprep.mubr.msk.bf16.mxu0 %vm2812_vm1, %v2811_v0 }
  0x64   : > { %2668 = vmatprep.subr.bf16.mxu0 %v2811_v0  ;;  %2675 = vmatpush3.bf16.msra.mxu1 %v1660_v54 }
  0x65   : > { %2676 = vmatprep.mubr.msk.bf16.mxu1 %vm2812_vm1, %v2811_v0  ;;  %2686 = vmatprep.subr.bf16.mxu1 %v2811_v0 }
  0x6a   : > { %2659 = vmatmul.mubr.msk.bf16.vlgmr.msra.gmra.mrb[40].mxu0 %vm197_vm2, %v1476_v61  ;;  %2677 = vmatmul.mubr.msk.bf16.vlgmr.msra.gmra.mrb[44].mxu1 %vm197_vm2, %v1650_v62 }
  0x6b   : > { %2669 = vmatpush3.bf16.msra.mxu0 %v1592_v2  ;;  %2670 = vmatprep.mubr.msk.bf16.mxu0 %vm2812_vm1, %v2811_v0 }
  0x6c   : > { %2680 = vmatprep.subr.bf16.mxu0 %v2811_v0  ;;  %2687 = vmatpush3.bf16.msra.mxu1 %v1792_v3 }
  0x6d   : > { %2688 = vmatprep.mubr.msk.bf16.mxu1 %vm2812_vm1, %v2811_v0  ;;  %2698 = vmatprep.subr.bf16.mxu1 %v2811_v0 }
  0x72   : > { %2671 = vmatmul.mubr.msk.bf16.vlgmr.msra.gmra.mrb[44].mxu0 %vm197_vm2, %v2409_v10  ;;  %2689 = vmatmul.mubr.msk.bf16.vlgmr.msra.gmra.mrb[48].mxu1 %vm197_vm2, %v2423_v63 }
  0x73   : > { %2681 = vmatpush3.bf16.msra.mxu0 %v1741_v11  ;;  %2682 = vmatprep.mubr.msk.bf16.mxu0 %vm2812_vm1, %v2811_v0 }
  0x74   : > { %2692 = vmatprep.subr.bf16.mxu0 %v2811_v0  ;;  %2699 = vmatpush3.bf16.msra.mxu1 %v1915_v12 }
  0x75   : > { %2700 = vmatprep.mubr.msk.bf16.mxu1 %vm2812_vm1, %v2811_v0  ;;  %2710 = vmatprep.subr.bf16.mxu1 %v2811_v0 }
  0x7a   : > { %2683 = vmatmul.mubr.msk.bf16.vlgmr.msra.gmra.mrb[48].mxu0 %vm197_vm2, %v1731_v19  ;;  %2701 = vmatmul.mubr.msk.bf16.vlgmr.msra.gmra.mrb[52].mxu1 %vm197_vm2, %v1905_v20 }
  0x7b   : > { %2693 = vmatpush3.bf16.msra.mxu0 %v1847_v23  ;;  %2694 = vmatprep.mubr.msk.bf16.mxu0 %vm2812_vm1, %v2811_v0 }
  0x7c   : > { %2704 = vmatprep.subr.bf16.mxu0 %v2811_v0  ;;  %2711 = vmatpush3.bf16.msra.mxu1 %v2047_v24 }
  0x7d   : > { %2712 = vmatprep.mubr.msk.bf16.mxu1 %vm2812_vm1, %v2811_v0  ;;  %2722 = vmatprep.subr.bf16.mxu1 %v2811_v0 }
  0x82   : > { %2695 = vmatmul.mubr.msk.bf16.vlgmr.msra.gmra.mrb[52].mxu0 %vm197_vm2, %v2432_v31  ;;  %2713 = vmatmul.mubr.msk.bf16.vlgmr.msra.gmra.mrb[56].mxu1 %vm197_vm2, %v2446_v21 }
  0x83   : > { %2705 = vmatpush3.bf16.msra.mxu0 %v1996_v32  ;;  %2706 = vmatprep.mubr.msk.bf16.mxu0 %vm2812_vm1, %v2811_v0 }
  0x84   : > { %2716 = vmatprep.subr.bf16.mxu0 %v2811_v0  ;;  %2723 = vmatpush3.bf16.msra.mxu1 %v2170_v33 }
  0x85   : > { %2724 = vmatprep.mubr.msk.bf16.mxu1 %vm2812_vm1, %v2811_v0 }
  0x8a   : > { %2707 = vmatmul.mubr.msk.bf16.vlgmr.msra.gmra.mrb[56].mxu0 %vm197_vm2, %v1986_v39  ;;  %2725 = vmatmul.mubr.msk.bf16.vlgmr.msra.gmra.mrb[60].mxu1 %vm197_vm2, %v2160_v40 }
  0x8b   : > { %2717 = vmatpush3.bf16.msra.mxu0 %v2102_v41  ;;  %2718 = vmatprep.mubr.msk.bf16.mxu0 %vm2812_vm1, %v2811_v0 }
  0x92   : > { %2719 = vmatmul.mubr.msk.bf16.vlgmr.msra.gmra.mrb[60].mxu0 %vm197_vm2, %v2455_v42 }
  0xe5   : > { %v290_v43 = vpop.f32.mrb[0].mxu1 }
  0xe6   : > { %v2546_v44 = vpop.f32.mrb[1].mxu1 }
  0xe7   : > { %v293_v45 = vpop.f32.mrb[2].mxu1 }
  0xe8   : > { %v2547_v46 = vpop.f32.mrb[3].mxu1 }
  0xed   : > { %v239_v47 = vpop.f32.mrb[0].mxu0  ;;  %v415_v48 = vpop.f32.mrb[4].mxu1 }
  0xee   : > { %v291_v49 = vadd.f32 %v290_v43, %v239_v47  ;;  %v2540_v50 = vpop.f32.mrb[1].mxu0  ;;  %v2558_v51 = vpop.f32.mrb[5].mxu1 }
  0xef   : > { %v242_v52 = vpop.f32.mrb[2].mxu0  ;;  %v418_v53 = vpop.f32.mrb[6].mxu1 }
  0xf0   : > { %v2541_v54 = vpop.f32.mrb[3].mxu0  ;;  %v2559_v55 = vpop.f32.mrb[7].mxu1 }
  0xf5   : > { %v346_v56 = vpop.f32.mrb[4].mxu0  ;;  %v553_v57 = vpop.f32.mrb[8].mxu1 }
  0xf6   : > { %v352_v58 = vadd.f32 %v346_v56, %v291_v49  ;;  %v2552_v0 = vpop.f32.mrb[5].mxu0  ;;  %v2570_v59 = vpop.f32.mrb[9].mxu1 }
  0xf7   : > { %v349_v61 = vpop.f32.mrb[6].mxu0  ;;  %v556_v62 = vpop.f32.mrb[10].mxu1 }
  0xf8   : > { %v421_v63 = vadd.f32 %v415_v48, %v352_v58  ;;  %v2553_v1 = vpop.f32.mrb[7].mxu0  ;;  %v2571_v2 = vpop.f32.mrb[11].mxu1 }
  0xfa   : > { %v428_v3 = vadd.f32 %v3140_v60, %v421_v63 }
  0xfc   : > { %v429_v4 = vmin.f32 %v428_v3, 0.0  ;;  %vm434_vm3 = vcmp.gt.f32.partialorder %v428_v3, 0.0 }
  0xfd   : > { %v502_v5 = vpop.f32.mrb[8].mxu0  ;;  %v676_v6 = vpop.f32.mrb[12].mxu1 }
  0xfe   : > { %v430_v7 = vmul.f32 1.442695, %v429_v4  ;;  %v554_v8 = vadd.f32 %v553_v57, %v502_v5  ;;  %v2564_v9 = vpop.f32.mrb[9].mxu0  ;;  %v2582_v10 = vpop.f32.mrb[13].mxu1 }
  0xff   : > { %v505_v11 = vpop.f32.mrb[10].mxu0  ;;  %v679_v12 = vpop.f32.mrb[14].mxu1 }
 0x100   : > { %2787 = vpow2.f32 %v430_v7  ;;  %v2565_v13 = vpop.f32.mrb[11].mxu0  ;;  %v2583_v14 = vpop.f32.mrb[15].mxu1 }
 0x105   : > { %v608_v15 = vpop.f32.mrb[12].mxu0  ;;  %v808_v16 = vpop.f32.mrb[16].mxu1 }
 0x106   : > { %v614_v17 = vadd.f32 %v608_v15, %v554_v8  ;;  %v2576_v18 = vpop.f32.mrb[13].mxu0  ;;  %v2594_v19 = vpop.f32.mrb[17].mxu1 }
 0x107   : > { %v611_v20 = vpop.f32.mrb[14].mxu0  ;;  %v811_v21 = vpop.f32.mrb[18].mxu1 }
 0x108   : > { %v682_v22 = vadd.f32 %v676_v6, %v614_v17  ;;  %v2577_v23 = vpop.f32.mrb[15].mxu0  ;;  %v2595_v24 = vpop.f32.mrb[19].mxu1 }
 0x10a   : > { %v2788_v25 = vpop.eup %2787  ;;  %v683_v26 = vadd.f32 %v3140_v60, %v682_v22 }
 0x10b   : > { %v2307_v27 = vadd.f32 -1.0, %v2788_v25 }
 0x10c   : > { %v684_v28 = vmin.f32 %v683_v26, 0.0  ;;  %vm689_vm5 = vcmp.gt.f32.partialorder %v683_v26, 0.0 }
 0x10d   : > { %v433_v29 = vmul.f32 1.6732632, %v2307_v27  ;;  %v757_v30 = vpop.f32.mrb[16].mxu0  ;;  %v931_v31 = vpop.f32.mrb[20].mxu1 }
 0x10e   : > { %v685_v32 = vmul.f32 1.442695, %v684_v28  ;;  %v809_v33 = vadd.f32 %v808_v16, %v757_v30  ;;  %v2588_v34 = vpop.f32.mrb[17].mxu0  ;;  %v2606_v35 = vpop.f32.mrb[21].mxu1 }
 0x10f   : > { %v435_v36 = vsel %vm434_vm3, %v428_v3, %v433_v29  ;;  %v760_v37 = vpop.f32.mrb[18].mxu0  ;;  %v934_v38 = vpop.f32.mrb[22].mxu1 }
 0x110   : > { %v436_v39 = vmul.f32 1.050701, %v435_v36  ;;  %2789 = vpow2.f32 %v685_v32  ;;  %v2589_v40 = vpop.f32.mrb[19].mxu0  ;;  %v2607_v41 = vpop.f32.mrb[23].mxu1 }
 0x112   : > { %438 = vst.msk [vmem:[%s3148_s11] sm:$0xff] %vm437_vm4, %v436_v39 }
 0x115   : > { %v863_v42 = vpop.f32.mrb[20].mxu0  ;;  %v1063_v43 = vpop.f32.mrb[24].mxu1 }
 0x116   : > { %v869_v44 = vadd.f32 %v863_v42, %v809_v33  ;;  %v2600_v45 = vpop.f32.mrb[21].mxu0  ;;  %v2618_v46 = vpop.f32.mrb[25].mxu1 }
 0x117   : > { %v866_v47 = vpop.f32.mrb[22].mxu0  ;;  %v1066_v48 = vpop.f32.mrb[26].mxu1 }
 0x118   : > { %v937_v49 = vadd.f32 %v931_v31, %v869_v44  ;;  %v2601_v50 = vpop.f32.mrb[23].mxu0  ;;  %v2619_v51 = vpop.f32.mrb[27].mxu1 }
 0x11a   : > { %v2790_v52 = vpop.eup %2789  ;;  %v938_v53 = vadd.f32 %v3140_v60, %v937_v49 }
 0x11b   : > { %v2329_v54 = vadd.f32 -1.0, %v2790_v52 }
 0x11c   : > { %v939_v55 = vmin.f32 %v938_v53, 0.0  ;;  %vm944_vm6 = vcmp.gt.f32.partialorder %v938_v53, 0.0 }
 0x11d   : > { %v688_v56 = vmul.f32 1.6732632, %v2329_v54  ;;  %v1012_v57 = vpop.f32.mrb[24].mxu0  ;;  %v1186_v58 = vpop.f32.mrb[28].mxu1 }
 0x11e   : > { %v940_v0 = vmul.f32 1.442695, %v939_v55  ;;  %v1064_v59 = vadd.f32 %v1063_v43, %v1012_v57  ;;  %v2612_v61 = vpop.f32.mrb[25].mxu0  ;;  %v2630_v62 = vpop.f32.mrb[29].mxu1 }
 0x11f   : > { %v690_v63 = vsel %vm689_vm5, %v683_v26, %v688_v56  ;;  %v1015_v1 = vpop.f32.mrb[26].mxu0  ;;  %v1189_v2 = vpop.f32.mrb[30].mxu1 }
 0x120   : > { %v691_v3 = vmul.f32 1.050701, %v690_v63  ;;  %2791 = vpow2.f32 %v940_v0  ;;  %v2613_v4 = vpop.f32.mrb[27].mxu0  ;;  %v2631_v5 = vpop.f32.mrb[31].mxu1 }
 0x122   : > { %2330 = vst.msk [vmem:[%s3148_s11 + $0x8] sm:$0xff] %vm437_vm4, %v691_v3 }
 0x125   : > { %v1118_v6 = vpop.f32.mrb[28].mxu0  ;;  %v1318_v7 = vpop.f32.mrb[32].mxu1 }
 0x126   : > { %v1124_v8 = vadd.f32 %v1118_v6, %v1064_v59  ;;  %v2624_v9 = vpop.f32.mrb[29].mxu0  ;;  %v2642_v10 = vpop.f32.mrb[33].mxu1 }
 0x127   : > { %v1121_v11 = vpop.f32.mrb[30].mxu0  ;;  %v1321_v12 = vpop.f32.mrb[34].mxu1 }
 0x128   : > { %v1192_v13 = vadd.f32 %v1186_v58, %v1124_v8  ;;  %v2625_v14 = vpop.f32.mrb[31].mxu0  ;;  %v2643_v15 = vpop.f32.mrb[35].mxu1 }
 0x12a   : > { %v2792_v16 = vpop.eup %2791  ;;  %v1193_v17 = vadd.f32 %v3140_v60, %v1192_v13 }
 0x12b   : > { %v2352_v18 = vadd.f32 -1.0, %v2792_v16 }
 0x12c   : > { %v1194_v19 = vmin.f32 %v1193_v17, 0.0  ;;  %vm1199_vm7 = vcmp.gt.f32.partialorder %v1193_v17, 0.0 }
 0x12d   : > { %v943_v20 = vmul.f32 1.6732632, %v2352_v18  ;;  %v1267_v21 = vpop.f32.mrb[32].mxu0  ;;  %v1441_v22 = vpop.f32.mrb[36].mxu1 }
 0x12e   : > { %v1195_v23 = vmul.f32 1.442695, %v1194_v19  ;;  %v1319_v24 = vadd.f32 %v1318_v7, %v1267_v21  ;;  %v2636_v25 = vpop.f32.mrb[33].mxu0  ;;  %v2654_v26 = vpop.f32.mrb[37].mxu1 }
 0x12f   : > { %v945_v27 = vsel %vm944_vm6, %v938_v53, %v943_v20  ;;  %v1270_v28 = vpop.f32.mrb[34].mxu0  ;;  %v1444_v29 = vpop.f32.mrb[38].mxu1 }
 0x130   : > { %v946_v30 = vmul.f32 1.050701, %v945_v27  ;;  %2793 = vpow2.f32 %v1195_v23  ;;  %v2637_v31 = vpop.f32.mrb[35].mxu0  ;;  %v2655_v32 = vpop.f32.mrb[39].mxu1 }
 0x132   : > { %2353 = vst.msk [vmem:[%s3148_s11 + $0x10] sm:$0xff] %vm437_vm4, %v946_v30 }
 0x135   : > { %v1373_v33 = vpop.f32.mrb[36].mxu0  ;;  %v1573_v34 = vpop.f32.mrb[40].mxu1 }
 0x136   : > { %v1379_v35 = vadd.f32 %v1373_v33, %v1319_v24  ;;  %v2648_v36 = vpop.f32.mrb[37].mxu0  ;;  %v2666_v37 = vpop.f32.mrb[41].mxu1 }
 0x137   : > { %v1376_v38 = vpop.f32.mrb[38].mxu0  ;;  %v1576_v39 = vpop.f32.mrb[42].mxu1 }
 0x138   : > { %v1447_v40 = vadd.f32 %v1441_v22, %v1379_v35  ;;  %v2649_v41 = vpop.f32.mrb[39].mxu0  ;;  %v2667_v42 = vpop.f32.mrb[43].mxu1 }
 0x13a   : > { %v2794_v43 = vpop.eup %2793  ;;  %v1448_v44 = vadd.f32 %v3140_v60, %v1447_v40 }
 0x13b   : > { %v2375_v45 = vadd.f32 -1.0, %v2794_v43 }
 0x13c   : > { %v1449_v46 = vmin.f32 %v1448_v44, 0.0  ;;  %vm1454_vm8 = vcmp.gt.f32.partialorder %v1448_v44, 0.0 }
 0x13d   : > { %v1198_v47 = vmul.f32 1.6732632, %v2375_v45  ;;  %v1522_v48 = vpop.f32.mrb[40].mxu0  ;;  %v1696_v49 = vpop.f32.mrb[44].mxu1 }
 0x13e   : > { %v1450_v50 = vmul.f32 1.442695, %v1449_v46  ;;  %v1574_v51 = vadd.f32 %v1573_v34, %v1522_v48  ;;  %v2660_v52 = vpop.f32.mrb[41].mxu0  ;;  %v2678_v53 = vpop.f32.mrb[45].mxu1 }
 0x13f   : > { %v1200_v54 = vsel %vm1199_vm7, %v1193_v17, %v1198_v47  ;;  %v1525_v55 = vpop.f32.mrb[42].mxu0  ;;  %v1699_v56 = vpop.f32.mrb[46].mxu1 }
 0x140   : > { %v1201_v57 = vmul.f32 1.050701, %v1200_v54  ;;  %2795 = vpow2.f32 %v1450_v50  ;;  %v2661_v58 = vpop.f32.mrb[43].mxu0  ;;  %v2679_v0 = vpop.f32.mrb[47].mxu1 }
 0x142   : > { %2376 = vst.msk [vmem:[%s3148_s11 + $0x18] sm:$0xff] %vm437_vm4, %v1201_v57 }
 0x145   : > { %v1628_v59 = vpop.f32.mrb[44].mxu0  ;;  %v1828_v61 = vpop.f32.mrb[48].mxu1 }
 0x146   : > { %v1634_v62 = vadd.f32 %v1628_v59, %v1574_v51  ;;  %v2672_v63 = vpop.f32.mrb[45].mxu0  ;;  %v2690_v1 = vpop.f32.mrb[49].mxu1 }
 0x147   : > { %v1631_v2 = vpop.f32.mrb[46].mxu0  ;;  %v1831_v3 = vpop.f32.mrb[50].mxu1 }
 0x148   : > { %v1702_v4 = vadd.f32 %v1696_v49, %v1634_v62  ;;  %v2673_v5 = vpop.f32.mrb[47].mxu0  ;;  %v2691_v6 = vpop.f32.mrb[51].mxu1 }
 0x14a   : > { %v2796_v7 = vpop.eup %2795  ;;  %v1703_v8 = vadd.f32 %v3140_v60, %v1702_v4 }
 0x14b   : > { %v2398_v9 = vadd.f32 -1.0, %v2796_v7 }
 0x14c   : > { %v1704_v10 = vmin.f32 %v1703_v8, 0.0  ;;  %vm1709_vm9 = vcmp.gt.f32.partialorder %v1703_v8, 0.0 }
 0x14d   : > { %v1453_v11 = vmul.f32 1.6732632, %v2398_v9  ;;  %v1777_v12 = vpop.f32.mrb[48].mxu0  ;;  %v1951_v13 = vpop.f32.mrb[52].mxu1 }
 0x14e   : > { %v1705_v14 = vmul.f32 1.442695, %v1704_v10  ;;  %v1829_v15 = vadd.f32 %v1828_v61, %v1777_v12  ;;  %v2684_v16 = vpop.f32.mrb[49].mxu0  ;;  %v2702_v17 = vpop.f32.mrb[53].mxu1 }
 0x14f   : > { %v1455_v18 = vsel %vm1454_vm8, %v1448_v44, %v1453_v11  ;;  %v1780_v19 = vpop.f32.mrb[50].mxu0  ;;  %v1954_v20 = vpop.f32.mrb[54].mxu1 }
 0x150   : > { %v1456_v21 = vmul.f32 1.050701, %v1455_v18  ;;  %2797 = vpow2.f32 %v1705_v14  ;;  %v2685_v22 = vpop.f32.mrb[51].mxu0  ;;  %v2703_v23 = vpop.f32.mrb[55].mxu1 }
 0x152   : > { %2399 = vst.msk [vmem:[%s3148_s11 + $0x20] sm:$0xff] %vm437_vm4, %v1456_v21 }
 0x155   : > { %v1883_v24 = vpop.f32.mrb[52].mxu0  ;;  %v2083_v25 = vpop.f32.mrb[56].mxu1 }
 0x156   : > { %v1889_v26 = vadd.f32 %v1883_v24, %v1829_v15  ;;  %v2696_v27 = vpop.f32.mrb[53].mxu0  ;;  %v2714_v28 = vpop.f32.mrb[57].mxu1 }
 0x157   : > { %v1886_v29 = vpop.f32.mrb[54].mxu0  ;;  %v2086_v30 = vpop.f32.mrb[58].mxu1 }
 0x158   : > { %v1957_v31 = vadd.f32 %v1951_v13, %v1889_v26  ;;  %v2697_v32 = vpop.f32.mrb[55].mxu0  ;;  %v2715_v33 = vpop.f32.mrb[59].mxu1 }
 0x15a   : > { %v2798_v34 = vpop.eup %2797  ;;  %v1958_v35 = vadd.f32 %v3140_v60, %v1957_v31 }
 0x15b   : > { %v2421_v36 = vadd.f32 -1.0, %v2798_v34 }
 0x15c   : > { %v1959_v37 = vmin.f32 %v1958_v35, 0.0  ;;  %vm1964_vm10 = vcmp.gt.f32.partialorder %v1958_v35, 0.0 }
 0x15d   : > { %v1708_v38 = vmul.f32 1.6732632, %v2421_v36  ;;  %v2032_v39 = vpop.f32.mrb[56].mxu0  ;;  %v2206_v40 = vpop.f32.mrb[60].mxu1 }
 0x15e   : > { %v1960_v41 = vmul.f32 1.442695, %v1959_v37  ;;  %v2084_v42 = vadd.f32 %v2083_v25, %v2032_v39  ;;  %v2708_v43 = vpop.f32.mrb[57].mxu0  ;;  %v2726_v44 = vpop.f32.mrb[61].mxu1 }
 0x15f   : > { %v1710_v45 = vsel %vm1709_vm9, %v1703_v8, %v1708_v38  ;;  %v2035_v46 = vpop.f32.mrb[58].mxu0  ;;  %v2209_v47 = vpop.f32.mrb[62].mxu1 }
 0x160   : > { %v1711_v48 = vmul.f32 1.050701, %v1710_v45  ;;  %2799 = vpow2.f32 %v1960_v41  ;;  %v2709_v49 = vpop.f32.mrb[59].mxu0  ;;  %v2727_v50 = vpop.f32.mrb[63].mxu1 }
 0x162   : > { %2422 = vst.msk [vmem:[%s3148_s11 + $0x28] sm:$0xff] %vm437_vm4, %v1711_v48 }
 0x165   : > { %v2138_v51 = vpop.f32.mrb[60].mxu0 }
 0x166   : > { %v2144_v52 = vadd.f32 %v2138_v51, %v2084_v42  ;;  %v2720_v53 = vpop.f32.mrb[61].mxu0 }
 0x167   : > { %v2141_v54 = vpop.f32.mrb[62].mxu0 }
 0x168   : > { %v2212_v55 = vadd.f32 %v2206_v40, %v2144_v52  ;;  %v2721_v56 = vpop.f32.mrb[63].mxu0 }
 0x16a   : > { %v2800_v57 = vpop.eup %2799  ;;  %v2213_v58 = vadd.f32 %v3140_v60, %v2212_v55 }
 0x16b   : > { %v2444_v0 = vadd.f32 -1.0, %v2800_v57 }
 0x16c   : > { %v2214_v59 = vmin.f32 %v2213_v58, 0.0  ;;  %vm2219_vm11 = vcmp.gt.f32.partialorder %v2213_v58, 0.0 }
 0x16d   : > { %v1963_v61 = vmul.f32 1.6732632, %v2444_v0 }
 0x16e   : > { %v2215_v62 = vmul.f32 1.442695, %v2214_v59 }
 0x16f   : > { %v1965_v63 = vsel %vm1964_vm10, %v1958_v35, %v1963_v61 }
 0x170   : > { %v1966_v1 = vmul.f32 1.050701, %v1965_v63  ;;  %2801 = vpow2.f32 %v2215_v62 }
 0x172   : > { %2445 = vst.msk [vmem:[%s3148_s11 + $0x30] sm:$0xff] %vm437_vm4, %v1966_v1 }
 0x17a   : > { %v2802_v2 = vpop.eup %2801 }
 0x17b   : > { %v2467_v3 = vadd.f32 -1.0, %v2802_v2 }
 0x17d   : > { %v2218_v4 = vmul.f32 1.6732632, %v2467_v3 }
 0x17f   : > { %v2220_v5 = vsel %vm2219_vm11, %v2213_v58, %v2218_v4 }
 0x180   : > { %v2221_v6 = vmul.f32 1.050701, %v2220_v5 }
 0x182   : > { %2468 = vst.msk [vmem:[%s3148_s11 + $0x38] sm:$0xff] %vm437_vm4, %v2221_v6 }
 0x183 PF: > { %s13_s12 = sadd.s32 1, %s2809_s12  }
 0x184   : > { %p10_p4 = scmp.ge.s32.totalorder %s13_s12, 4  }
 0x186   :  { %12 = sbr.rel (!%p10_p4) target bundleno = 1 (0x1), region = 80 }

// kernel: backbone_forward.4
= control target key start
LH: loop header
LB: loop body
LE: loop exit
PB: predicated region body
PF: predicated region fallthrough
CT: control target
= control target key end

     0   :  { %s2200_s12 = smov 0   ;;  %s2562_s0 = inlined_call_operand.vmem [shape: bf16[2,5,5,64], index: 0, kind: input, shape index: {}]   ;;  %s2563_s1 = inlined_call_operand.vmem [shape: bf16[4,64,32], index: 1, kind: input, shape index: {}]   ;;  %s2564_s2 = inlined_call_operand.vmem [shape: f32[1,32], index: 2, kind: input, shape index: {}]   ;;  %s2565_s3 = inlined_call_operand.vmem [shape: f32[2,4,4,32], index: 3, kind: output, shape index: {}]  }
   0x1 LB: > { %s1590_s13 = sadd.s32 4294967295, %s2176_s12   ;;  %p1594_p0 = scmp.ge.s32.totalorder %s2176_s12, 1  ;;  %s2176_s12 = sphi %s2200_s12, %s13_s12  }
   0x2   : > { %p137_p1 = scmp.lt.s32.totalorder %s2176_s12, 3 }
   0x4   : > { %p138_p2 = pnand %p1594_p0, %p137_p1 }
   0x5   : > { %v2090_v0 = vld [vmem:[%s2563_s1 + $0x20] sm:$0xff] (!%p138_p2)   ;;  %v2178_v1 = vmov (!%p138_p2), 0.0   ;;  %v2092_v3 = vld [vmem:[%s2563_s1 + $0x28] sm:$0xff] (!%p138_p2)   ;;  %vm2179_vm0 = vmmov (!%p138_p2), 0   ;;  %p161_p3 = scmp.lt.s32.totalorder (!%p138_p2), %s1590_s13, 1  ;;  %v2094_v5 = vld [vmem:[%s2563_s1 + $0x30] sm:$0xff] (!%p138_p2)  }
   0x6   : > { %141 = sbr.rel (%p138_p2) target bundleno = 377 (0x179), region = 32  ;;  %1887 = vmatprep.subr.bf16.mxu0 (!%p138_p2), %v2178_v1  ;;  %1899 = vmatprep.subr.bf16.mxu1 (!%p138_p2), %v2178_v1  ;;  %v2091_v2 = vld [vmem:[%s2563_s1] sm:$0xff] (!%p138_p2)   ;;  %v2093_v4 = vld [vmem:[%s2563_s1 + $0x8] sm:$0xff] (!%p138_p2)   ;;  %v2095_v6 = vld [vmem:[%s2563_s1 + $0x10] sm:$0xff] (!%p138_p2)   ;;  %vm226_vm1 = vcmask (!%p138_p2), 523264   ;;  %vm519_vm3 = vcmask (!%p138_p2), 257024  }
   0x7   : > { %1888 = vmatpush3.bf16.msra.mxu0 (!%p138_p2), %v2090_v0  ;;  %1895 = vmatprep.mubr.msk.bf16.mxu0 (!%p138_p2), %vm2179_vm0, %v2178_v1  ;;  %v2096_v7 = vld [vmem:[%s2563_s1 + $0x38] sm:$0xff] (!%p138_p2)   ;;  %v2099_v13 = vld [vmem:[%s2563_s1 + $0x40] sm:$0xff] (!%p138_p2)   ;;  %v2101_v17 = vld [vmem:[%s2563_s1 + $0x48] sm:$0xff] (!%p138_p2)  }
   0x8   : > { %1900 = vmatpush3.bf16.msra.mxu1 (!%p138_p2), %v2091_v2  ;;  %1889 = vmatprep.subr.bf16.mxu0 (!%p138_p2), %v2178_v1  ;;  %v2097_v9 = vld [vmem:[%s2563_s1 + $0x18] sm:$0xff] (!%p138_p2)   ;;  %v2100_v14 = vld [vmem:[%s2563_s1 + $0x60] sm:$0xff] (!%p138_p2)   ;;  %v2102_v18 = vld [vmem:[%s2563_s1 + $0x68] sm:$0xff] (!%p138_p2)  }
   0x9   : > { %1901 = vmatprep.subr.bf16.mxu1 (!%p138_p2), %v2178_v1  ;;  %1907 = vmatprep.mubr.msk.bf16.mxu1 (!%p138_p2), %vm2179_vm0, %v2178_v1  ;;  %v2103_v20 = vld [vmem:[%s2563_s1 + $0x50] sm:$0xff] (!%p138_p2)   ;;  %v2105_v23 = vld [vmem:[%s2563_s1 + $0x58] sm:$0xff] (!%p138_p2)   ;;  %v2108_v29 = vld [vmem:[%s2563_s1 + $0x20] sm:$0xff] (!%p138_p2)  }
   0xa   : > { %v2104_v22 = vld [vmem:[%s2563_s1 + $0x70] sm:$0xff] (!%p138_p2)   ;;  %v2106_v26 = vld [vmem:[%s2563_s1 + $0x78] sm:$0xff] (!%p138_p2)   ;;  %v2109_v31 = vld [vmem:[%s2563_s1] sm:$0xff] (!%p138_p2)  }
   0xb   : > { %1890 = vmatpush3.bf16.msra.mxu0 (!%p138_p2), %v2092_v3  ;;  %v2110_v32 = vld [vmem:[%s2563_s1 + $0x28] sm:$0xff] (!%p138_p2)   ;;  %v2112_v35 = vld [vmem:[%s2563_s1 + $0x30] sm:$0xff] (!%p138_p2)   ;;  %v2114_v39 = vld [vmem:[%s2563_s1 + $0x38] sm:$0xff] (!%p138_p2)  }
   0xc   : > { %1902 = vmatpush3.bf16.msra.mxu1 (!%p138_p2), %v2093_v4  ;;  %1891 = vmatprep.subr.bf16.mxu0 (!%p138_p2), %v2178_v1  ;;  %v2111_v33 = vld [vmem:[%s2563_s1 + $0x8] sm:$0xff] (!%p138_p2)   ;;  %v2113_v36 = vld [vmem:[%s2563_s1 + $0x10] sm:$0xff] (!%p138_p2)   ;;  %v2115_v40 = vld [vmem:[%s2563_s1 + $0x18] sm:$0xff] (!%p138_p2)  }
   0xd   : > { %s2567_s13 = smov (!%p161_p3, %s1590_s13), 1  ;;  %1903 = vmatprep.subr.bf16.mxu1 %v2178_v1  ;;  %v2117_v43 = vld [vmem:[%s2563_s1 + $0x40] sm:$0xff]   ;;  %v2119_v46 = vld [vmem:[%s2563_s1 + $0x48] sm:$0xff]   ;;  %v2121_v48 = vld [vmem:[%s2563_s1 + $0x50] sm:$0xff]  }
   0xe   : > { %s2079_s24 = smul.u32 20, %s2567_s13  ;;  %v2118_v44 = vld [vmem:[%s2563_s1 + $0x60] sm:$0xff]   ;;  %v2120_v47 = vld [vmem:[%s2563_s1 + $0x68] sm:$0xff]   ;;  %v2122_v49 = vld [vmem:[%s2563_s1 + $0x70] sm:$0xff]   ;;  %s1806_s26 = sshll.u32 %s2567_s13, 4 }
   0xf   : > { %1892 = vmatpush3.bf16.msra.mxu0 %v2094_v5  ;;  %v2123_v51 = vld [vmem:[%s2563_s1 + $0x58] sm:$0xff]   ;;  %v2126_v57 = vld [vmem:[%s2563_s1 + $0x20] sm:$0xff]   ;;  %v2128_v60 = vld [vmem:[%s2563_s1 + $0x28] sm:$0xff]   ;;  %s2546_s30 = scalar_lea.vmem %s2565_s3, %s1806_s26 }
  0x10   : > { %s2242_s29 = scalar_lea.vmem %s2562_s0, %s2079_s24  ;;  %1904 = vmatpush3.bf16.msra.mxu1 %v2095_v6  ;;  %1893 = vmatprep.subr.bf16.mxu0 %v2178_v1  ;;  %v2124_v54 = vld [vmem:[%s2563_s1 + $0x78] sm:$0xff]   ;;  %v2127_v58 = vld [vmem:[%s2563_s1] sm:$0xff]   ;;  %v2129_v61 = vld [vmem:[%s2563_s1 + $0x8] sm:$0xff]  }
  0x11   : > { %v2098_v8 = vld [vmem:[%s2242_s29] ss:$0 sps:$4 sm:$0x77]   ;;  %1905 = vmatprep.subr.bf16.mxu1 %v2178_v1  ;;  %v2107_v19 = vld [vmem:[%s2242_s29 + $0x4] ss:$0 sps:$4 sm:$0x77]  }
  0x12   : > { %v196_v10 = vshrl.u32 %v2098_v8, 16  ;;  %v198_v11 = vshll.u32 %v2098_v8, 16  ;;  %v173_v16 = vld [vmem:[%s2242_s29] sm:$0x3]  ;;  %v432_v21 = vshll.u32 %v2107_v19, 16  ;;  %v430_v24 = vshrl.u32 %v2107_v19, 16 }
  0x13   : > { %1894 = vmatpush3.bf16.msra.mxu0 %v2096_v7  ;;  %v1617_v27 = vld [vmem:[%s2242_s29 + $0x4] sm:$0x3]  ;;  %v2125_v45 = vld [vmem:[%s2242_s29 + $0x8] ss:$0 sps:$4 sm:$0x77]   ;;  %v2130_v63 = vld [vmem:[%s2563_s1 + $0x30] sm:$0xff]  }
  0x14   : > { %v200_v12 = vrot.slane %v198_v11, 1  ;;  %1906 = vmatpush3.bf16.msra.mxu1 %v2097_v9  ;;  %1911 = vmatprep.subr.bf16.mxu0 %v2178_v1  ;;  %v434_v25 = vrot.slane %v432_v21, 1  ;;  %v2116_v30 = vld [vmem:[%s2242_s29 + $0x4] ss:$0 sps:$4 sm:$0x77]   ;;  %v776_v50 = vshll.u32 %v2125_v45, 16 }
  0x15   : > { %1923 = vmatprep.subr.bf16.mxu1 %v2178_v1  ;;  %v545_v34 = vshll.u32 %v2116_v30, 16  ;;  %v543_v37 = vshrl.u32 %v2116_v30, 16  ;;  %v1648_v42 = vld [vmem:[%s2242_s29 + $0x4] sm:$0x3]  ;;  %v774_v52 = vshrl.u32 %v2125_v45, 16  ;;  %v2131_v0 = vld [vmem:[%s2563_s1 + $0x10] sm:$0xff]  }
  0x16   : > { %v201_v15 = vor.u32 %v200_v12, %v196_v10  ;;  %v435_v28 = vor.u32 %v434_v25, %v430_v24  ;;  %v778_v53 = vrot.slane %v776_v50, 1  ;;  %v1669_v55 = vld [vmem:[%s2242_s29 + $0x8] sm:$0x3]  ;;  %v2132_v4 = vld [vmem:[%s2563_s1 + $0x38] sm:$0xff]   ;;  %v2135_v7 = vld [vmem:[%s2563_s1 + $0x40] sm:$0xff]  }
  0x17   : > { %1908 = vmatmul.mubr.msk.bf16.vlgmr.msra.gmra.mrb[0].mxu1 %vm226_vm1, %v173_v16  ;;  %v547_v38 = vrot.slane %v545_v34, 1  ;;  %v2134_v59 = vld [vmem:[%s2242_s29 + $0x8] ss:$0 sps:$4 sm:$0x77]   ;;  %v2133_v5 = vld [vmem:[%s2563_s1 + $0x18] sm:$0xff]   ;;  %v2136_v9 = vld [vmem:[%s2563_s1 + $0x60] sm:$0xff]  }
  0x18   : > { %1896 = vmatmul.mubr.msk.bf16.vlgmr.msra.gmra.mrb[0].mxu0 %vm226_vm1, %v201_v15  ;;  %1924 = vmatpush3.bf16.msra.mxu1 %v2100_v14  ;;  %v779_v56 = vor.u32 %v778_v53, %v774_v52  ;;  %v883_v62 = vshll.u32 %v2134_v59, 16  ;;  %v881_v2 = vshrl.u32 %v2134_v59, 16  ;;  %v1700_v8 = vld [vmem:[%s2242_s29 + $0x8] sm:$0x3]  ;;  %v2140_v15 = vld [vmem:[%s2563_s1 + $0x70] sm:$0xff]   ;;  %v2141_v16 = vld [vmem:[%s2563_s1 + $0x58] sm:$0xff]  }
  0x19   : > { %1912 = vmatpush3.bf16.msra.mxu0 %v2099_v13  ;;  %1925 = vmatprep.subr.bf16.mxu1 %v2178_v1  ;;  %v548_v41 = vor.u32 %v547_v38, %v543_v37  ;;  %v2137_v10 = vld [vmem:[%s2563_s1 + $0x48] sm:$0xff]   ;;  %v2139_v13 = vld [vmem:[%s2563_s1 + $0x50] sm:$0xff]   ;;  %v2142_v19 = vld [vmem:[%s2563_s1 + $0x78] sm:$0xff]  }
  0x1a   : > { %1913 = vmatprep.subr.bf16.mxu0 %v2178_v1  ;;  %1919 = vmatprep.mubr.msk.bf16.mxu0 %vm2179_vm0, %v2178_v1  ;;  %v885_v3 = vrot.slane %v883_v62, 1  ;;  %v2143_v11 = vld [vmem:[%s2242_s29 + $0xc] ss:$0 sps:$4 sm:$0x77]   ;;  %v2154_v37 = vld [vmem:[%s2563_s1 + $0x60] sm:$0xff]  }
  0x1b   : > { %1931 = vmatprep.mubr.msk.bf16.mxu1 %vm2179_vm0, %v2178_v1  ;;  %v2138_v12 = vld [vmem:[%s2563_s1 + $0x68] sm:$0xff]   ;;  %v1114_v14 = vshll.u32 %v2143_v11, 16  ;;  %v2539_v62 = vld [vmem:[%s2564_s2] ss:$0 sm:$0xff] }
  0x1c   : > { %1926 = vmatpush3.bf16.msra.mxu1 %v2102_v18  ;;  %v886_v6 = vor.u32 %v885_v3, %v881_v2  ;;  %v2152_v24 = vld [vmem:[%s2242_s29 + $0xc] ss:$0 sps:$4 sm:$0x77]  }
  0x1d   : > { %1914 = vmatpush3.bf16.msra.mxu0 %v2101_v17  ;;  %1927 = vmatprep.subr.bf16.mxu1 %v2178_v1  ;;  %v1112_v17 = vshrl.u32 %v2143_v11, 16  ;;  %v1116_v18 = vrot.slane %v1114_v14, 1  ;;  %v2146_v25 = vld [vmem:[%s2563_s1 + $0x28] sm:$0xff]   ;;  %v1219_v30 = vshrl.u32 %v2152_v24, 16 }
  0x1e   : > { %1915 = vmatprep.subr.bf16.mxu0 %v2178_v1  ;;  %v2155_v38 = vld [vmem:[%s2563_s1 + $0x48] sm:$0xff]  }
  0x1f   : > { %v1117_v21 = vor.u32 %v1116_v18, %v1112_v17 }
  0x20   : > { %1928 = vmatpush3.bf16.msra.mxu1 %v2104_v22  ;;  %v2144_v22 = vld [vmem:[%s2563_s1 + $0x20] sm:$0xff]  }
  0x21   : > { %1916 = vmatpush3.bf16.msra.mxu0 %v2103_v20  ;;  %1929 = vmatprep.subr.bf16.mxu1 %v2178_v1  ;;  %v1721_v20 = vld [vmem:[%s2242_s29 + $0xc] sm:$0x3] }
  0x22   : > { %1917 = vmatprep.subr.bf16.mxu0 %v2178_v1 }
  0x24   : > { %1930 = vmatpush3.bf16.msra.mxu1 %v2106_v26  ;;  %v2147_v26 = vld [vmem:[%s2563_s1 + $0x8] sm:$0xff]  }
  0x25   : > { %1918 = vmatpush3.bf16.msra.mxu0 %v2105_v23  ;;  %1947 = vmatprep.subr.bf16.mxu1 %v2178_v1  ;;  %v2145_v23 = vld [vmem:[%s2563_s1] sm:$0xff]  }
  0x26   : > { %1935 = vmatprep.subr.bf16.mxu0 %v2178_v1 }
  0x27   : > { %1932 = vmatmul.mubr.msk.bf16.vlgmr.msra.gmra.mrb[4].mxu1 %vm226_vm1, %v435_v28  ;;  %v2148_v28 = vld [vmem:[%s2563_s1 + $0x30] sm:$0xff]  }
  0x28   : > { %1920 = vmatmul.mubr.msk.bf16.vlgmr.msra.gmra.mrb[4].mxu0 %vm226_vm1, %v1617_v27  ;;  %1948 = vmatpush3.bf16.msra.mxu1 %v2109_v31  ;;  %v1221_v27 = vshll.u32 %v2152_v24, 16 }
  0x29   : > { %1936 = vmatpush3.bf16.msra.mxu0 %v2108_v29  ;;  %1949 = vmatprep.subr.bf16.mxu1 %v2178_v1  ;;  %v2149_v29 = vld [vmem:[%s2563_s1 + $0x10] sm:$0xff]  }
  0x2a   : > { %1937 = vmatprep.subr.bf16.mxu0 %v2178_v1  ;;  %1943 = vmatprep.mubr.msk.bf16.mxu0 %vm2179_vm0, %v2178_v1  ;;  %v1223_v31 = vrot.slane %v1221_v27, 1 }
  0x2b   : > { %1955 = vmatprep.mubr.msk.bf16.mxu1 %vm2179_vm0, %v2178_v1 }
  0x2c   : > { %1950 = vmatpush3.bf16.msra.mxu1 %v2111_v33  ;;  %v2151_v33 = vld [vmem:[%s2563_s1 + $0x18] sm:$0xff]   ;;  %v1224_v34 = vor.u32 %v1223_v31, %v1219_v30 }
  0x2d   : > { %1938 = vmatpush3.bf16.msra.mxu0 %v2110_v32  ;;  %1951 = vmatprep.subr.bf16.mxu1 %v2178_v1  ;;  %v2150_v32 = vld [vmem:[%s2563_s1 + $0x38] sm:$0xff]  }
  0x2e   : > { %1939 = vmatprep.subr.bf16.mxu0 %v2178_v1 }
  0x30   : > { %1952 = vmatpush3.bf16.msra.mxu1 %v2113_v36  ;;  %v1752_v36 = vld [vmem:[%s2242_s29 + $0xc] sm:$0x3] }
  0x31   : > { %1940 = vmatpush3.bf16.msra.mxu0 %v2112_v35  ;;  %1953 = vmatprep.subr.bf16.mxu1 %v2178_v1  ;;  %v2153_v35 = vld [vmem:[%s2563_s1 + $0x40] sm:$0xff]  }
  0x32   : > { %1941 = vmatprep.subr.bf16.mxu0 %v2178_v1 }
  0x34   : > { %1954 = vmatpush3.bf16.msra.mxu1 %v2115_v40  ;;  %v2156_v40 = vld [vmem:[%s2563_s1 + $0x68] sm:$0xff]  }
  0x35   : > { %1942 = vmatpush3.bf16.msra.mxu0 %v2114_v39  ;;  %1971 = vmatprep.subr.bf16.mxu1 %v2178_v1  ;;  %v2161_v39 = vld [vmem:[%s2242_s29 + $0x10] ss:$0 sps:$4 sm:$0x77]  }
  0x36   : > { %1959 = vmatprep.subr.bf16.mxu0 %v2178_v1  ;;  %v1450_v45 = vshrl.u32 %v2161_v39, 16 }
  0x37   : > { %1956 = vmatmul.mubr.msk.bf16.vlgmr.msra.gmra.mrb[8].mxu1 %vm226_vm1, %v1648_v42  ;;  %v1452_v42 = vshll.u32 %v2161_v39, 16 }
  0x38   : > { %1944 = vmatmul.mubr.msk.bf16.vlgmr.msra.gmra.mrb[8].mxu0 %vm226_vm1, %v548_v41  ;;  %1972 = vmatpush3.bf16.msra.mxu1 %v2118_v44  ;;  %v2157_v41 = vld [vmem:[%s2563_s1 + $0x50] sm:$0xff]   ;;  %v2159_v44 = vld [vmem:[%s2563_s1 + $0x58] sm:$0xff]  }
  0x39   : > { %1960 = vmatpush3.bf16.msra.mxu0 %v2117_v43  ;;  %1973 = vmatprep.subr.bf16.mxu1 %v2178_v1  ;;  %v2158_v43 = vld [vmem:[%s2563_s1 + $0x70] sm:$0xff]  }
  0x3a   : > { %1961 = vmatprep.subr.bf16.mxu0 %v2178_v1  ;;  %1967 = vmatprep.mubr.msk.bf16.mxu0 %vm2179_vm0, %v2178_v1 }
  0x3b   : > { %1979 = vmatprep.mubr.msk.bf16.mxu1 %vm2179_vm0, %v2178_v1 }
  0x3c   : > { %1974 = vmatpush3.bf16.msra.mxu1 %v2120_v47  ;;  %v2160_v47 = vld [vmem:[%s2563_s1 + $0x78] sm:$0xff]  }
  0x3d   : > { %1962 = vmatpush3.bf16.msra.mxu0 %v2119_v46  ;;  %1975 = vmatprep.subr.bf16.mxu1 %v2178_v1  ;;  %v1454_v46 = vrot.slane %v1452_v42, 1 }
  0x3e   : > { %1963 = vmatprep.subr.bf16.mxu0 %v2178_v1 }
  0x40   : > { %1976 = vmatpush3.bf16.msra.mxu1 %v2122_v49  ;;  %v1455_v49 = vor.u32 %v1454_v46, %v1450_v45 }
  0x41   : > { %1964 = vmatpush3.bf16.msra.mxu0 %v2121_v48  ;;  %1977 = vmatprep.subr.bf16.mxu1 %v2178_v1  ;;  %v1773_v48 = vld [vmem:[%s2242_s29 + $0x10] sm:$0x3] }
  0x42   : > { %1965 = vmatprep.subr.bf16.mxu0 %v2178_v1 }
  0x44   : > { %1978 = vmatpush3.bf16.msra.mxu1 %v2124_v54 }
  0x45   : > { %1966 = vmatpush3.bf16.msra.mxu0 %v2123_v51  ;;  %1995 = vmatprep.subr.bf16.mxu1 %v2178_v1 }
  0x46   : > { %1983 = vmatprep.subr.bf16.mxu0 %v2178_v1 }
  0x47   : > { %1980 = vmatmul.mubr.msk.bf16.vlgmr.msra.gmra.mrb[12].mxu1 %vm226_vm1, %v779_v56 }
  0x48   : > { %1968 = vmatmul.mubr.msk.bf16.vlgmr.msra.gmra.mrb[12].mxu0 %vm226_vm1, %v1669_v55  ;;  %1996 = vmatpush3.bf16.msra.mxu1 %v2127_v58 }
  0x49   : > { %1984 = vmatpush3.bf16.msra.mxu0 %v2126_v57  ;;  %1997 = vmatprep.subr.bf16.mxu1 %v2178_v1 }
  0x4a   : > { %1985 = vmatprep.subr.bf16.mxu0 %v2178_v1  ;;  %1991 = vmatprep.mubr.msk.bf16.mxu0 %vm2179_vm0, %v2178_v1 }
  0x4b   : > { %2003 = vmatprep.mubr.msk.bf16.mxu1 %vm2179_vm0, %v2178_v1 }
  0x4c   : > { %1998 = vmatpush3.bf16.msra.mxu1 %v2129_v61 }
  0x4d   : > { %1986 = vmatpush3.bf16.msra.mxu0 %v2128_v60  ;;  %1999 = vmatprep.subr.bf16.mxu1 %v2178_v1 }
  0x4e   : > { %1987 = vmatprep.subr.bf16.mxu0 %v2178_v1 }
  0x50   : > { %2000 = vmatpush3.bf16.msra.mxu1 %v2131_v0 }
  0x51   : > { %1988 = vmatpush3.bf16.msra.mxu0 %v2130_v63  ;;  %2001 = vmatprep.subr.bf16.mxu1 %v2178_v1 }
  0x52   : > { %1989 = vmatprep.subr.bf16.mxu0 %v2178_v1 }
  0x54   : > { %2002 = vmatpush3.bf16.msra.mxu1 %v2133_v5 }
  0x55   : > { %1990 = vmatpush3.bf16.msra.mxu0 %v2132_v4  ;;  %2019 = vmatprep.subr.bf16.mxu1 %v2178_v1 }
  0x56   : > { %2007 = vmatprep.subr.bf16.mxu0 %v2178_v1 }
  0x57   : > { %2004 = vmatmul.mubr.msk.bf16.vlgmr.msra.gmra.mrb[16].mxu1 %vm226_vm1, %v1700_v8 }
  0x58   : > { %1992 = vmatmul.mubr.msk.bf16.vlgmr.msra.gmra.mrb[16].mxu0 %vm226_vm1, %v886_v6  ;;  %2020 = vmatpush3.bf16.msra.mxu1 %v2136_v9 }
  0x59   : > { %2008 = vmatpush3.bf16.msra.mxu0 %v2135_v7  ;;  %2021 = vmatprep.subr.bf16.mxu1 %v2178_v1 }
  0x5a   : > { %2009 = vmatprep.subr.bf16.mxu0 %v2178_v1  ;;  %2015 = vmatprep.mubr.msk.bf16.mxu0 %vm2179_vm0, %v2178_v1 }
  0x5b   : > { %2027 = vmatprep.mubr.msk.bf16.mxu1 %vm2179_vm0, %v2178_v1 }
  0x5c   : > { %2022 = vmatpush3.bf16.msra.mxu1 %v2138_v12 }
  0x5d   : > { %2010 = vmatpush3.bf16.msra.mxu0 %v2137_v10  ;;  %2023 = vmatprep.subr.bf16.mxu1 %v2178_v1 }
  0x5e   : > { %2011 = vmatprep.subr.bf16.mxu0 %v2178_v1 }
  0x60   : > { %2024 = vmatpush3.bf16.msra.mxu1 %v2140_v15 }
  0x61   : > { %2012 = vmatpush3.bf16.msra.mxu0 %v2139_v13  ;;  %2025 = vmatprep.subr.bf16.mxu1 %v2178_v1 }
  0x62   : > { %2013 = vmatprep.subr.bf16.mxu0 %v2178_v1 }
  0x64   : > { %2026 = vmatpush3.bf16.msra.mxu1 %v2142_v19 }
  0x65   : > { %2014 = vmatpush3.bf16.msra.mxu0 %v2141_v16  ;;  %2043 = vmatprep.subr.bf16.mxu1 %v2178_v1 }
  0x66   : > { %2031 = vmatprep.subr.bf16.mxu0 %v2178_v1 }
  0x67   : > { %2028 = vmatmul.mubr.msk.bf16.vlgmr.msra.gmra.mrb[20].mxu1 %vm226_vm1, %v1117_v21 }
  0x68   : > { %2016 = vmatmul.mubr.msk.bf16.vlgmr.msra.gmra.mrb[20].mxu0 %vm226_vm1, %v1721_v20  ;;  %2044 = vmatpush3.bf16.msra.mxu1 %v2145_v23 }
  0x69   : > { %2032 = vmatpush3.bf16.msra.mxu0 %v2144_v22  ;;  %2045 = vmatprep.subr.bf16.mxu1 %v2178_v1 }
  0x6a   : > { %2033 = vmatprep.subr.bf16.mxu0 %v2178_v1  ;;  %2039 = vmatprep.mubr.msk.bf16.mxu0 %vm2179_vm0, %v2178_v1 }
  0x6b   : > { %2051 = vmatprep.mubr.msk.bf16.mxu1 %vm2179_vm0, %v2178_v1 }
  0x6c   : > { %2046 = vmatpush3.bf16.msra.mxu1 %v2147_v26 }
  0x6d   : > { %2034 = vmatpush3.bf16.msra.mxu0 %v2146_v25  ;;  %2047 = vmatprep.subr.bf16.mxu1 %v2178_v1 }
  0x6e   : > { %2035 = vmatprep.subr.bf16.mxu0 %v2178_v1 }
  0x70   : > { %2048 = vmatpush3.bf16.msra.mxu1 %v2149_v29 }
  0x71   : > { %2036 = vmatpush3.bf16.msra.mxu0 %v2148_v28  ;;  %2049 = vmatprep.subr.bf16.mxu1 %v2178_v1 }
  0x72   : > { %2037 = vmatprep.subr.bf16.mxu0 %v2178_v1 }
  0x74   : > { %2050 = vmatpush3.bf16.msra.mxu1 %v2151_v33 }
  0x75   : > { %2038 = vmatpush3.bf16.msra.mxu0 %v2150_v32  ;;  %2067 = vmatprep.subr.bf16.mxu1 %v2178_v1 }
  0x76   : > { %2055 = vmatprep.subr.bf16.mxu0 %v2178_v1 }
  0x77   : > { %2052 = vmatmul.mubr.msk.bf16.vlgmr.msra.gmra.mrb[24].mxu1 %vm226_vm1, %v1752_v36 }
  0x78   : > { %2040 = vmatmul.mubr.msk.bf16.vlgmr.msra.gmra.mrb[24].mxu0 %vm226_vm1, %v1224_v34  ;;  %2068 = vmatpush3.bf16.msra.mxu1 %v2154_v37 }
  0x79   : > { %2056 = vmatpush3.bf16.msra.mxu0 %v2153_v35  ;;  %2069 = vmatprep.subr.bf16.mxu1 %v2178_v1 }
  0x7a   : > { %2057 = vmatprep.subr.bf16.mxu0 %v2178_v1  ;;  %2063 = vmatprep.mubr.msk.bf16.mxu0 %vm2179_vm0, %v2178_v1 }
  0x7b   : > { %2075 = vmatprep.mubr.msk.bf16.mxu1 %vm2179_vm0, %v2178_v1 }
  0x7c   : > { %2070 = vmatpush3.bf16.msra.mxu1 %v2156_v40 }
  0x7d   : > { %2058 = vmatpush3.bf16.msra.mxu0 %v2155_v38  ;;  %2071 = vmatprep.subr.bf16.mxu1 %v2178_v1 }
  0x7e   : > { %2059 = vmatprep.subr.bf16.mxu0 %v2178_v1 }
  0x80   : > { %2072 = vmatpush3.bf16.msra.mxu1 %v2158_v43 }
  0x81   : > { %2060 = vmatpush3.bf16.msra.mxu0 %v2157_v41  ;;  %2073 = vmatprep.subr.bf16.mxu1 %v2178_v1 }
  0x82   : > { %2061 = vmatprep.subr.bf16.mxu0 %v2178_v1 }
  0x84   : > { %2074 = vmatpush3.bf16.msra.mxu1 %v2160_v47 }
  0x85   : > { %2062 = vmatpush3.bf16.msra.mxu0 %v2159_v44 }
  0x87   : > { %2076 = vmatmul.mubr.msk.bf16.vlgmr.msra.gmra.mrb[28].mxu1 %vm226_vm1, %v1455_v49 }
  0x88   : > { %2064 = vmatmul.mubr.msk.bf16.vlgmr.msra.gmra.mrb[28].mxu0 %vm226_vm1, %v1773_v48 }
  0xea   : > { %v331_v51 = vpop.f32.mrb[0].mxu1 }
  0xeb   : > { %v264_v50 = vpop.f32.mrb[0].mxu0  ;;  %v1909_v54 = vpop.f32.mrb[1].mxu1 }
  0xec   : > { %v1897_v52 = vpop.f32.mrb[1].mxu0  ;;  %v332_v53 = vadd.f32 %v331_v51, %v264_v50  ;;  %v334_v56 = vpop.f32.mrb[2].mxu1 }
  0xed   : > { %v267_v55 = vpop.f32.mrb[2].mxu0  ;;  %v1910_v58 = vpop.f32.mrb[3].mxu1 }
  0xee   : > { %v1898_v57 = vpop.f32.mrb[3].mxu0 }
  0xfa   : > { %v497_v1 = vpop.f32.mrb[4].mxu1 }
  0xfb   : > { %v409_v59 = vpop.f32.mrb[4].mxu0  ;;  %v1933_v63 = vpop.f32.mrb[5].mxu1 }
  0xfc   : > { %v415_v60 = vadd.f32 %v409_v59, %v332_v53  ;;  %v1921_v61 = vpop.f32.mrb[5].mxu0  ;;  %v500_v3 = vpop.f32.mrb[6].mxu1 }
  0xfd   : > { %v412_v0 = vpop.f32.mrb[6].mxu0  ;;  %v1934_v5 = vpop.f32.mrb[7].mxu1 }
  0xfe   : > { %v503_v2 = vadd.f32 %v497_v1, %v415_v60  ;;  %v1922_v4 = vpop.f32.mrb[7].mxu0 }
 0x100   : > { %v510_v6 = vadd.f32 %v2539_v62, %v503_v2 }
 0x102   : > { %v511_v7 = vmin.f32 %v510_v6, 0.0  ;;  %vm516_vm2 = vcmp.gt.f32.partialorder %v510_v6, 0.0 }
 0x104   : > { %v512_v8 = vmul.f32 1.442695, %v511_v7 }
 0x106   : > { %2162 = vpow2.f32 %v512_v8 }
 0x10a   : > { %v677_v10 = vpop.f32.mrb[8].mxu1 }
 0x10b   : > { %v610_v9 = vpop.f32.mrb[8].mxu0  ;;  %v1957_v13 = vpop.f32.mrb[9].mxu1 }
 0x10c   : > { %v1945_v11 = vpop.f32.mrb[9].mxu0  ;;  %v678_v12 = vadd.f32 %v677_v10, %v610_v9  ;;  %v680_v15 = vpop.f32.mrb[10].mxu1 }
 0x10d   : > { %v613_v14 = vpop.f32.mrb[10].mxu0  ;;  %v1958_v17 = vpop.f32.mrb[11].mxu1 }
 0x10e   : > { %v1946_v16 = vpop.f32.mrb[11].mxu0 }
 0x110   : > { %v2163_v18 = vpop.eup %2162 }
 0x111   : > { %v1647_v19 = vadd.f32 -1.0, %v2163_v18 }
 0x113   : > { %v515_v20 = vmul.f32 1.6732632, %v1647_v19 }
 0x115   : > { %v517_v21 = vsel %vm516_vm2, %v510_v6, %v515_v20 }
 0x116   : > { %v518_v22 = vmul.f32 1.050701, %v517_v21 }
 0x118   : > { %520 = vst.msk [vmem:[%s2546_s30] sm:$0xf] %vm519_vm3, %v518_v22 }
 0x11a   : > { %v841_v25 = vpop.f32.mrb[12].mxu1 }
 0x11b   : > { %v754_v23 = vpop.f32.mrb[12].mxu0  ;;  %v1981_v27 = vpop.f32.mrb[13].mxu1 }
 0x11c   : > { %v760_v24 = vadd.f32 %v754_v23, %v678_v12  ;;  %v1969_v26 = vpop.f32.mrb[13].mxu0  ;;  %v844_v30 = vpop.f32.mrb[14].mxu1 }
 0x11d   : > { %v757_v28 = vpop.f32.mrb[14].mxu0  ;;  %v1982_v32 = vpop.f32.mrb[15].mxu1 }
 0x11e   : > { %v847_v29 = vadd.f32 %v841_v25, %v760_v24  ;;  %v1970_v31 = vpop.f32.mrb[15].mxu0 }
 0x120   : > { %v848_v33 = vadd.f32 %v2539_v62, %v847_v29 }
 0x122   : > { %v849_v34 = vmin.f32 %v848_v33, 0.0  ;;  %vm854_vm4 = vcmp.gt.f32.partialorder %v848_v33, 0.0 }
 0x124   : > { %v850_v35 = vmul.f32 1.442695, %v849_v34 }
 0x126   : > { %2164 = vpow2.f32 %v850_v35 }
 0x12a   : > { %v1015_v37 = vpop.f32.mrb[16].mxu1 }
 0x12b   : > { %v948_v36 = vpop.f32.mrb[16].mxu0  ;;  %v2005_v40 = vpop.f32.mrb[17].mxu1 }
 0x12c   : > { %v1993_v38 = vpop.f32.mrb[17].mxu0  ;;  %v1016_v39 = vadd.f32 %v1015_v37, %v948_v36  ;;  %v1018_v42 = vpop.f32.mrb[18].mxu1 }
 0x12d   : > { %v951_v41 = vpop.f32.mrb[18].mxu0  ;;  %v2006_v44 = vpop.f32.mrb[19].mxu1 }
 0x12e   : > { %v1994_v43 = vpop.f32.mrb[19].mxu0 }
 0x130   : > { %v2165_v45 = vpop.eup %2164 }
 0x131   : > { %v1698_v46 = vadd.f32 -1.0, %v2165_v45 }
 0x133   : > { %v853_v47 = vmul.f32 1.6732632, %v1698_v46 }
 0x135   : > { %v855_v48 = vsel %vm854_vm4, %v848_v33, %v853_v47 }
 0x136   : > { %v856_v49 = vmul.f32 1.050701, %v855_v48 }
 0x138   : > { %1699 = vst.msk [vmem:[%s2546_s30 + $0x4] sm:$0xf] %vm519_vm3, %v856_v49 }
 0x13a   : > { %v1179_v52 = vpop.f32.mrb[20].mxu1 }
 0x13b   : > { %v1092_v50 = vpop.f32.mrb[20].mxu0  ;;  %v2029_v54 = vpop.f32.mrb[21].mxu1 }
 0x13c   : > { %v1098_v51 = vadd.f32 %v1092_v50, %v1016_v39  ;;  %v2017_v53 = vpop.f32.mrb[21].mxu0  ;;  %v1182_v57 = vpop.f32.mrb[22].mxu1 }
 0x13d   : > { %v1095_v55 = vpop.f32.mrb[22].mxu0  ;;  %v2030_v59 = vpop.f32.mrb[23].mxu1 }
 0x13e   : > { %v1185_v56 = vadd.f32 %v1179_v52, %v1098_v51  ;;  %v2018_v58 = vpop.f32.mrb[23].mxu0 }
 0x140   : > { %v1186_v60 = vadd.f32 %v2539_v62, %v1185_v56 }
 0x142   : > { %v1187_v1 = vmin.f32 %v1186_v60, 0.0  ;;  %vm1192_vm5 = vcmp.gt.f32.partialorder %v1186_v60, 0.0 }
 0x144   : > { %v1188_v61 = vmul.f32 1.442695, %v1187_v1 }
 0x146   : > { %2166 = vpow2.f32 %v1188_v61 }
 0x14a   : > { %v1353_v0 = vpop.f32.mrb[24].mxu1 }
 0x14b   : > { %v1286_v63 = vpop.f32.mrb[24].mxu0  ;;  %v2053_v4 = vpop.f32.mrb[25].mxu1 }
 0x14c   : > { %v2041_v2 = vpop.f32.mrb[25].mxu0  ;;  %v1354_v3 = vadd.f32 %v1353_v0, %v1286_v63  ;;  %v1356_v6 = vpop.f32.mrb[26].mxu1 }
 0x14d   : > { %v1289_v5 = vpop.f32.mrb[26].mxu0  ;;  %v2054_v8 = vpop.f32.mrb[27].mxu1 }
 0x14e   : > { %v2042_v7 = vpop.f32.mrb[27].mxu0 }
 0x150   : > { %v2167_v9 = vpop.eup %2166 }
 0x151   : > { %v1750_v10 = vadd.f32 -1.0, %v2167_v9 }
 0x153   : > { %v1191_v11 = vmul.f32 1.6732632, %v1750_v10 }
 0x155   : > { %v1193_v12 = vsel %vm1192_vm5, %v1186_v60, %v1191_v11 }
 0x156   : > { %v1194_v13 = vmul.f32 1.050701, %v1193_v12 }
 0x158   : > { %1751 = vst.msk [vmem:[%s2546_s30 + $0x8] sm:$0xf] %vm519_vm3, %v1194_v13 }
 0x15a   : > { %v1517_v16 = vpop.f32.mrb[28].mxu1 }
 0x15b   : > { %v1430_v14 = vpop.f32.mrb[28].mxu0  ;;  %v2077_v18 = vpop.f32.mrb[29].mxu1 }
 0x15c   : > { %v1436_v15 = vadd.f32 %v1430_v14, %v1354_v3  ;;  %v2065_v17 = vpop.f32.mrb[29].mxu0  ;;  %v1520_v21 = vpop.f32.mrb[30].mxu1 }
 0x15d   : > { %v1433_v19 = vpop.f32.mrb[30].mxu0  ;;  %v2078_v23 = vpop.f32.mrb[31].mxu1 }
 0x15e   : > { %v1523_v20 = vadd.f32 %v1517_v16, %v1436_v15  ;;  %v2066_v22 = vpop.f32.mrb[31].mxu0 }
 0x160   : > { %v1524_v24 = vadd.f32 %v2539_v62, %v1523_v20 }
 0x162   : > { %v1525_v25 = vmin.f32 %v1524_v24, 0.0  ;;  %vm1530_vm6 = vcmp.gt.f32.partialorder %v1524_v24, 0.0 }
 0x164   : > { %v1526_v26 = vmul.f32 1.442695, %v1525_v25 }
 0x166   : > { %2168 = vpow2.f32 %v1526_v26 }
 0x170   : > { %v2169_v27 = vpop.eup %2168 }
 0x171   : > { %v1802_v28 = vadd.f32 -1.0, %v2169_v27 }
 0x173   : > { %v1529_v29 = vmul.f32 1.6732632, %v1802_v28 }
 0x175   : > { %v1531_v30 = vsel %vm1530_vm6, %v1524_v24, %v1529_v29 }
 0x176   : > { %v1532_v31 = vmul.f32 1.050701, %v1531_v30 }
 0x178   : > { %1803 = vst.msk [vmem:[%s2546_s30 + $0xc] sm:$0xf] %vm519_vm3, %v1532_v31 }
 0x179 PF: > { %s13_s12 = sadd.s32 1, %s2176_s12  }
 0x17a   : > { %p10_p4 = scmp.ge.s32.totalorder %s13_s12, 4  }
 0x17c   :  { %12 = sbr.rel (!%p10_p4) target bundleno = 1 (0x1), region = 72 }

// kernel: backbone_forward.5
= control target key start
LH: loop header
LB: loop body
LE: loop exit
PB: predicated region body
PF: predicated region fallthrough
CT: control target
= control target key end

     0   :  { %v1518_v22 = vmov 1983009808   ;;  %v83_v24 = vlaneseq  ;;  %vm680_vm0 = vcmask 1040384   ;;  %vm681_vm1 = vcmask 1041408   ;;  %s1911_s3 = inlined_call_operand.vmem [shape: bf16[512,32], index: 3, kind: input, shape index: {}]   ;;  %s1912_s0 = inlined_call_operand.vmem [shape: f32[2,512], index: 0, kind: input, shape index: {}]   ;;  %s1913_s11 = inlined_call_operand.vmem [shape: bf16[3,32], index: 11, kind: input, shape index: {}]   ;;  %s1914_s2 = inlined_call_operand.vmem [shape: f32[2,3], index: 2, kind: input, shape index: {}]   ;;  %s1915_s5 = inlined_call_operand.vmem [shape: bf16[32,16], index: 5, kind: input, shape index: {}]   ;;  %s1916_s13 = inlined_call_operand.vmem [shape: bf16[32,32], index: 13, kind: input, shape index: {}]   ;;  %s1917_s4 = inlined_call_operand.vmem [shape: f32[1,32], index: 4, kind: input, shape index: {}]   ;;  %s1918_s7 = inlined_call_operand.vmem [shape: bf16[8,32], index: 7, kind: input, shape index: {}]   ;;  %s1919_s1 = inlined_call_operand.vmem [shape: f32[2,8], index: 1, kind: input, shape index: {}]   ;;  %s1920_s9 = inlined_call_operand.vmem [shape: bf16[32,32], index: 9, kind: input, shape index: {}]   ;;  %s1921_s6 = inlined_call_operand.vmem [shape: f32[1,16], index: 6, kind: input, shape index: {}]   ;;  %s1922_s23 = inlined_call_operand.vmem [shape: f32[2,16], index: 23, kind: output, shape index: {0}]   ;;  %s1923_s8 = inlined_call_operand.vmem [shape: f32[1,32], index: 8, kind: input, shape index: {}]   ;;  %s1924_s14 = inlined_call_operand.vmem [shape: bf16[32,32], index: 14, kind: input, shape index: {}]   ;;  %s1925_s15 = inlined_call_operand.vmem [shape: bf16[32,32], index: 15, kind: input, shape index: {}]   ;;  %s1926_s12 = inlined_call_operand.vmem [shape: f32[1,32], index: 12, kind: input, shape index: {}]   ;;  %s1927_s10 = inlined_call_operand.vmem [shape: f32[1,32], index: 10, kind: input, shape index: {}]   ;;  %s1928_s17 = inlined_call_operand.vmem [shape: bf16[32,32], index: 17, kind: input, shape index: {}]   ;;  %s1929_s16 = inlined_call_operand.vmem [shape: f32[1,32], index: 16, kind: input, shape index: {}]   ;;  %s1930_s19 = inlined_call_operand.vmem [shape: bf16[32,128], index: 19, kind: input, shape index: {}]   ;;  %s1931_s21 = inlined_call_operand.vmem [shape: bf16[128,10], index: 21, kind: input, shape index: {}]   ;;  %s1932_s18 = inlined_call_operand.vmem [shape: f32[1,32], index: 18, kind: input, shape index: {}]   ;;  %s1933_s20 = inlined_call_operand.vmem [shape: f32[1,128], index: 20, kind: input, shape index: {}]   ;;  %s1934_s22 = inlined_call_operand.vmem [shape: f32[1,10], index: 22, kind: input, shape index: {}]   ;;  %s1935_s24 = inlined_call_operand.vmem [shape: f32[2,10], index: 24, kind: output, shape index: {1}]  }
   0x1   :  { %1939 = sst [smem:[#allocation2_spill]] %s1911_s3  ;;  %v81_v23 = vunpack.c.l.s4 %v1518_v22  ;;  %v1519_v48 = vmov 65535   ;;  %v1520_v53 = vmov 0.0   ;;  %vm1521_vm2 = vmmov 0  }
   0x2   :  { %1940 = sst [smem:[#allocation3_spill]] %s1912_s0  ;;  %s1948_s27 = sld [smem:[#allocation2_spill]]  ;;  %v84_v30 = vshrl.u32 %v83_v24, 7  ;;  %v682_v49 = vsel %vm680_vm0, 4294967295, %v1519_v48  ;;  %vm676_vm3 = vcmask 23552   ;;  %vm539_vm5 = vcmask 1043456  }
   0x3   :  { %1941 = sst [smem:[#allocation4_spill]] %s1913_s11  ;;  %v82_v29 = vunpack.c.0.s8 %v81_v23  ;;  %s1949_s3 = sld [smem:[#allocation3_spill]]  ;;  %v683_v51 = vsel %vm681_vm1, %v682_v49, 0  ;;  %vm479_vm6 = vcmask 261120   ;;  %vm535_vm7 = vcmask 64512  }
   0x4   :  { %1942 = sst [smem:[#allocation5_spill]] %s1914_s2  ;;  %vm523_vm8 = vcmask 123904   ;;  %vm1190_vm15 = vcmask 74752  }
   0x5   :  { %1943 = sst [smem:[#allocation6_spill]] %s1915_s5  ;;  %v85_v35 = vsub.s32 %v82_v29, %v84_v30  ;;  %s1950_s5 = sld [smem:[#allocation4_spill]] }
   0x6   :  { %1944 = sst [smem:[#allocation7_spill]] %s1916_s13  ;;  %s1951_s26 = sld [smem:[#allocation5_spill]] }
   0x7   :  { %1945 = sst [smem:[#allocation8_spill]] %s1917_s4  ;;  %s1952_s11 = sld [smem:[#allocation6_spill]] }
   0x8   :  { %1946 = sst [smem:[#allocation9_spill]] %s1918_s7  ;;  %v1449_v0 = vld [vmem:[%s1948_s27 + $0x40] sm:$0xff]   ;;  %v1453_v4 = vld [vmem:[%s1948_s27 + $0x48] sm:$0xff]   ;;  %v1457_v8 = vld [vmem:[%s1948_s27 + $0x50] sm:$0xff]   ;;  %s1953_s7 = sld [smem:[#allocation7_spill]] }
   0x9   :  { %1947 = sst [smem:[#allocation10_spill]] %s1919_s1  ;;  %v1450_v1 = vld [vmem:[%s1948_s27 + $0xc0] sm:$0xff]   ;;  %1279 = vmatprep.subr.bf16.mxu0 %v1449_v0  ;;  %v1454_v5 = vld [vmem:[%s1948_s27 + $0xc8] sm:$0xff]   ;;  %v1458_v9 = vld [vmem:[%s1948_s27 + $0xd0] sm:$0xff]   ;;  %s1954_s0 = sld [smem:[#allocation8_spill]] }
   0xa   :  { %v1451_v2 = vld [vmem:[%s1948_s27] sm:$0xff]   ;;  %1301 = vmatprep.subr.bf16.mxu1 %v1450_v1  ;;  %v1455_v6 = vld [vmem:[%s1948_s27 + $0x8] sm:$0xff]   ;;  %v1459_v10 = vld [vmem:[%s1948_s27 + $0x10] sm:$0xff]   ;;  %s1955_s28 = sld [smem:[#allocation9_spill]]  ;;  %s1956_s29 = sld [smem:[#allocation10_spill]] }
   0xb   :  { %v1452_v3 = vld [vmem:[%s1948_s27 + $0x80] sm:$0xff]   ;;  %1280 = vmatpush3.bf16.msra.mxu0 %v1451_v2  ;;  %v1456_v7 = vld [vmem:[%s1948_s27 + $0x88] sm:$0xff]   ;;  %v1460_v11 = vld [vmem:[%s1948_s27 + $0x90] sm:$0xff]  }
   0xc   :  { %1302 = vmatpush3.bf16.msra.mxu1 %v1452_v3  ;;  %1281 = vmatprep.subr.bf16.mxu0 %v1453_v4  ;;  %v1461_v12 = vld [vmem:[%s1948_s27 + $0x58] sm:$0xff]   ;;  %v1465_v16 = vld [vmem:[%s1948_s27 + $0x60] sm:$0xff]   ;;  %v1469_v20 = vld [vmem:[%s1948_s27 + $0x68] sm:$0xff]  }
   0xd   :  { %1303 = vmatprep.subr.bf16.mxu1 %v1454_v5  ;;  %v1462_v13 = vld [vmem:[%s1948_s27 + $0xd8] sm:$0xff]   ;;  %v1466_v17 = vld [vmem:[%s1948_s27 + $0xe0] sm:$0xff]   ;;  %v1470_v21 = vld [vmem:[%s1948_s27 + $0xe8] sm:$0xff]  }
   0xe   :  { %v1463_v14 = vld [vmem:[%s1948_s27 + $0x18] sm:$0xff]   ;;  %v1467_v18 = vld [vmem:[%s1948_s27 + $0x20] sm:$0xff]   ;;  %v1471_v25 = vld [vmem:[%s1948_s27 + $0x28] sm:$0xff]  }
   0xf   :  { %1282 = vmatpush3.bf16.msra.mxu0 %v1455_v6  ;;  %v1464_v15 = vld [vmem:[%s1948_s27 + $0x98] sm:$0xff]   ;;  %v1468_v19 = vld [vmem:[%s1948_s27 + $0xa0] sm:$0xff]   ;;  %v1472_v26 = vld [vmem:[%s1948_s27 + $0xa8] sm:$0xff]  }
  0x10   :  { %1304 = vmatpush3.bf16.msra.mxu1 %v1456_v7  ;;  %1283 = vmatprep.subr.bf16.mxu0 %v1457_v8  ;;  %v1473_v27 = vld [vmem:[%s1948_s27 + $0x70] sm:$0xff]   ;;  %v1477_v33 = vld [vmem:[%s1948_s27 + $0x78] sm:$0xff]   ;;  %v77_v38 = vld [vmem:[%s1949_s3] sm:$0xff] }
  0x11   :  { %1305 = vmatprep.subr.bf16.mxu1 %v1458_v9  ;;  %v1474_v28 = vld [vmem:[%s1948_s27 + $0xf0] sm:$0xff]   ;;  %v1478_v34 = vld [vmem:[%s1948_s27 + $0xf8] sm:$0xff]   ;;  %v86_v39 = vrot.slane %v77_v38, %v85_v35  ;;  %v79_v40 = vcombine.high %v77_v38, %v77_v38  ;;  %v668_v50 = vld [vmem:[%s1950_s5] sm:$0x3] }
  0x12   :  { %v1475_v31 = vld [vmem:[%s1948_s27 + $0x30] sm:$0xff]   ;;  %v1479_v36 = vld [vmem:[%s1948_s27 + $0x38] sm:$0xff]   ;;  %v685_v52 = vand.u32 %v683_v51, %v668_v50  ;;  %v666_v54 = vld [vmem:[%s1951_s26] sm:$0x3] }
  0x13   :  { %1284 = vmatpush3.bf16.msra.mxu0 %v1459_v10  ;;  %v1476_v32 = vld [vmem:[%s1948_s27 + $0xb0] sm:$0xff]   ;;  %v1480_v37 = vld [vmem:[%s1948_s27 + $0xb8] sm:$0xff]   ;;  %v94_v41 = vcombine.high %v86_v39, %v86_v39  ;;  %v93_v42 = vrot.slane %v79_v40, %v85_v35  ;;  %v100_v43 = vpack.c.bf16 %v86_v39, %v86_v39  ;;  %v667_v55 = vpack.c.bf16 %v666_v54, %v666_v54  ;;  %v1482_v56 = vld [vmem:[%s1952_s11] sm:$0xff]  }
  0x14   :  { %1306 = vmatpush3.bf16.msra.mxu1 %v1460_v11  ;;  %1285 = vmatprep.subr.bf16.mxu0 %v1461_v12  ;;  %v1483_v57 = vld [vmem:[%s1953_s7] sm:$0xff]   ;;  %v1484_v58 = vld [vmem:[%s1952_s11 + $0x8] sm:$0xff]  }
  0x15   :  { %1307 = vmatprep.subr.bf16.mxu1 %v1462_v13  ;;  %v101_v44 = vpack.c.bf16 %v94_v41, %v94_v41  ;;  %v95_v45 = vcombine.high %v93_v42, %v93_v42  ;;  %v102_v46 = vpack.c.bf16 %v93_v42, %v93_v42  ;;  %v1485_v59 = vld [vmem:[%s1953_s7 + $0x8] sm:$0xff]   ;;  %v1200_v61 = vld [vmem:[%s1954_s0] ss:$0 sm:$0xff] }
  0x16   :  { %v1488_v51 = vld [vmem:[%s1924_s14] sm:$0xff]  }
  0x17   :  { %1286 = vmatpush3.bf16.msra.mxu0 %v1463_v14  ;;  %399 = vmatprep.mubr.bf16.mxu0 %v101_v44  ;;  %v103_v47 = vpack.c.bf16 %v95_v45, %v95_v45  ;;  %v1246_v54 = vld [vmem:[%s1926_s12] ss:$0 sm:$0xff] }
  0x18   :  { %1308 = vmatpush3.bf16.msra.mxu1 %v1464_v15  ;;  %1287 = vmatprep.subr.bf16.mxu0 %v1465_v16  ;;  %v527_v15 = vld [vmem:[%s1955_s28] sm:$0xf] }
  0x19   :  { %1309 = vmatprep.subr.bf16.mxu1 %v1466_v17  ;;  %439 = vmatprep.mubr.bf16.mxu1 %v103_v47 }
  0x1b   :  { %1288 = vmatpush3.bf16.msra.mxu0 %v1467_v18  ;;  %v541_v18 = vsel %vm539_vm5, %v527_v15, 0 }
  0x1c   :  { %1310 = vmatpush3.bf16.msra.mxu1 %v1468_v19  ;;  %1289 = vmatprep.subr.bf16.mxu0 %v1469_v20  ;;  %v525_v19 = vld [vmem:[%s1956_s29] sm:$0x3] }
  0x1d   :  { %1311 = vmatprep.subr.bf16.mxu1 %v1470_v21  ;;  %v526_v20 = vpack.c.bf16 %v525_v19, %v525_v19 }
  0x1f   :  { %1290 = vmatpush3.bf16.msra.mxu0 %v1471_v25  ;;  %v1486_v25 = vld [vmem:[%s1920_s9] sm:$0xff]  }
  0x20   :  { %1312 = vmatpush3.bf16.msra.mxu1 %v1472_v26  ;;  %1291 = vmatprep.subr.bf16.mxu0 %v1473_v27  ;;  %v1487_v26 = vld [vmem:[%s1920_s9 + $0x8] sm:$0xff]   ;;  %v1234_v27 = vld [vmem:[%s1921_s6] ss:$0 sm:$0xff] }
  0x21   :  { %1313 = vmatprep.subr.bf16.mxu1 %v1474_v28 }
  0x23   :  { %1292 = vmatpush3.bf16.msra.mxu0 %v1475_v31 }
  0x24   :  { %1314 = vmatpush3.bf16.msra.mxu1 %v1476_v32  ;;  %1293 = vmatprep.subr.bf16.mxu0 %v1477_v33 }
  0x25   :  { %1315 = vmatprep.subr.bf16.mxu1 %v1478_v34 }
  0x27   :  { %1294 = vmatpush3.bf16.msra.mxu0 %v1479_v36 }
  0x28   :  { %1316 = vmatpush3.bf16.msra.mxu1 %v1480_v37  ;;  %1357 = vmatprep.subr.bf16.mxu0 %v1520_v53  ;;  %v1238_v37 = vld [vmem:[%s1923_s8] ss:$0 sm:$0xff] }
  0x29   :  { %1379 = vmatprep.subr.bf16.mxu1 %v1520_v53 }
  0x2a   :  { %400 = vmatmul.mubr.bf16.vlgmr.msra.gmra.mrb[0].mxu0 %v100_v43 }
  0x2b   :  { %440 = vmatmul.mubr.bf16.vlgmr.msra.gmra.mrb[0].mxu1 %v102_v46  ;;  %1361 = vmatprep.mubr.msk.bf16.mxu0 %vm1521_vm2, %v1520_v53 }
  0x2c   :  { %1380 = vmatpush3.bf16.msra.mxu1 %v685_v52  ;;  %1381 = vmatprep.mubr.msk.bf16.mxu1 %vm1521_vm2, %v1520_v53  ;;  %v1489_v52 = vld [vmem:[%s1924_s14 + $0x8] sm:$0xff]  }
  0x2d   :  { %1393 = vmatprep.subr.bf16.mxu1 %v1520_v53  ;;  %1358 = vmatpush3.bf16.msra.mxu0 %v1482_v56 }
  0x2e   :  { %1359 = vmatprep.subr.bf16.mxu0 %v1520_v53 }
  0x31   :  { %1360 = vmatpush3.bf16.msra.mxu0 %v1484_v58 }
  0x32   :  { %1365 = vmatprep.subr.bf16.mxu0 %v1520_v53 }
  0x33   :  { %1382 = vmatmul.mubr.msk.bf16.vlgmr.msra.gmra.mrb[4].mxu1 %vm676_vm3, %v667_v55 }
  0x34   :  { %1397 = vmatprep.mubr.msk.bf16.mxu1 %vm1521_vm2, %v1520_v53  ;;  %1394 = vmatpush3.bf16.msra.mxu1 %v1483_v57  ;;  %v1241_v57 = vld [vmem:[%s1927_s10] ss:$0 sm:$0xff] }
  0x35   :  { %1395 = vmatprep.subr.bf16.mxu1 %v1520_v53 }
  0x38   :  { %1396 = vmatpush3.bf16.msra.mxu1 %v1485_v59 }
  0x39   :  { %1409 = vmatprep.subr.bf16.mxu1 %v1520_v53 }
  0xfd   :  { %v1295_v60 = vpop.f32.mrb[0].mxu0 }
  0xfe   :  { %v1296_v62 = vpop.f32.mrb[1].mxu0  ;;  %v1317_v63 = vpop.f32.mrb[0].mxu1 }
  0xff   :  { %v1297_v0 = vadd.f32 %v1296_v62, %v1295_v60  ;;  %v1298_v1 = vpop.f32.mrb[2].mxu0  ;;  %v1318_v2 = vpop.f32.mrb[1].mxu1 }
 0x100   :  { %v1299_v3 = vpop.f32.mrb[3].mxu0  ;;  %v1319_v5 = vadd.f32 %v1318_v2, %v1317_v63  ;;  %v1320_v6 = vpop.f32.mrb[2].mxu1 }
 0x101   :  { %v402_v4 = vadd.f32 %v1297_v0, %v1200_v61  ;;  %v1321_v7 = vpop.f32.mrb[3].mxu1 }
 0x103   :  { %v442_v8 = vadd.f32 %v1319_v5, %v402_v4 }
 0x105   :  { %v447_v9 = vmin.f32 %v442_v8, 0.0  ;;  %vm452_vm4 = vcmp.gt.f32.partialorder %v442_v8, 0.0 }
 0x106   :  { %v721_v21 = vpop.f32.mrb[4].mxu1 }
 0x107   :  { %v448_v10 = vmul.f32 1.442695, %v447_v9  ;;  %v1383_v22 = vpop.f32.mrb[5].mxu1  ;;  %v722_v55 = vadd.f32 %v1246_v54, %v721_v21 }
 0x108   :  { %v724_v23 = vpop.f32.mrb[6].mxu1 }
 0x109   :  { %1504 = vpow2.f32 %v448_v10  ;;  %v1384_v24 = vpop.f32.mrb[7].mxu1  ;;  %v727_v56 = vmin.f32 %v722_v55, 0.0  ;;  %vm732_vm11 = vcmp.gt.f32.partialorder %v722_v55, 0.0  ;;  %v1490_v10 = vld [vmem:[%s1925_s15] sm:$0xff]  }
 0x10a   :  { %v1258_v24 = vld [vmem:[%s1929_s16] ss:$0 sm:$0xff] }
 0x10b   :  { %v728_v59 = vmul.f32 1.442695, %v727_v56  ;;  %v1497_v56 = vld [vmem:[%s1931_s21 + $0x8] sm:$0xff]  }
 0x113   :  { %v1505_v11 = vpop.eup %1504 }
 0x114   :  { %v1233_v12 = vadd.f32 -1.0, %v1505_v11 }
 0x116   :  { %v451_v13 = vmul.f32 1.6732632, %v1233_v12 }
 0x118   :  { %v453_v14 = vsel %vm452_vm4, %v442_v8, %v451_v13  ;;  %v1491_v13 = vld [vmem:[%s1925_s15 + $0x8] sm:$0xff]  }
 0x119   :  { %v454_v16 = vmul.f32 1.050701, %v453_v14 }
 0x11b   :  { %v455_v17 = vpack.c.bf16 %v454_v16, %v454_v16  ;;  %v1492_v16 = vld [vmem:[%s1928_s17] sm:$0xff]  }
 0x11d   :  { %1362 = vmatmul.mubr.msk.bf16.vlgmr.msra.gmra.mrb[4].mxu0 %vm479_vm6, %v455_v17  ;;  %1398 = vmatmul.mubr.msk.bf16.vlgmr.msra.gmra.mrb[8].mxu1 %vm479_vm6, %v455_v17  ;;  %v1493_v17 = vld [vmem:[%s1928_s17 + $0x8] sm:$0xff]  }
 0x11e   :  { %1366 = vmatpush3.bf16.msra.mxu0 %v541_v18  ;;  %1367 = vmatprep.mubr.msk.bf16.mxu0 %vm1521_vm2, %v1520_v53 }
 0x11f   :  { %1371 = vmatprep.subr.bf16.mxu0 %v1520_v53  ;;  %1413 = vmatprep.mubr.msk.bf16.mxu1 %vm1521_vm2, %v1520_v53 }
 0x120   :  { %1410 = vmatpush3.bf16.msra.mxu1 %v1492_v16 }
 0x121   :  { %1411 = vmatprep.subr.bf16.mxu1 %v1520_v53 }
 0x124   :  { %1412 = vmatpush3.bf16.msra.mxu1 %v1493_v17 }
 0x125   :  { %1368 = vmatmul.mubr.msk.bf16.vlgmr.msra.gmra.mrb[8].mxu0 %vm535_vm7, %v526_v20  ;;  %1425 = vmatprep.subr.bf16.mxu1 %v1520_v53 }
 0x126   :  { %1375 = vmatprep.mubr.msk.bf16.mxu0 %vm1521_vm2, %v1520_v53  ;;  %1372 = vmatpush3.bf16.msra.mxu0 %v1486_v25 }
 0x127   :  { %1373 = vmatprep.subr.bf16.mxu0 %v1520_v53 }
 0x12a   :  { %1374 = vmatpush3.bf16.msra.mxu0 %v1487_v26 }
 0x12b   :  { %1385 = vmatprep.subr.bf16.mxu0 %v1520_v53 }
 0x1f0   :  { %v517_v28 = vpop.f32.mrb[4].mxu0  ;;  %v1806_v29 = vpop.f32.mrb[8].mxu1 }
 0x1f1   :  { %v518_v30 = vadd.f32 %v1234_v27, %v517_v28  ;;  %v1363_v31 = vpop.f32.mrb[5].mxu0  ;;  %v1399_v32 = vpop.f32.mrb[9].mxu1 }
 0x1f2   :  { %v520_v33 = vpop.f32.mrb[6].mxu0  ;;  %v848_v34 = vpop.f32.mrb[10].mxu1 }
 0x1f3   :  { %524 = vst.msk [vmem:[%s1922_s23] sm:$0x3] %vm523_vm8, %v518_v30  ;;  %v1364_v35 = vpop.f32.mrb[7].mxu0  ;;  %v1400_v36 = vpop.f32.mrb[11].mxu1 }
 0x1f8   :  { %v577_v38 = vpop.f32.mrb[8].mxu0 }
 0x1f9   :  { %v578_v39 = vadd.f32 %v1238_v37, %v577_v38  ;;  %v1369_v40 = vpop.f32.mrb[9].mxu0  ;;  %v1494_v38 = vld [vmem:[%s1930_s19] sm:$0xff]  }
 0x1fa   :  { %v580_v41 = vpop.f32.mrb[10].mxu0  ;;  %v1496_v40 = vld [vmem:[%s1931_s21] sm:$0xff]  }
 0x1fb   :  { %v583_v42 = vmin.f32 %v578_v39, 0.0  ;;  %v1370_v43 = vpop.f32.mrb[11].mxu0  ;;  %vm588_vm9 = vcmp.gt.f32.partialorder %v578_v39, 0.0  ;;  %v1260_v41 = vld [vmem:[%s1932_s18] ss:$0 sm:$0xff] }
 0x1fd   :  { %v584_v44 = vmul.f32 1.442695, %v583_v42 }
 0x1ff   :  { %1506 = vpow2.f32 %v584_v44 }
 0x200   :  { %1508 = vpow2.f32 %v728_v59  ;;  %v1500_v59 = vld [vmem:[%s1931_s21 + $0x20] sm:$0xff]  }
 0x209   :  { %v1507_v45 = vpop.eup %1506 }
 0x20a   :  { %v1240_v46 = vadd.f32 -1.0, %v1507_v45  ;;  %v1509_v2 = vpop.eup %1508 }
 0x20b   :  { %v1248_v4 = vadd.f32 -1.0, %v1509_v2 }
 0x20c   :  { %v587_v47 = vmul.f32 1.6732632, %v1240_v46 }
 0x20d   :  { %v731_v7 = vmul.f32 1.6732632, %v1248_v4 }
 0x20e   :  { %v589_v48 = vsel %vm588_vm9, %v578_v39, %v587_v47  ;;  %v1495_v39 = vld [vmem:[%s1930_s19 + $0x8] sm:$0xff]  }
 0x20f   :  { %v590_v49 = vmul.f32 1.050701, %v589_v48  ;;  %v733_v12 = vsel %vm732_vm11, %v722_v55, %v731_v7 }
 0x210   :  { %v734_v14 = vmul.f32 1.050701, %v733_v12  ;;  %v1270_v12 = vld [vmem:[%s1934_s22] ss:$0 sm:$0xff] }
 0x211   :  { %v591_v50 = vpack.c.bf16 %v590_v49, %v590_v49 }
 0x212   :  { %v851_v15 = vpack.c.bf16 %v734_v14, %v734_v14 }
 0x213   :  { %1376 = vmatmul.mubr.msk.bf16.vlgmr.msra.gmra.mrb[12].mxu0 %vm479_vm6, %v591_v50 }
 0x214   :  { %1389 = vmatprep.mubr.msk.bf16.mxu0 %vm1521_vm2, %v1520_v53  ;;  %1386 = vmatpush3.bf16.msra.mxu0 %v1488_v51 }
 0x215   :  { %1387 = vmatprep.subr.bf16.mxu0 %v1520_v53 }
 0x218   :  { %1388 = vmatpush3.bf16.msra.mxu0 %v1489_v52 }
 0x219   :  { %1401 = vmatprep.subr.bf16.mxu0 %v1520_v53 }
 0x2e6   :  { %v652_v58 = vpop.f32.mrb[12].mxu0 }
 0x2e7   :  { %v653_v60 = vadd.f32 %v1241_v57, %v652_v58  ;;  %v1377_v61 = vpop.f32.mrb[13].mxu0  ;;  %v1498_v57 = vld [vmem:[%s1931_s21 + $0x10] sm:$0xff]   ;;  %v1499_v58 = vld [vmem:[%s1931_s21 + $0x18] sm:$0xff]  }
 0x2e8   :  { %v655_v62 = vpop.f32.mrb[14].mxu0  ;;  %v1502_v61 = vld [vmem:[%s1931_s21 + $0x30] sm:$0xff]  }
 0x2e9   :  { %v658_v63 = vmin.f32 %v653_v60, 0.0  ;;  %v1378_v0 = vpop.f32.mrb[15].mxu0  ;;  %vm663_vm10 = vcmp.gt.f32.partialorder %v653_v60, 0.0  ;;  %v1503_v62 = vld [vmem:[%s1931_s21 + $0x38] sm:$0xff]  }
 0x2eb   :  { %v659_v1 = vmul.f32 1.442695, %v658_v63  ;;  %v1265_v63 = vld [vmem:[%s1933_s20] ss:$0 sm:$0xff] }
 0x2ed   :  { %1510 = vpow2.f32 %v659_v1 }
 0x2f7   :  { %v1511_v3 = vpop.eup %1510 }
 0x2f8   :  { %v1245_v5 = vadd.f32 -1.0, %v1511_v3 }
 0x2fa   :  { %v662_v6 = vmul.f32 1.6732632, %v1245_v5 }
 0x2fc   :  { %v664_v8 = vsel %vm663_vm10, %v653_v60, %v662_v6  ;;  %v1501_v60 = vld [vmem:[%s1931_s21 + $0x28] sm:$0xff]  }
 0x2fd   :  { %v665_v9 = vmul.f32 1.050701, %v664_v8 }
 0x2ff   :  { %v739_v11 = vpack.c.bf16 %v665_v9, %v665_v9 }
 0x301   :  { %1390 = vmatmul.mubr.msk.bf16.vlgmr.msra.gmra.mrb[16].mxu0 %vm479_vm6, %v739_v11 }
 0x302   :  { %1402 = vmatpush3.bf16.msra.mxu0 %v1490_v10  ;;  %1405 = vmatprep.mubr.msk.bf16.mxu0 %vm1521_vm2, %v1520_v53 }
 0x303   :  { %1403 = vmatprep.subr.bf16.mxu0 %v1520_v53 }
 0x306   :  { %1404 = vmatpush3.bf16.msra.mxu0 %v1491_v13 }
 0x307   :  { %1417 = vmatprep.subr.bf16.mxu0 %v1520_v53 }
 0x309   :  { %1406 = vmatmul.mubr.msk.bf16.vlgmr.msra.gmra.mrb[20].mxu0 %vm479_vm6, %v851_v15 }
 0x30a   :  { %1421 = vmatprep.mubr.msk.bf16.mxu0 %vm1521_vm2, %v1520_v53  ;;  %1418 = vmatpush3.bf16.msra.mxu0 %v1494_v38 }
 0x30b   :  { %1419 = vmatprep.subr.bf16.mxu0 %v1520_v53 }
 0x30e   :  { %1420 = vmatpush3.bf16.msra.mxu0 %v1495_v39 }
 0x3d4   :  { %v793_v18 = vpop.f32.mrb[16].mxu0 }
 0x3d5   :  { %v846_v19 = vadd.f32 %v1806_v29, %v793_v18  ;;  %v1391_v20 = vpop.f32.mrb[17].mxu0 }
 0x3d6   :  { %v796_v21 = vpop.f32.mrb[18].mxu0 }
 0x3d7   :  { %v1392_v22 = vpop.f32.mrb[19].mxu0 }
 0x3dc   :  { %v905_v23 = vpop.f32.mrb[20].mxu0 }
 0x3dd   :  { %v911_v25 = vadd.f32 %v905_v23, %v846_v19  ;;  %v1407_v26 = vpop.f32.mrb[21].mxu0 }
 0x3de   :  { %v908_v27 = vpop.f32.mrb[22].mxu0 }
 0x3df   :  { %v919_v28 = vadd.f32 %v1258_v24, %v911_v25  ;;  %v1408_v30 = vpop.f32.mrb[23].mxu0 }
 0x3e1   :  { %v920_v31 = vmin.f32 %v919_v28, 0.0  ;;  %vm925_vm12 = vcmp.gt.f32.partialorder %v919_v28, 0.0 }
 0x3e3   :  { %v921_v32 = vmul.f32 1.442695, %v920_v31 }
 0x3e5   :  { %1512 = vpow2.f32 %v921_v32 }
 0x3ef   :  { %v1513_v33 = vpop.eup %1512 }
 0x3f0   :  { %v1259_v34 = vadd.f32 -1.0, %v1513_v33 }
 0x3f2   :  { %v924_v35 = vmul.f32 1.6732632, %v1259_v34 }
 0x3f4   :  { %v926_v29 = vsel %vm925_vm12, %v919_v28, %v924_v35 }
 0x3f5   :  { %v927_v36 = vmul.f32 1.050701, %v926_v29 }
 0x3f7   :  { %v928_v37 = vpack.c.bf16 %v927_v36, %v927_v36 }
 0x3f9   :  { %1414 = vmatmul.mubr.msk.bf16.vlgmr.msra.gmra.mrb[12].mxu1 %vm479_vm6, %v928_v37 }
 0x3fa   :  { %1441 = vmatprep.mubr.msk.bf16.mxu1 %vm1521_vm2, %v1520_v53  ;;  %1426 = vmatpush3.bf16.msra.mxu1 %v1496_v40 }
 0x3fb   :  { %1427 = vmatprep.subr.bf16.mxu1 %v1520_v53 }
 0x3fe   :  { %1428 = vmatpush3.bf16.msra.mxu1 %v1497_v56 }
 0x3ff   :  { %1429 = vmatprep.subr.bf16.mxu1 %v1520_v53 }
 0x402   :  { %1430 = vmatpush3.bf16.msra.mxu1 %v1498_v57 }
 0x403   :  { %1431 = vmatprep.subr.bf16.mxu1 %v1520_v53 }
 0x406   :  { %1432 = vmatpush3.bf16.msra.mxu1 %v1499_v58 }
 0x407   :  { %1433 = vmatprep.subr.bf16.mxu1 %v1520_v53 }
 0x40a   :  { %1434 = vmatpush3.bf16.msra.mxu1 %v1500_v59 }
 0x40b   :  { %1435 = vmatprep.subr.bf16.mxu1 %v1520_v53 }
 0x40e   :  { %1436 = vmatpush3.bf16.msra.mxu1 %v1501_v60 }
 0x40f   :  { %1437 = vmatprep.subr.bf16.mxu1 %v1520_v53 }
 0x412   :  { %1438 = vmatpush3.bf16.msra.mxu1 %v1502_v61 }
 0x413   :  { %1439 = vmatprep.subr.bf16.mxu1 %v1520_v53 }
 0x416   :  { %1440 = vmatpush3.bf16.msra.mxu1 %v1503_v62 }
 0x4cc   :  { %v989_v42 = vpop.f32.mrb[12].mxu1 }
 0x4cd   :  { %v990_v43 = vadd.f32 %v1260_v41, %v989_v42  ;;  %v1415_v44 = vpop.f32.mrb[13].mxu1 }
 0x4ce   :  { %v992_v45 = vpop.f32.mrb[14].mxu1 }
 0x4cf   :  { %v995_v46 = vmin.f32 %v990_v43, 0.0  ;;  %v1416_v47 = vpop.f32.mrb[15].mxu1  ;;  %vm1000_vm13 = vcmp.gt.f32.partialorder %v990_v43, 0.0 }
 0x4d1   :  { %v996_v48 = vmul.f32 1.442695, %v995_v46 }
 0x4d3   :  { %1514 = vpow2.f32 %v996_v48 }
 0x4dd   :  { %v1515_v49 = vpop.eup %1514 }
 0x4de   :  { %v1264_v50 = vadd.f32 -1.0, %v1515_v49 }
 0x4e0   :  { %v999_v51 = vmul.f32 1.6732632, %v1264_v50 }
 0x4e2   :  { %v1001_v52 = vsel %vm1000_vm13, %v990_v43, %v999_v51 }
 0x4e3   :  { %v1002_v54 = vmul.f32 1.050701, %v1001_v52 }
 0x4e5   :  { %v1003_v55 = vpack.c.bf16 %v1002_v54, %v1002_v54 }
 0x4e7   :  { %1422 = vmatmul.mubr.msk.bf16.vlgmr.msra.gmra.mrb[24].mxu0 %vm479_vm6, %v1003_v55 }
 0x5ba   :  { %v1064_v0 = vpop.f32.mrb[24].mxu0 }
 0x5bb   :  { %v1065_v1 = vadd.f32 %v1265_v63, %v1064_v0  ;;  %v1423_v2 = vpop.f32.mrb[25].mxu0 }
 0x5bc   :  { %v1067_v3 = vpop.f32.mrb[26].mxu0 }
 0x5bd   :  { %v1070_v4 = vmin.f32 %v1065_v1, 0.0  ;;  %v1424_v5 = vpop.f32.mrb[27].mxu0  ;;  %vm1075_vm14 = vcmp.gt.f32.partialorder %v1065_v1, 0.0 }
 0x5bf   :  { %v1071_v6 = vmul.f32 1.442695, %v1070_v4 }
 0x5c1   :  { %1516 = vpow2.f32 %v1071_v6 }
 0x5cb   :  { %v1517_v7 = vpop.eup %1516 }
 0x5cc   :  { %v1269_v8 = vadd.f32 -1.0, %v1517_v7 }
 0x5ce   :  { %v1074_v53 = vmul.f32 1.6732632, %v1269_v8 }
 0x5d0   :  { %v1076_v9 = vsel %vm1075_vm14, %v1065_v1, %v1074_v53 }
 0x5d1   :  { %v1077_v10 = vmul.f32 1.050701, %v1076_v9 }
 0x5d3   :  { %v1078_v11 = vpack.c.bf16 %v1077_v10, %v1077_v10 }
 0x5d5   :  { %1442 = vmatmul.mubr.bf16.vlgmr.msra.gmra.mrb[16].mxu1 %v1078_v11 }
 0x6a8   :  { %v1184_v13 = vpop.f32.mrb[16].mxu1 }
 0x6a9   :  { %v1185_v14 = vadd.f32 %v1270_v12, %v1184_v13  ;;  %v1443_v15 = vpop.f32.mrb[17].mxu1 }
 0x6aa   :  { %v1187_v16 = vpop.f32.mrb[18].mxu1 }
 0x6ab   :  { %1191 = vst.msk [vmem:[%s1935_s24] sm:$0x3] %vm1190_vm15, %v1185_v14  ;;  %v1444_v17 = vpop.f32.mrb[19].mxu1 }

</bundles_post_ra>
